<compile_context>
chip_gen: v7x
topology: tpu7x:2x2x1
jax: 0.10.0
libtpu: 0.0.40
codegen_flags: <defaults>
</compile_context>

<pallas_src>
import functools

import jax
import jax.numpy as jnp
from jax import lax
from jax.experimental import pallas as pl
from jax.experimental.pallas import tpu as pltpu


# ----------------------------- fused Pallas kernel ---------------------------

def _fused_dqn_kernel(xs_ref, w1_ref, b1_ref, w2_ref, b2_ref, w3_ref, b3_ref,
                      wfc_ref, bfc_ref, out_ref, act1_ref, act2_ref, act3_ref):
    bb = xs_ref.shape[0]

    # Padding columns of the activation scratch feed only discarded output
    # columns, but keep them finite (zero).
    act1_ref[...] = jnp.zeros_like(act1_ref)
    act2_ref[...] = jnp.zeros_like(act2_ref)

    def conv_relu(src_ref, w_ref, b_ref, dst_ref, kh, kw, stride, oh, wt):
        """Valid conv + bias + ReLU, one MXU matmul per kernel tap.

        src_ref: (bb, H, W, Cin) VMEM; w_ref: (kh*kw, Cin, Cout);
        dst_ref: (bb, oh, >=wt, Cout).  `wt` (padded output width) is a multiple
        of 8 so the (bb, oh, wt, C) <-> (bb*oh*wt, C) reshapes are layout-trivial.
        """
        cin = src_ref.shape[-1]
        oc = w_ref.shape[-1]
        m = bb * oh * wt
        acc = jnp.zeros((m, oc), jnp.float32)
        for i in range(kh):
            for j in range(kw):
                if stride == 1:
                    tap = src_ref[:, pl.ds(i, oh), pl.ds(j, wt), :]
                else:
                    tap = src_ref[:, pl.ds(i, oh, stride), pl.ds(j, wt, stride), :]
                acc = acc + jnp.dot(tap.reshape(m, cin), w_ref[i * kw + j],
                                    preferred_element_type=jnp.float32)
        y = jnp.maximum(acc + b_ref[...], 0.0)
        dst_ref[:, :, 0:wt, :] = y.reshape(bb, oh, wt, oc)

    # conv1: 8x8/s4 conv == 2x2/s1 conv over the space-to-depth(4) input.
    conv_relu(xs_ref, w1_ref, b1_ref, act1_ref, kh=2, kw=2, stride=1, oh=14, wt=16)
    # conv2: 4x4/s2.
    conv_relu(act1_ref, w2_ref, b2_ref, act2_ref, kh=4, kw=4, stride=2, oh=6, wt=8)
    # conv3: 3x3/s1.
    conv_relu(act2_ref, w3_ref, b3_ref, act3_ref, kh=3, kw=3, stride=1, oh=4, wt=8)

    # Linear(1024, out_dim) + ReLU.  wfc rows were pre-permuted so block (h*4+w)
    # consumes the NHWC channel vector act3[:, h, w, :]; summing over (h, w)
    # reproduces PyTorch's NCHW flatten order exactly.
    out_dim = wfc_ref.shape[-1]
    acc = jnp.zeros((bb, out_dim), jnp.float32)
    for h in range(4):
        for w in range(4):
            acc = acc + jnp.dot(act3_ref[:, h, w, :], wfc_ref[h * 4 + w],
                                preferred_element_type=jnp.float32)
    out_ref[...] = jnp.maximum(acc + bfc_ref[...], 0.0)


# ------------------------------- forward wrapper ------------------------------

def _space_to_depth4(x_nhwc):
    n, h, w, c = x_nhwc.shape
    x = x_nhwc.reshape(n, h // 4, 4, w // 4, 4, c)
    x = jnp.transpose(x, (0, 1, 3, 2, 4, 5))
    return x.reshape(n, h // 4, w // 4, 16 * c)


@functools.partial(jax.jit, static_argnames=("batch_block",))
def model_forward(obs_nchw, params, batch_block=None):
    """obs_nchw: (N, in_ch, 60, 60) float32 -> (N, out_dim) float32."""
    n, c, h, w = obs_nchw.shape
    assert (h, w) == (60, 60), "Linear(in_features=1024) implies a 60x60 input"
    out_dim = params["bfc"].shape[-1]
    c1 = 16 * c

    # One cheap layout pass on the tiny input: NCHW -> NHWC -> space-to-depth(4)
    # -> pad width 15 -> 17 (keeps the padded conv1 output width 16 in bounds).
    x = jnp.transpose(obs_nchw, (0, 2, 3, 1))
    xs = _space_to_depth4(x)                               # (n, 15, 15, 16c)
    xs = jnp.pad(xs, ((0, 0), (0, 0), (0, 2), (0, 0)))     # (n, 15, 17, 16c)

    bb = (n if n <= 8 else 8) if batch_block is None else batch_block
    assert n % bb == 0
    grid = (n // bb,)

    flops = 2 * n * (14 * 16 * c1 * 32 * 4 + 6 * 8 * 32 * 64 * 16
                     + 4 * 8 * 64 * 64 * 9 + 64 * out_dim * 16)
    bytes_accessed = 4 * (xs.size + params["w1"].size + params["w2"].size
                          + params["w3"].size + params["wfc"].size
                          + 32 + 64 + 64 + out_dim + n * out_dim)

    return pl.pallas_call(
        _fused_dqn_kernel,
        out_shape=jax.ShapeDtypeStruct((n, out_dim), jnp.float32),
        grid=grid,
        in_specs=[
            pl.BlockSpec((bb, 15, 17, c1), lambda i: (i, 0, 0, 0)),
            pl.BlockSpec((4, c1, 32), lambda i: (0, 0, 0)),
            pl.BlockSpec((1, 32), lambda i: (0, 0)),
            pl.BlockSpec((16, 32, 64), lambda i: (0, 0, 0)),
            pl.BlockSpec((1, 64), lambda i: (0, 0)),
            pl.BlockSpec((9, 64, 64), lambda i: (0, 0, 0)),
            pl.BlockSpec((1, 64), lambda i: (0, 0)),
            pl.BlockSpec((16, 64, out_dim), lambda i: (0, 0, 0)),
            pl.BlockSpec((1, out_dim), lambda i: (0, 0)),
        ],
        out_specs=pl.BlockSpec((bb, out_dim), lambda i: (i, 0)),
        scratch_shapes=[
            pltpu.VMEM((bb, 14, 18, 32), jnp.float32),   # conv1 activation
            pltpu.VMEM((bb, 6, 10, 64), jnp.float32),    # conv2 activation
            pltpu.VMEM((bb, 4, 8, 64), jnp.float32),     # conv3 activation
        ],
        compiler_params=pltpu.CompilerParams(
            dimension_semantics=("parallel",)),
        cost_estimate=pl.CostEstimate(flops=flops, transcendentals=0,
                                      bytes_accessed=int(bytes_accessed)),
    )(xs, params["w1"], params["b1"], params["w2"], params["b2"],
      params["w3"], params["b3"], params["wfc"], params["bfc"])


# ------------------------- one-time parameter preparation ---------------------

def prepare_params(pt_params):
    """Convert PyTorch-layout weights to the kernel's GEMM layouts (one-time)."""
    (w1, b1, s1), (w2, b2, s2), (w3, b3, s3) = pt_params["convs"]
    assert (s1, s2, s3) == (4, 2, 1)
    wfc, bfc = pt_params["fc"]
    oc1, cin, _, _ = w1.shape
    out_dim = wfc.shape[0]

    # conv1: (32, cin, 8, 8) -> 4 space-to-depth taps of (16*cin, 32).
    w1g = jnp.transpose(w1, (2, 3, 1, 0))                       # (kh, kw, cin, 32)
    w1g = w1g.reshape(2, 4, 2, 4, cin, oc1)                     # (di, dh, dj, dw, cin, 32)
    w1g = jnp.transpose(w1g, (0, 2, 1, 3, 4, 5)).reshape(4, 16 * cin, oc1)

    # conv2 / conv3: (oc, ic, kh, kw) -> (kh*kw, ic, oc) taps.
    w2g = jnp.transpose(w2, (2, 3, 1, 0)).reshape(16, 32, 64)
    w3g = jnp.transpose(w3, (2, 3, 1, 0)).reshape(9, 64, 64)

    # FC: reorder rows from PyTorch's NCHW flatten (c*16 + h*4 + w) into
    # per-(h, w) channel blocks consumed directly from the NHWC activation.
    wfcg = wfc.reshape(out_dim, 64, 4, 4)                       # (o, c, h, w)
    wfcg = jnp.transpose(wfcg, (2, 3, 1, 0)).reshape(16, 64, out_dim)

    return {
        "w1": w1g, "b1": b1.reshape(1, -1),
        "w2": w2g, "b2": b2.reshape(1, -1),
        "w3": w3g, "b3": b3.reshape(1, -1),
        "wfc": wfcg, "bfc": bfc.reshape(1, -1),
    }


def init_torch_params(key, in_ch, out_dim):
    """Deterministic synthetic parameters in PyTorch layout (stand-in for oinit)."""
    ks = jax.random.split(key, 8)

    def w(k, shape, fan_in):
        return jax.random.normal(k, shape, jnp.float32) / jnp.sqrt(fan_in)

    convs = [
        (w(ks[0], (32, in_ch, 8, 8), in_ch * 64),
         0.1 * jax.random.normal(ks[1], (32,), jnp.float32), 4),
        (w(ks[2], (64, 32, 4, 4), 32 * 16),
         0.1 * jax.random.normal(ks[3], (64,), jnp.float32), 2),
        (w(ks[4], (64, 64, 3, 3), 64 * 9),
         0.1 * jax.random.normal(ks[5], (64,), jnp.float32), 1),
    ]
    fc = (w(ks[6], (out_dim, 1024), 1024),
          0.1 * jax.random.normal(ks[7], (out_dim,), jnp.float32))
    return {"convs": convs, "fc": fc}


def reference_forward(obs_nchw, pt_params):
    """Pure-JAX (XLA) reference matching the PyTorch module's forward."""
    x = obs_nchw
    for (wgt, b, s) in pt_params["convs"]:
        x = lax.conv_general_dilated(
            x, wgt, window_strides=(s, s), padding="VALID",
            dimension_numbers=("NCHW", "OIHW", "NCHW"),
            precision=lax.Precision.HIGHEST)
        x = jnp.maximum(x + b[None, :, None, None], 0.0)
    x = x.reshape(x.shape[0], -1)
    wfc, bfc = pt_params["fc"]
    return jnp.maximum(
        jnp.dot(x, wfc.T, precision=lax.Precision.HIGHEST) + bfc, 0.0)


if __name__ == "__main__":
    in_ch, out_dim, batch, hw = 4, 8, 2, 60      # 60x60 -> 14 -> 6 -> 4 (=> 1024)
    key = jax.random.PRNGKey(0)
    k_obs, k_par = jax.random.split(key)
    obs = jax.random.normal(k_obs, (batch, in_ch, hw, hw), jnp.float32)

    pt_params = init_torch_params(k_par, in_ch, out_dim)
    params = prepare_params(pt_params)           # one-time layout prep (hoisted)

    out = jax.block_until_ready(model_forward(obs, params))
    assert out.shape == (batch, out_dim), out.shape
    assert bool(jnp.all(out >= 0.0))             # final ReLU

    ref = jax.block_until_ready(reference_forward(obs, pt_params))
    max_err = float(jnp.max(jnp.abs(out - ref)))
    assert max_err < 2e-2, f"mismatch vs reference: {max_err}"
    print("KERNEL_OK")
</pallas_src>

<mosaic_0001>
module attributes {stable_mosaic.version = 11 : i64} {
  func.func @_fused_dqn_kernel(%arg0: i32, %arg1: memref<2x15x17x64xf32, #tpu.memory_space<vmem>>, %arg2: memref<4x64x32xf32, #tpu.memory_space<vmem>>, %arg3: memref<1x32xf32, #tpu.memory_space<vmem>>, %arg4: memref<16x32x64xf32, #tpu.memory_space<vmem>>, %arg5: memref<1x64xf32, #tpu.memory_space<vmem>>, %arg6: memref<9x64x64xf32, #tpu.memory_space<vmem>>, %arg7: memref<1x64xf32, #tpu.memory_space<vmem>>, %arg8: memref<16x64x8xf32, #tpu.memory_space<vmem>>, %arg9: memref<1x8xf32, #tpu.memory_space<vmem>>, %arg10: memref<2x8xf32, #tpu.memory_space<vmem>>, %arg11: memref<2x14x18x32xf32, #tpu.memory_space<vmem>>, %arg12: memref<2x6x10x64xf32, #tpu.memory_space<vmem>>, %arg13: memref<2x4x8x64xf32, #tpu.memory_space<vmem>>) attributes {dimension_semantics = [#tpu.dimension_semantics<parallel>], iteration_bounds = array<i64: 1>, scalar_prefetch = 0 : i64, scratch_operands = 3 : i64, tpu.core_type = #tpu.core_type<tc>, window_params = [{transform_indices = @transform_0, window_bounds = array<i64: 2, 15, 17, 64>}, {pipeline_mode = #tpu.pipeline_mode<synchronous>, transform_indices = @transform_1, window_bounds = array<i64: 4, 64, 32>}, {pipeline_mode = #tpu.pipeline_mode<synchronous>, transform_indices = @transform_2, window_bounds = array<i64: 1, 32>}, {pipeline_mode = #tpu.pipeline_mode<synchronous>, transform_indices = @transform_3, window_bounds = array<i64: 16, 32, 64>}, {pipeline_mode = #tpu.pipeline_mode<synchronous>, transform_indices = @transform_4, window_bounds = array<i64: 1, 64>}, {pipeline_mode = #tpu.pipeline_mode<synchronous>, transform_indices = @transform_5, window_bounds = array<i64: 9, 64, 64>}, {pipeline_mode = #tpu.pipeline_mode<synchronous>, transform_indices = @transform_6, window_bounds = array<i64: 1, 64>}, {pipeline_mode = #tpu.pipeline_mode<synchronous>, transform_indices = @transform_7, window_bounds = array<i64: 16, 64, 8>}, {pipeline_mode = #tpu.pipeline_mode<synchronous>, transform_indices = @transform_8, window_bounds = array<i64: 1, 8>}, {transform_indices = @transform_9, window_bounds = array<i64: 2, 8>}]} {
    %cst = arith.constant 0.000000e+00 : f32
    %0 = vector.broadcast %cst : f32 to vector<2x14x18x32xf32>
    %c0 = arith.constant 0 : index
    %c0_0 = arith.constant 0 : index
    %c0_1 = arith.constant 0 : index
    %c0_2 = arith.constant 0 : index
    %1 = vector.load %arg11[%c0, %c0_0, %c0_1, %c0_2] : memref<2x14x18x32xf32, #tpu.memory_space<vmem>>, vector<2x14x18x32xf32>
    tpu.vector_store %arg11[%c0, %c0_0, %c0_1, %c0_2], %0 {strides = array<i32>} : memref<2x14x18x32xf32, #tpu.memory_space<vmem>>, vector<2x14x18x32xf32>,
    %cst_3 = arith.constant 0.000000e+00 : f32
    %2 = vector.broadcast %cst_3 : f32 to vector<2x6x10x64xf32>
    %c0_4 = arith.constant 0 : index
    %c0_5 = arith.constant 0 : index
    %c0_6 = arith.constant 0 : index
    %c0_7 = arith.constant 0 : index
    %3 = vector.load %arg12[%c0_4, %c0_5, %c0_6, %c0_7] : memref<2x6x10x64xf32, #tpu.memory_space<vmem>>, vector<2x6x10x64xf32>
    tpu.vector_store %arg12[%c0_4, %c0_5, %c0_6, %c0_7], %2 {strides = array<i32>} : memref<2x6x10x64xf32, #tpu.memory_space<vmem>>, vector<2x6x10x64xf32>,
    %cst_8 = arith.constant 0.000000e+00 : f32
    %4 = vector.broadcast %cst_8 : f32 to vector<448x32xf32>
    %c0_9 = arith.constant 0 : index
    %c0_10 = arith.constant 0 : index
    %c0_11 = arith.constant 0 : index
    %c0_12 = arith.constant 0 : index
    %5 = vector.load %arg1[%c0_9, %c0_10, %c0_11, %c0_12] : memref<2x15x17x64xf32, #tpu.memory_space<vmem>>, vector<2x14x16x64xf32>
    %6 = vector.shape_cast %5 : vector<2x14x16x64xf32> to vector<448x64xf32>
    %c0_13 = arith.constant 0 : index
    %c0_14 = arith.constant 0 : index
    %c0_15 = arith.constant 0 : index
    %7 = vector.load %arg2[%c0_13, %c0_14, %c0_15] : memref<4x64x32xf32, #tpu.memory_space<vmem>>, vector<1x64x32xf32>
    %8 = vector.shape_cast %7 : vector<1x64x32xf32> to vector<64x32xf32>
    %cst_16 = arith.constant dense<0.000000e+00> : vector<448x32xf32>
    %9 = tpu.matmul %6, %8, %cst_16 {dimension_numbers = #tpu.dot_dimension_numbers<[1], [0], [0], [1], [0, 0, 1, 1], [], []>} : vector<448x64xf32>, vector<64x32xf32>, vector<448x32xf32> -> vector<448x32xf32>
    %10 = arith.addf %4, %9 : vector<448x32xf32>
    %c0_17 = arith.constant 0 : index
    %c0_18 = arith.constant 0 : index
    %c1 = arith.constant 1 : index
    %c0_19 = arith.constant 0 : index
    %11 = vector.load %arg1[%c0_17, %c0_18, %c1, %c0_19] : memref<2x15x17x64xf32, #tpu.memory_space<vmem>>, vector<2x14x16x64xf32>
    %12 = vector.shape_cast %11 : vector<2x14x16x64xf32> to vector<448x64xf32>
    %c1_20 = arith.constant 1 : index
    %c0_21 = arith.constant 0 : index
    %c0_22 = arith.constant 0 : index
    %13 = vector.load %arg2[%c1_20, %c0_21, %c0_22] : memref<4x64x32xf32, #tpu.memory_space<vmem>>, vector<1x64x32xf32>
    %14 = vector.shape_cast %13 : vector<1x64x32xf32> to vector<64x32xf32>
    %cst_23 = arith.constant dense<0.000000e+00> : vector<448x32xf32>
    %15 = tpu.matmul %12, %14, %cst_23 {dimension_numbers = #tpu.dot_dimension_numbers<[1], [0], [0], [1], [0, 0, 1, 1], [], []>} : vector<448x64xf32>, vector<64x32xf32>, vector<448x32xf32> -> vector<448x32xf32>
    %16 = arith.addf %10, %15 : vector<448x32xf32>
    %c0_24 = arith.constant 0 : index
    %c1_25 = arith.constant 1 : index
    %c0_26 = arith.constant 0 : index
    %c0_27 = arith.constant 0 : index
    %17 = vector.load %arg1[%c0_24, %c1_25, %c0_26, %c0_27] : memref<2x15x17x64xf32, #tpu.memory_space<vmem>>, vector<2x14x16x64xf32>
    %18 = vector.shape_cast %17 : vector<2x14x16x64xf32> to vector<448x64xf32>
    %c2 = arith.constant 2 : index
    %c0_28 = arith.constant 0 : index
    %c0_29 = arith.constant 0 : index
    %19 = vector.load %arg2[%c2, %c0_28, %c0_29] : memref<4x64x32xf32, #tpu.memory_space<vmem>>, vector<1x64x32xf32>
    %20 = vector.shape_cast %19 : vector<1x64x32xf32> to vector<64x32xf32>
    %cst_30 = arith.constant dense<0.000000e+00> : vector<448x32xf32>
    %21 = tpu.matmul %18, %20, %cst_30 {dimension_numbers = #tpu.dot_dimension_numbers<[1], [0], [0], [1], [0, 0, 1, 1], [], []>} : vector<448x64xf32>, vector<64x32xf32>, vector<448x32xf32> -> vector<448x32xf32>
    %22 = arith.addf %16, %21 : vector<448x32xf32>
    %c0_31 = arith.constant 0 : index
    %c1_32 = arith.constant 1 : index
    %c1_33 = arith.constant 1 : index
    %c0_34 = arith.constant 0 : index
    %23 = vector.load %arg1[%c0_31, %c1_32, %c1_33, %c0_34] : memref<2x15x17x64xf32, #tpu.memory_space<vmem>>, vector<2x14x16x64xf32>
    %24 = vector.shape_cast %23 : vector<2x14x16x64xf32> to vector<448x64xf32>
    %c3 = arith.constant 3 : index
    %c0_35 = arith.constant 0 : index
    %c0_36 = arith.constant 0 : index
    %25 = vector.load %arg2[%c3, %c0_35, %c0_36] : memref<4x64x32xf32, #tpu.memory_space<vmem>>, vector<1x64x32xf32>
    %26 = vector.shape_cast %25 : vector<1x64x32xf32> to vector<64x32xf32>
    %cst_37 = arith.constant dense<0.000000e+00> : vector<448x32xf32>
    %27 = tpu.matmul %24, %26, %cst_37 {dimension_numbers = #tpu.dot_dimension_numbers<[1], [0], [0], [1], [0, 0, 1, 1], [], []>} : vector<448x64xf32>, vector<64x32xf32>, vector<448x32xf32> -> vector<448x32xf32>
    %28 = arith.addf %22, %27 : vector<448x32xf32>
    %c0_38 = arith.constant 0 : index
    %c0_39 = arith.constant 0 : index
    %29 = vector.load %arg3[%c0_38, %c0_39] : memref<1x32xf32, #tpu.memory_space<vmem>>, vector<1x32xf32>
    %30 = vector.broadcast %29 : vector<1x32xf32> to vector<448x32xf32>
    %31 = arith.addf %28, %30 : vector<448x32xf32>
    %cst_40 = arith.constant 0.000000e+00 : f32
    %32 = vector.broadcast %cst_40 : f32 to vector<448x32xf32>
    %33 = arith.maximumf %31, %32 : vector<448x32xf32>
    %34 = vector.shape_cast %33 : vector<448x32xf32> to vector<2x14x16x32xf32>
    %c0_41 = arith.constant 0 : index
    %c0_42 = arith.constant 0 : index
    %c0_43 = arith.constant 0 : index
    %c0_44 = arith.constant 0 : index
    %35 = vector.load %arg11[%c0_41, %c0_42, %c0_43, %c0_44] : memref<2x14x18x32xf32, #tpu.memory_space<vmem>>, vector<2x14x16x32xf32>
    tpu.vector_store %arg11[%c0_41, %c0_42, %c0_43, %c0_44], %34 {strides = array<i32>} : memref<2x14x18x32xf32, #tpu.memory_space<vmem>>, vector<2x14x16x32xf32>,
    %cst_45 = arith.constant 0.000000e+00 : f32
    %36 = vector.broadcast %cst_45 : f32 to vector<96x64xf32>
    %c0_46 = arith.constant 0 : index
    %c0_47 = arith.constant 0 : index
    %c0_48 = arith.constant 0 : index
    %c0_49 = arith.constant 0 : index
    %37 = tpu.strided_load %arg11[%c0_46, %c0_47, %c0_48, %c0_49] {strides = array<i32: 1, 2, 2, 1>} : memref<2x14x18x32xf32, #tpu.memory_space<vmem>>, vector<2x6x8x32xf32>
    %38 = vector.shape_cast %37 : vector<2x6x8x32xf32> to vector<96x32xf32>
    %c0_50 = arith.constant 0 : index
    %c0_51 = arith.constant 0 : index
    %c0_52 = arith.constant 0 : index
    %39 = vector.load %arg4[%c0_50, %c0_51, %c0_52] : memref<16x32x64xf32, #tpu.memory_space<vmem>>, vector<1x32x64xf32>
    %40 = vector.shape_cast %39 : vector<1x32x64xf32> to vector<32x64xf32>
    %cst_53 = arith.constant dense<0.000000e+00> : vector<96x64xf32>
    %41 = tpu.matmul %38, %40, %cst_53 {dimension_numbers = #tpu.dot_dimension_numbers<[1], [0], [0], [1], [0, 0, 1, 1], [], []>} : vector<96x32xf32>, vector<32x64xf32>, vector<96x64xf32> -> vector<96x64xf32>
    %42 = arith.addf %36, %41 : vector<96x64xf32>
    %c0_54 = arith.constant 0 : index
    %c0_55 = arith.constant 0 : index
    %c1_56 = arith.constant 1 : index
    %c0_57 = arith.constant 0 : index
    %43 = tpu.strided_load %arg11[%c0_54, %c0_55, %c1_56, %c0_57] {strides = array<i32: 1, 2, 2, 1>} : memref<2x14x18x32xf32, #tpu.memory_space<vmem>>, vector<2x6x8x32xf32>
    %44 = vector.shape_cast %43 : vector<2x6x8x32xf32> to vector<96x32xf32>
    %c1_58 = arith.constant 1 : index
    %c0_59 = arith.constant 0 : index
    %c0_60 = arith.constant 0 : index
    %45 = vector.load %arg4[%c1_58, %c0_59, %c0_60] : memref<16x32x64xf32, #tpu.memory_space<vmem>>, vector<1x32x64xf32>
    %46 = vector.shape_cast %45 : vector<1x32x64xf32> to vector<32x64xf32>
    %cst_61 = arith.constant dense<0.000000e+00> : vector<96x64xf32>
    %47 = tpu.matmul %44, %46, %cst_61 {dimension_numbers = #tpu.dot_dimension_numbers<[1], [0], [0], [1], [0, 0, 1, 1], [], []>} : vector<96x32xf32>, vector<32x64xf32>, vector<96x64xf32> -> vector<96x64xf32>
    %48 = arith.addf %42, %47 : vector<96x64xf32>
    %c0_62 = arith.constant 0 : index
    %c0_63 = arith.constant 0 : index
    %c2_64 = arith.constant 2 : index
    %c0_65 = arith.constant 0 : index
    %49 = tpu.strided_load %arg11[%c0_62, %c0_63, %c2_64, %c0_65] {strides = array<i32: 1, 2, 2, 1>} : memref<2x14x18x32xf32, #tpu.memory_space<vmem>>, vector<2x6x8x32xf32>
    %50 = vector.shape_cast %49 : vector<2x6x8x32xf32> to vector<96x32xf32>
    %c2_66 = arith.constant 2 : index
    %c0_67 = arith.constant 0 : index
    %c0_68 = arith.constant 0 : index
    %51 = vector.load %arg4[%c2_66, %c0_67, %c0_68] : memref<16x32x64xf32, #tpu.memory_space<vmem>>, vector<1x32x64xf32>
    %52 = vector.shape_cast %51 : vector<1x32x64xf32> to vector<32x64xf32>
    %cst_69 = arith.constant dense<0.000000e+00> : vector<96x64xf32>
    %53 = tpu.matmul %50, %52, %cst_69 {dimension_numbers = #tpu.dot_dimension_numbers<[1], [0], [0], [1], [0, 0, 1, 1], [], []>} : vector<96x32xf32>, vector<32x64xf32>, vector<96x64xf32> -> vector<96x64xf32>
    %54 = arith.addf %48, %53 : vector<96x64xf32>
    %c0_70 = arith.constant 0 : index
    %c0_71 = arith.constant 0 : index
    %c3_72 = arith.constant 3 : index
    %c0_73 = arith.constant 0 : index
    %55 = tpu.strided_load %arg11[%c0_70, %c0_71, %c3_72, %c0_73] {strides = array<i32: 1, 2, 2, 1>} : memref<2x14x18x32xf32, #tpu.memory_space<vmem>>, vector<2x6x8x32xf32>
    %56 = vector.shape_cast %55 : vector<2x6x8x32xf32> to vector<96x32xf32>
    %c3_74 = arith.constant 3 : index
    %c0_75 = arith.constant 0 : index
    %c0_76 = arith.constant 0 : index
    %57 = vector.load %arg4[%c3_74, %c0_75, %c0_76] : memref<16x32x64xf32, #tpu.memory_space<vmem>>, vector<1x32x64xf32>
    %58 = vector.shape_cast %57 : vector<1x32x64xf32> to vector<32x64xf32>
    %cst_77 = arith.constant dense<0.000000e+00> : vector<96x64xf32>
    %59 = tpu.matmul %56, %58, %cst_77 {dimension_numbers = #tpu.dot_dimension_numbers<[1], [0], [0], [1], [0, 0, 1, 1], [], []>} : vector<96x32xf32>, vector<32x64xf32>, vector<96x64xf32> -> vector<96x64xf32>
    %60 = arith.addf %54, %59 : vector<96x64xf32>
    %c0_78 = arith.constant 0 : index
    %c1_79 = arith.constant 1 : index
    %c0_80 = arith.constant 0 : index
    %c0_81 = arith.constant 0 : index
    %61 = tpu.strided_load %arg11[%c0_78, %c1_79, %c0_80, %c0_81] {strides = array<i32: 1, 2, 2, 1>} : memref<2x14x18x32xf32, #tpu.memory_space<vmem>>, vector<2x6x8x32xf32>
    %62 = vector.shape_cast %61 : vector<2x6x8x32xf32> to vector<96x32xf32>
    %c4 = arith.constant 4 : index
    %c0_82 = arith.constant 0 : index
    %c0_83 = arith.constant 0 : index
    %63 = vector.load %arg4[%c4, %c0_82, %c0_83] : memref<16x32x64xf32, #tpu.memory_space<vmem>>, vector<1x32x64xf32>
    %64 = vector.shape_cast %63 : vector<1x32x64xf32> to vector<32x64xf32>
    %cst_84 = arith.constant dense<0.000000e+00> : vector<96x64xf32>
    %65 = tpu.matmul %62, %64, %cst_84 {dimension_numbers = #tpu.dot_dimension_numbers<[1], [0], [0], [1], [0, 0, 1, 1], [], []>} : vector<96x32xf32>, vector<32x64xf32>, vector<96x64xf32> -> vector<96x64xf32>
    %66 = arith.addf %60, %65 : vector<96x64xf32>
    %c0_85 = arith.constant 0 : index
    %c1_86 = arith.constant 1 : index
    %c1_87 = arith.constant 1 : index
    %c0_88 = arith.constant 0 : index
    %67 = tpu.strided_load %arg11[%c0_85, %c1_86, %c1_87, %c0_88] {strides = array<i32: 1, 2, 2, 1>} : memref<2x14x18x32xf32, #tpu.memory_space<vmem>>, vector<2x6x8x32xf32>
    %68 = vector.shape_cast %67 : vector<2x6x8x32xf32> to vector<96x32xf32>
    %c5 = arith.constant 5 : index
    %c0_89 = arith.constant 0 : index
    %c0_90 = arith.constant 0 : index
    %69 = vector.load %arg4[%c5, %c0_89, %c0_90] : memref<16x32x64xf32, #tpu.memory_space<vmem>>, vector<1x32x64xf32>
    %70 = vector.shape_cast %69 : vector<1x32x64xf32> to vector<32x64xf32>
    %cst_91 = arith.constant dense<0.000000e+00> : vector<96x64xf32>
    %71 = tpu.matmul %68, %70, %cst_91 {dimension_numbers = #tpu.dot_dimension_numbers<[1], [0], [0], [1], [0, 0, 1, 1], [], []>} : vector<96x32xf32>, vector<32x64xf32>, vector<96x64xf32> -> vector<96x64xf32>
    %72 = arith.addf %66, %71 : vector<96x64xf32>
    %c0_92 = arith.constant 0 : index
    %c1_93 = arith.constant 1 : index
    %c2_94 = arith.constant 2 : index
    %c0_95 = arith.constant 0 : index
    %73 = tpu.strided_load %arg11[%c0_92, %c1_93, %c2_94, %c0_95] {strides = array<i32: 1, 2, 2, 1>} : memref<2x14x18x32xf32, #tpu.memory_space<vmem>>, vector<2x6x8x32xf32>
    %74 = vector.shape_cast %73 : vector<2x6x8x32xf32> to vector<96x32xf32>
    %c6 = arith.constant 6 : index
    %c0_96 = arith.constant 0 : index
    %c0_97 = arith.constant 0 : index
    %75 = vector.load %arg4[%c6, %c0_96, %c0_97] : memref<16x32x64xf32, #tpu.memory_space<vmem>>, vector<1x32x64xf32>
    %76 = vector.shape_cast %75 : vector<1x32x64xf32> to vector<32x64xf32>
    %cst_98 = arith.constant dense<0.000000e+00> : vector<96x64xf32>
    %77 = tpu.matmul %74, %76, %cst_98 {dimension_numbers = #tpu.dot_dimension_numbers<[1], [0], [0], [1], [0, 0, 1, 1], [], []>} : vector<96x32xf32>, vector<32x64xf32>, vector<96x64xf32> -> vector<96x64xf32>
    %78 = arith.addf %72, %77 : vector<96x64xf32>
    %c0_99 = arith.constant 0 : index
    %c1_100 = arith.constant 1 : index
    %c3_101 = arith.constant 3 : index
    %c0_102 = arith.constant 0 : index
    %79 = tpu.strided_load %arg11[%c0_99, %c1_100, %c3_101, %c0_102] {strides = array<i32: 1, 2, 2, 1>} : memref<2x14x18x32xf32, #tpu.memory_space<vmem>>, vector<2x6x8x32xf32>
    %80 = vector.shape_cast %79 : vector<2x6x8x32xf32> to vector<96x32xf32>
    %c7 = arith.constant 7 : index
    %c0_103 = arith.constant 0 : index
    %c0_104 = arith.constant 0 : index
    %81 = vector.load %arg4[%c7, %c0_103, %c0_104] : memref<16x32x64xf32, #tpu.memory_space<vmem>>, vector<1x32x64xf32>
    %82 = vector.shape_cast %81 : vector<1x32x64xf32> to vector<32x64xf32>
    %cst_105 = arith.constant dense<0.000000e+00> : vector<96x64xf32>
    %83 = tpu.matmul %80, %82, %cst_105 {dimension_numbers = #tpu.dot_dimension_numbers<[1], [0], [0], [1], [0, 0, 1, 1], [], []>} : vector<96x32xf32>, vector<32x64xf32>, vector<96x64xf32> -> vector<96x64xf32>
    %84 = arith.addf %78, %83 : vector<96x64xf32>
    %c0_106 = arith.constant 0 : index
    %c2_107 = arith.constant 2 : index
    %c0_108 = arith.constant 0 : index
    %c0_109 = arith.constant 0 : index
    %85 = tpu.strided_load %arg11[%c0_106, %c2_107, %c0_108, %c0_109] {strides = array<i32: 1, 2, 2, 1>} : memref<2x14x18x32xf32, #tpu.memory_space<vmem>>, vector<2x6x8x32xf32>
    %86 = vector.shape_cast %85 : vector<2x6x8x32xf32> to vector<96x32xf32>
    %c8 = arith.constant 8 : index
    %c0_110 = arith.constant 0 : index
    %c0_111 = arith.constant 0 : index
    %87 = vector.load %arg4[%c8, %c0_110, %c0_111] : memref<16x32x64xf32, #tpu.memory_space<vmem>>, vector<1x32x64xf32>
    %88 = vector.shape_cast %87 : vector<1x32x64xf32> to vector<32x64xf32>
    %cst_112 = arith.constant dense<0.000000e+00> : vector<96x64xf32>
    %89 = tpu.matmul %86, %88, %cst_112 {dimension_numbers = #tpu.dot_dimension_numbers<[1], [0], [0], [1], [0, 0, 1, 1], [], []>} : vector<96x32xf32>, vector<32x64xf32>, vector<96x64xf32> -> vector<96x64xf32>
    %90 = arith.addf %84, %89 : vector<96x64xf32>
    %c0_113 = arith.constant 0 : index
    %c2_114 = arith.constant 2 : index
    %c1_115 = arith.constant 1 : index
    %c0_116 = arith.constant 0 : index
    %91 = tpu.strided_load %arg11[%c0_113, %c2_114, %c1_115, %c0_116] {strides = array<i32: 1, 2, 2, 1>} : memref<2x14x18x32xf32, #tpu.memory_space<vmem>>, vector<2x6x8x32xf32>
    %92 = vector.shape_cast %91 : vector<2x6x8x32xf32> to vector<96x32xf32>
    %c9 = arith.constant 9 : index
    %c0_117 = arith.constant 0 : index
    %c0_118 = arith.constant 0 : index
    %93 = vector.load %arg4[%c9, %c0_117, %c0_118] : memref<16x32x64xf32, #tpu.memory_space<vmem>>, vector<1x32x64xf32>
    %94 = vector.shape_cast %93 : vector<1x32x64xf32> to vector<32x64xf32>
    %cst_119 = arith.constant dense<0.000000e+00> : vector<96x64xf32>
    %95 = tpu.matmul %92, %94, %cst_119 {dimension_numbers = #tpu.dot_dimension_numbers<[1], [0], [0], [1], [0, 0, 1, 1], [], []>} : vector<96x32xf32>, vector<32x64xf32>, vector<96x64xf32> -> vector<96x64xf32>
    %96 = arith.addf %90, %95 : vector<96x64xf32>
    %c0_120 = arith.constant 0 : index
    %c2_121 = arith.constant 2 : index
    %c2_122 = arith.constant 2 : index
    %c0_123 = arith.constant 0 : index
    %97 = tpu.strided_load %arg11[%c0_120, %c2_121, %c2_122, %c0_123] {strides = array<i32: 1, 2, 2, 1>} : memref<2x14x18x32xf32, #tpu.memory_space<vmem>>, vector<2x6x8x32xf32>
    %98 = vector.shape_cast %97 : vector<2x6x8x32xf32> to vector<96x32xf32>
    %c10 = arith.constant 10 : index
    %c0_124 = arith.constant 0 : index
    %c0_125 = arith.constant 0 : index
    %99 = vector.load %arg4[%c10, %c0_124, %c0_125] : memref<16x32x64xf32, #tpu.memory_space<vmem>>, vector<1x32x64xf32>
    %100 = vector.shape_cast %99 : vector<1x32x64xf32> to vector<32x64xf32>
    %cst_126 = arith.constant dense<0.000000e+00> : vector<96x64xf32>
    %101 = tpu.matmul %98, %100, %cst_126 {dimension_numbers = #tpu.dot_dimension_numbers<[1], [0], [0], [1], [0, 0, 1, 1], [], []>} : vector<96x32xf32>, vector<32x64xf32>, vector<96x64xf32> -> vector<96x64xf32>
    %102 = arith.addf %96, %101 : vector<96x64xf32>
    %c0_127 = arith.constant 0 : index
    %c2_128 = arith.constant 2 : index
    %c3_129 = arith.constant 3 : index
    %c0_130 = arith.constant 0 : index
    %103 = tpu.strided_load %arg11[%c0_127, %c2_128, %c3_129, %c0_130] {strides = array<i32: 1, 2, 2, 1>} : memref<2x14x18x32xf32, #tpu.memory_space<vmem>>, vector<2x6x8x32xf32>
    %104 = vector.shape_cast %103 : vector<2x6x8x32xf32> to vector<96x32xf32>
    %c11 = arith.constant 11 : index
    %c0_131 = arith.constant 0 : index
    %c0_132 = arith.constant 0 : index
    %105 = vector.load %arg4[%c11, %c0_131, %c0_132] : memref<16x32x64xf32, #tpu.memory_space<vmem>>, vector<1x32x64xf32>
    %106 = vector.shape_cast %105 : vector<1x32x64xf32> to vector<32x64xf32>
    %cst_133 = arith.constant dense<0.000000e+00> : vector<96x64xf32>
    %107 = tpu.matmul %104, %106, %cst_133 {dimension_numbers = #tpu.dot_dimension_numbers<[1], [0], [0], [1], [0, 0, 1, 1], [], []>} : vector<96x32xf32>, vector<32x64xf32>, vector<96x64xf32> -> vector<96x64xf32>
    %108 = arith.addf %102, %107 : vector<96x64xf32>
    %c0_134 = arith.constant 0 : index
    %c3_135 = arith.constant 3 : index
    %c0_136 = arith.constant 0 : index
    %c0_137 = arith.constant 0 : index
    %109 = tpu.strided_load %arg11[%c0_134, %c3_135, %c0_136, %c0_137] {strides = array<i32: 1, 2, 2, 1>} : memref<2x14x18x32xf32, #tpu.memory_space<vmem>>, vector<2x6x8x32xf32>
    %110 = vector.shape_cast %109 : vector<2x6x8x32xf32> to vector<96x32xf32>
    %c12 = arith.constant 12 : index
    %c0_138 = arith.constant 0 : index
    %c0_139 = arith.constant 0 : index
    %111 = vector.load %arg4[%c12, %c0_138, %c0_139] : memref<16x32x64xf32, #tpu.memory_space<vmem>>, vector<1x32x64xf32>
    %112 = vector.shape_cast %111 : vector<1x32x64xf32> to vector<32x64xf32>
    %cst_140 = arith.constant dense<0.000000e+00> : vector<96x64xf32>
    %113 = tpu.matmul %110, %112, %cst_140 {dimension_numbers = #tpu.dot_dimension_numbers<[1], [0], [0], [1], [0, 0, 1, 1], [], []>} : vector<96x32xf32>, vector<32x64xf32>, vector<96x64xf32> -> vector<96x64xf32>
    %114 = arith.addf %108, %113 : vector<96x64xf32>
    %c0_141 = arith.constant 0 : index
    %c3_142 = arith.constant 3 : index
    %c1_143 = arith.constant 1 : index
    %c0_144 = arith.constant 0 : index
    %115 = tpu.strided_load %arg11[%c0_141, %c3_142, %c1_143, %c0_144] {strides = array<i32: 1, 2, 2, 1>} : memref<2x14x18x32xf32, #tpu.memory_space<vmem>>, vector<2x6x8x32xf32>
    %116 = vector.shape_cast %115 : vector<2x6x8x32xf32> to vector<96x32xf32>
    %c13 = arith.constant 13 : index
    %c0_145 = arith.constant 0 : index
    %c0_146 = arith.constant 0 : index
    %117 = vector.load %arg4[%c13, %c0_145, %c0_146] : memref<16x32x64xf32, #tpu.memory_space<vmem>>, vector<1x32x64xf32>
    %118 = vector.shape_cast %117 : vector<1x32x64xf32> to vector<32x64xf32>
    %cst_147 = arith.constant dense<0.000000e+00> : vector<96x64xf32>
    %119 = tpu.matmul %116, %118, %cst_147 {dimension_numbers = #tpu.dot_dimension_numbers<[1], [0], [0], [1], [0, 0, 1, 1], [], []>} : vector<96x32xf32>, vector<32x64xf32>, vector<96x64xf32> -> vector<96x64xf32>
    %120 = arith.addf %114, %119 : vector<96x64xf32>
    %c0_148 = arith.constant 0 : index
    %c3_149 = arith.constant 3 : index
    %c2_150 = arith.constant 2 : index
    %c0_151 = arith.constant 0 : index
    %121 = tpu.strided_load %arg11[%c0_148, %c3_149, %c2_150, %c0_151] {strides = array<i32: 1, 2, 2, 1>} : memref<2x14x18x32xf32, #tpu.memory_space<vmem>>, vector<2x6x8x32xf32>
    %122 = vector.shape_cast %121 : vector<2x6x8x32xf32> to vector<96x32xf32>
    %c14 = arith.constant 14 : index
    %c0_152 = arith.constant 0 : index
    %c0_153 = arith.constant 0 : index
    %123 = vector.load %arg4[%c14, %c0_152, %c0_153] : memref<16x32x64xf32, #tpu.memory_space<vmem>>, vector<1x32x64xf32>
    %124 = vector.shape_cast %123 : vector<1x32x64xf32> to vector<32x64xf32>
    %cst_154 = arith.constant dense<0.000000e+00> : vector<96x64xf32>
    %125 = tpu.matmul %122, %124, %cst_154 {dimension_numbers = #tpu.dot_dimension_numbers<[1], [0], [0], [1], [0, 0, 1, 1], [], []>} : vector<96x32xf32>, vector<32x64xf32>, vector<96x64xf32> -> vector<96x64xf32>
    %126 = arith.addf %120, %125 : vector<96x64xf32>
    %c0_155 = arith.constant 0 : index
    %c3_156 = arith.constant 3 : index
    %c3_157 = arith.constant 3 : index
    %c0_158 = arith.constant 0 : index
    %127 = tpu.strided_load %arg11[%c0_155, %c3_156, %c3_157, %c0_158] {strides = array<i32: 1, 2, 2, 1>} : memref<2x14x18x32xf32, #tpu.memory_space<vmem>>, vector<2x6x8x32xf32>
    %128 = vector.shape_cast %127 : vector<2x6x8x32xf32> to vector<96x32xf32>
    %c15 = arith.constant 15 : index
    %c0_159 = arith.constant 0 : index
    %c0_160 = arith.constant 0 : index
    %129 = vector.load %arg4[%c15, %c0_159, %c0_160] : memref<16x32x64xf32, #tpu.memory_space<vmem>>, vector<1x32x64xf32>
    %130 = vector.shape_cast %129 : vector<1x32x64xf32> to vector<32x64xf32>
    %cst_161 = arith.constant dense<0.000000e+00> : vector<96x64xf32>
    %131 = tpu.matmul %128, %130, %cst_161 {dimension_numbers = #tpu.dot_dimension_numbers<[1], [0], [0], [1], [0, 0, 1, 1], [], []>} : vector<96x32xf32>, vector<32x64xf32>, vector<96x64xf32> -> vector<96x64xf32>
    %132 = arith.addf %126, %131 : vector<96x64xf32>
    %c0_162 = arith.constant 0 : index
    %c0_163 = arith.constant 0 : index
    %133 = vector.load %arg5[%c0_162, %c0_163] : memref<1x64xf32, #tpu.memory_space<vmem>>, vector<1x64xf32>
    %134 = vector.broadcast %133 : vector<1x64xf32> to vector<96x64xf32>
    %135 = arith.addf %132, %134 : vector<96x64xf32>
    %cst_164 = arith.constant 0.000000e+00 : f32
    %136 = vector.broadcast %cst_164 : f32 to vector<96x64xf32>
    %137 = arith.maximumf %135, %136 : vector<96x64xf32>
    %138 = vector.shape_cast %137 : vector<96x64xf32> to vector<2x6x8x64xf32>
    %c0_165 = arith.constant 0 : index
    %c0_166 = arith.constant 0 : index
    %c0_167 = arith.constant 0 : index
    %c0_168 = arith.constant 0 : index
    %139 = vector.load %arg12[%c0_165, %c0_166, %c0_167, %c0_168] : memref<2x6x10x64xf32, #tpu.memory_space<vmem>>, vector<2x6x8x64xf32>
    tpu.vector_store %arg12[%c0_165, %c0_166, %c0_167, %c0_168], %138 {strides = array<i32>} : memref<2x6x10x64xf32, #tpu.memory_space<vmem>>, vector<2x6x8x64xf32>,
    %cst_169 = arith.constant 0.000000e+00 : f32
    %140 = vector.broadcast %cst_169 : f32 to vector<64x64xf32>
    %c0_170 = arith.constant 0 : index
    %c0_171 = arith.constant 0 : index
    %c0_172 = arith.constant 0 : index
    %c0_173 = arith.constant 0 : index
    %141 = vector.load %arg12[%c0_170, %c0_171, %c0_172, %c0_173] : memref<2x6x10x64xf32, #tpu.memory_space<vmem>>, vector<2x4x8x64xf32>
    %142 = vector.shape_cast %141 : vector<2x4x8x64xf32> to vector<64x64xf32>
    %c0_174 = arith.constant 0 : index
    %c0_175 = arith.constant 0 : index
    %c0_176 = arith.constant 0 : index
    %143 = vector.load %arg6[%c0_174, %c0_175, %c0_176] : memref<9x64x64xf32, #tpu.memory_space<vmem>>, vector<1x64x64xf32>
    %144 = vector.shape_cast %143 : vector<1x64x64xf32> to vector<64x64xf32>
    %cst_177 = arith.constant dense<0.000000e+00> : vector<64x64xf32>
    %145 = tpu.matmul %142, %144, %cst_177 {dimension_numbers = #tpu.dot_dimension_numbers<[1], [0], [0], [1], [0, 0, 1, 1], [], []>} : vector<64x64xf32>, vector<64x64xf32>, vector<64x64xf32> -> vector<64x64xf32>
    %146 = arith.addf %140, %145 : vector<64x64xf32>
    %c0_178 = arith.constant 0 : index
    %c0_179 = arith.constant 0 : index
    %c1_180 = arith.constant 1 : index
    %c0_181 = arith.constant 0 : index
    %147 = vector.load %arg12[%c0_178, %c0_179, %c1_180, %c0_181] : memref<2x6x10x64xf32, #tpu.memory_space<vmem>>, vector<2x4x8x64xf32>
    %148 = vector.shape_cast %147 : vector<2x4x8x64xf32> to vector<64x64xf32>
    %c1_182 = arith.constant 1 : index
    %c0_183 = arith.constant 0 : index
    %c0_184 = arith.constant 0 : index
    %149 = vector.load %arg6[%c1_182, %c0_183, %c0_184] : memref<9x64x64xf32, #tpu.memory_space<vmem>>, vector<1x64x64xf32>
    %150 = vector.shape_cast %149 : vector<1x64x64xf32> to vector<64x64xf32>
    %cst_185 = arith.constant dense<0.000000e+00> : vector<64x64xf32>
    %151 = tpu.matmul %148, %150, %cst_185 {dimension_numbers = #tpu.dot_dimension_numbers<[1], [0], [0], [1], [0, 0, 1, 1], [], []>} : vector<64x64xf32>, vector<64x64xf32>, vector<64x64xf32> -> vector<64x64xf32>
    %152 = arith.addf %146, %151 : vector<64x64xf32>
    %c0_186 = arith.constant 0 : index
    %c0_187 = arith.constant 0 : index
    %c2_188 = arith.constant 2 : index
    %c0_189 = arith.constant 0 : index
    %153 = vector.load %arg12[%c0_186, %c0_187, %c2_188, %c0_189] : memref<2x6x10x64xf32, #tpu.memory_space<vmem>>, vector<2x4x8x64xf32>
    %154 = vector.shape_cast %153 : vector<2x4x8x64xf32> to vector<64x64xf32>
    %c2_190 = arith.constant 2 : index
    %c0_191 = arith.constant 0 : index
    %c0_192 = arith.constant 0 : index
    %155 = vector.load %arg6[%c2_190, %c0_191, %c0_192] : memref<9x64x64xf32, #tpu.memory_space<vmem>>, vector<1x64x64xf32>
    %156 = vector.shape_cast %155 : vector<1x64x64xf32> to vector<64x64xf32>
    %cst_193 = arith.constant dense<0.000000e+00> : vector<64x64xf32>
    %157 = tpu.matmul %154, %156, %cst_193 {dimension_numbers = #tpu.dot_dimension_numbers<[1], [0], [0], [1], [0, 0, 1, 1], [], []>} : vector<64x64xf32>, vector<64x64xf32>, vector<64x64xf32> -> vector<64x64xf32>
    %158 = arith.addf %152, %157 : vector<64x64xf32>
    %c0_194 = arith.constant 0 : index
    %c1_195 = arith.constant 1 : index
    %c0_196 = arith.constant 0 : index
    %c0_197 = arith.constant 0 : index
    %159 = vector.load %arg12[%c0_194, %c1_195, %c0_196, %c0_197] : memref<2x6x10x64xf32, #tpu.memory_space<vmem>>, vector<2x4x8x64xf32>
    %160 = vector.shape_cast %159 : vector<2x4x8x64xf32> to vector<64x64xf32>
    %c3_198 = arith.constant 3 : index
    %c0_199 = arith.constant 0 : index
    %c0_200 = arith.constant 0 : index
    %161 = vector.load %arg6[%c3_198, %c0_199, %c0_200] : memref<9x64x64xf32, #tpu.memory_space<vmem>>, vector<1x64x64xf32>
    %162 = vector.shape_cast %161 : vector<1x64x64xf32> to vector<64x64xf32>
    %cst_201 = arith.constant dense<0.000000e+00> : vector<64x64xf32>
    %163 = tpu.matmul %160, %162, %cst_201 {dimension_numbers = #tpu.dot_dimension_numbers<[1], [0], [0], [1], [0, 0, 1, 1], [], []>} : vector<64x64xf32>, vector<64x64xf32>, vector<64x64xf32> -> vector<64x64xf32>
    %164 = arith.addf %158, %163 : vector<64x64xf32>
    %c0_202 = arith.constant 0 : index
    %c1_203 = arith.constant 1 : index
    %c1_204 = arith.constant 1 : index
    %c0_205 = arith.constant 0 : index
    %165 = vector.load %arg12[%c0_202, %c1_203, %c1_204, %c0_205] : memref<2x6x10x64xf32, #tpu.memory_space<vmem>>, vector<2x4x8x64xf32>
    %166 = vector.shape_cast %165 : vector<2x4x8x64xf32> to vector<64x64xf32>
    %c4_206 = arith.constant 4 : index
    %c0_207 = arith.constant 0 : index
    %c0_208 = arith.constant 0 : index
    %167 = vector.load %arg6[%c4_206, %c0_207, %c0_208] : memref<9x64x64xf32, #tpu.memory_space<vmem>>, vector<1x64x64xf32>
    %168 = vector.shape_cast %167 : vector<1x64x64xf32> to vector<64x64xf32>
    %cst_209 = arith.constant dense<0.000000e+00> : vector<64x64xf32>
    %169 = tpu.matmul %166, %168, %cst_209 {dimension_numbers = #tpu.dot_dimension_numbers<[1], [0], [0], [1], [0, 0, 1, 1], [], []>} : vector<64x64xf32>, vector<64x64xf32>, vector<64x64xf32> -> vector<64x64xf32>
    %170 = arith.addf %164, %169 : vector<64x64xf32>
    %c0_210 = arith.constant 0 : index
    %c1_211 = arith.constant 1 : index
    %c2_212 = arith.constant 2 : index
    %c0_213 = arith.constant 0 : index
    %171 = vector.load %arg12[%c0_210, %c1_211, %c2_212, %c0_213] : memref<2x6x10x64xf32, #tpu.memory_space<vmem>>, vector<2x4x8x64xf32>
    %172 = vector.shape_cast %171 : vector<2x4x8x64xf32> to vector<64x64xf32>
    %c5_214 = arith.constant 5 : index
    %c0_215 = arith.constant 0 : index
    %c0_216 = arith.constant 0 : index
    %173 = vector.load %arg6[%c5_214, %c0_215, %c0_216] : memref<9x64x64xf32, #tpu.memory_space<vmem>>, vector<1x64x64xf32>
    %174 = vector.shape_cast %173 : vector<1x64x64xf32> to vector<64x64xf32>
    %cst_217 = arith.constant dense<0.000000e+00> : vector<64x64xf32>
    %175 = tpu.matmul %172, %174, %cst_217 {dimension_numbers = #tpu.dot_dimension_numbers<[1], [0], [0], [1], [0, 0, 1, 1], [], []>} : vector<64x64xf32>, vector<64x64xf32>, vector<64x64xf32> -> vector<64x64xf32>
    %176 = arith.addf %170, %175 : vector<64x64xf32>
    %c0_218 = arith.constant 0 : index
    %c2_219 = arith.constant 2 : index
    %c0_220 = arith.constant 0 : index
    %c0_221 = arith.constant 0 : index
    %177 = vector.load %arg12[%c0_218, %c2_219, %c0_220, %c0_221] : memref<2x6x10x64xf32, #tpu.memory_space<vmem>>, vector<2x4x8x64xf32>
    %178 = vector.shape_cast %177 : vector<2x4x8x64xf32> to vector<64x64xf32>
    %c6_222 = arith.constant 6 : index
    %c0_223 = arith.constant 0 : index
    %c0_224 = arith.constant 0 : index
    %179 = vector.load %arg6[%c6_222, %c0_223, %c0_224] : memref<9x64x64xf32, #tpu.memory_space<vmem>>, vector<1x64x64xf32>
    %180 = vector.shape_cast %179 : vector<1x64x64xf32> to vector<64x64xf32>
    %cst_225 = arith.constant dense<0.000000e+00> : vector<64x64xf32>
    %181 = tpu.matmul %178, %180, %cst_225 {dimension_numbers = #tpu.dot_dimension_numbers<[1], [0], [0], [1], [0, 0, 1, 1], [], []>} : vector<64x64xf32>, vector<64x64xf32>, vector<64x64xf32> -> vector<64x64xf32>
    %182 = arith.addf %176, %181 : vector<64x64xf32>
    %c0_226 = arith.constant 0 : index
    %c2_227 = arith.constant 2 : index
    %c1_228 = arith.constant 1 : index
    %c0_229 = arith.constant 0 : index
    %183 = vector.load %arg12[%c0_226, %c2_227, %c1_228, %c0_229] : memref<2x6x10x64xf32, #tpu.memory_space<vmem>>, vector<2x4x8x64xf32>
    %184 = vector.shape_cast %183 : vector<2x4x8x64xf32> to vector<64x64xf32>
    %c7_230 = arith.constant 7 : index
    %c0_231 = arith.constant 0 : index
    %c0_232 = arith.constant 0 : index
    %185 = vector.load %arg6[%c7_230, %c0_231, %c0_232] : memref<9x64x64xf32, #tpu.memory_space<vmem>>, vector<1x64x64xf32>
    %186 = vector.shape_cast %185 : vector<1x64x64xf32> to vector<64x64xf32>
    %cst_233 = arith.constant dense<0.000000e+00> : vector<64x64xf32>
    %187 = tpu.matmul %184, %186, %cst_233 {dimension_numbers = #tpu.dot_dimension_numbers<[1], [0], [0], [1], [0, 0, 1, 1], [], []>} : vector<64x64xf32>, vector<64x64xf32>, vector<64x64xf32> -> vector<64x64xf32>
    %188 = arith.addf %182, %187 : vector<64x64xf32>
    %c0_234 = arith.constant 0 : index
    %c2_235 = arith.constant 2 : index
    %c2_236 = arith.constant 2 : index
    %c0_237 = arith.constant 0 : index
    %189 = vector.load %arg12[%c0_234, %c2_235, %c2_236, %c0_237] : memref<2x6x10x64xf32, #tpu.memory_space<vmem>>, vector<2x4x8x64xf32>
    %190 = vector.shape_cast %189 : vector<2x4x8x64xf32> to vector<64x64xf32>
    %c8_238 = arith.constant 8 : index
    %c0_239 = arith.constant 0 : index
    %c0_240 = arith.constant 0 : index
    %191 = vector.load %arg6[%c8_238, %c0_239, %c0_240] : memref<9x64x64xf32, #tpu.memory_space<vmem>>, vector<1x64x64xf32>
    %192 = vector.shape_cast %191 : vector<1x64x64xf32> to vector<64x64xf32>
    %cst_241 = arith.constant dense<0.000000e+00> : vector<64x64xf32>
    %193 = tpu.matmul %190, %192, %cst_241 {dimension_numbers = #tpu.dot_dimension_numbers<[1], [0], [0], [1], [0, 0, 1, 1], [], []>} : vector<64x64xf32>, vector<64x64xf32>, vector<64x64xf32> -> vector<64x64xf32>
    %194 = arith.addf %188, %193 : vector<64x64xf32>
    %c0_242 = arith.constant 0 : index
    %c0_243 = arith.constant 0 : index
    %195 = vector.load %arg7[%c0_242, %c0_243] : memref<1x64xf32, #tpu.memory_space<vmem>>, vector<1x64xf32>
    %196 = vector.broadcast %195 : vector<1x64xf32> to vector<64x64xf32>
    %197 = arith.addf %194, %196 : vector<64x64xf32>
    %cst_244 = arith.constant 0.000000e+00 : f32
    %198 = vector.broadcast %cst_244 : f32 to vector<64x64xf32>
    %199 = arith.maximumf %197, %198 : vector<64x64xf32>
    %200 = vector.shape_cast %199 : vector<64x64xf32> to vector<2x4x8x64xf32>
    %c0_245 = arith.constant 0 : index
    %c0_246 = arith.constant 0 : index
    %c0_247 = arith.constant 0 : index
    %c0_248 = arith.constant 0 : index
    %201 = vector.load %arg13[%c0_245, %c0_246, %c0_247, %c0_248] : memref<2x4x8x64xf32, #tpu.memory_space<vmem>>, vector<2x4x8x64xf32>
    tpu.vector_store %arg13[%c0_245, %c0_246, %c0_247, %c0_248], %200 {strides = array<i32>} : memref<2x4x8x64xf32, #tpu.memory_space<vmem>>, vector<2x4x8x64xf32>,
    %cst_249 = arith.constant 0.000000e+00 : f32
    %202 = vector.broadcast %cst_249 : f32 to vector<2x8xf32>
    %c0_250 = arith.constant 0 : index
    %c0_251 = arith.constant 0 : index
    %c0_252 = arith.constant 0 : index
    %c0_253 = arith.constant 0 : index
    %203 = vector.load %arg13[%c0_250, %c0_251, %c0_252, %c0_253] : memref<2x4x8x64xf32, #tpu.memory_space<vmem>>, vector<2x1x1x64xf32>
    %204 = vector.shape_cast %203 : vector<2x1x1x64xf32> to vector<2x64xf32>
    %c0_254 = arith.constant 0 : index
    %c0_255 = arith.constant 0 : index
    %c0_256 = arith.constant 0 : index
    %205 = vector.load %arg8[%c0_254, %c0_255, %c0_256] : memref<16x64x8xf32, #tpu.memory_space<vmem>>, vector<1x64x8xf32>
    %206 = vector.shape_cast %205 : vector<1x64x8xf32> to vector<64x8xf32>
    %cst_257 = arith.constant dense<0.000000e+00> : vector<2x8xf32>
    %207 = tpu.matmul %204, %206, %cst_257 {dimension_numbers = #tpu.dot_dimension_numbers<[1], [0], [0], [1], [0, 0, 1, 1], [], []>} : vector<2x64xf32>, vector<64x8xf32>, vector<2x8xf32> -> vector<2x8xf32>
    %208 = arith.addf %202, %207 : vector<2x8xf32>
    %c0_258 = arith.constant 0 : index
    %c0_259 = arith.constant 0 : index
    %c1_260 = arith.constant 1 : index
    %c0_261 = arith.constant 0 : index
    %209 = vector.load %arg13[%c0_258, %c0_259, %c1_260, %c0_261] : memref<2x4x8x64xf32, #tpu.memory_space<vmem>>, vector<2x1x1x64xf32>
    %210 = vector.shape_cast %209 : vector<2x1x1x64xf32> to vector<2x64xf32>
    %c1_262 = arith.constant 1 : index
    %c0_263 = arith.constant 0 : index
    %c0_264 = arith.constant 0 : index
    %211 = vector.load %arg8[%c1_262, %c0_263, %c0_264] : memref<16x64x8xf32, #tpu.memory_space<vmem>>, vector<1x64x8xf32>
    %212 = vector.shape_cast %211 : vector<1x64x8xf32> to vector<64x8xf32>
    %cst_265 = arith.constant dense<0.000000e+00> : vector<2x8xf32>
    %213 = tpu.matmul %210, %212, %cst_265 {dimension_numbers = #tpu.dot_dimension_numbers<[1], [0], [0], [1], [0, 0, 1, 1], [], []>} : vector<2x64xf32>, vector<64x8xf32>, vector<2x8xf32> -> vector<2x8xf32>
    %214 = arith.addf %208, %213 : vector<2x8xf32>
    %c0_266 = arith.constant 0 : index
    %c0_267 = arith.constant 0 : index
    %c2_268 = arith.constant 2 : index
    %c0_269 = arith.constant 0 : index
    %215 = vector.load %arg13[%c0_266, %c0_267, %c2_268, %c0_269] : memref<2x4x8x64xf32, #tpu.memory_space<vmem>>, vector<2x1x1x64xf32>
    %216 = vector.shape_cast %215 : vector<2x1x1x64xf32> to vector<2x64xf32>
    %c2_270 = arith.constant 2 : index
    %c0_271 = arith.constant 0 : index
    %c0_272 = arith.constant 0 : index
    %217 = vector.load %arg8[%c2_270, %c0_271, %c0_272] : memref<16x64x8xf32, #tpu.memory_space<vmem>>, vector<1x64x8xf32>
    %218 = vector.shape_cast %217 : vector<1x64x8xf32> to vector<64x8xf32>
    %cst_273 = arith.constant dense<0.000000e+00> : vector<2x8xf32>
    %219 = tpu.matmul %216, %218, %cst_273 {dimension_numbers = #tpu.dot_dimension_numbers<[1], [0], [0], [1], [0, 0, 1, 1], [], []>} : vector<2x64xf32>, vector<64x8xf32>, vector<2x8xf32> -> vector<2x8xf32>
    %220 = arith.addf %214, %219 : vector<2x8xf32>
    %c0_274 = arith.constant 0 : index
    %c0_275 = arith.constant 0 : index
    %c3_276 = arith.constant 3 : index
    %c0_277 = arith.constant 0 : index
    %221 = vector.load %arg13[%c0_274, %c0_275, %c3_276, %c0_277] : memref<2x4x8x64xf32, #tpu.memory_space<vmem>>, vector<2x1x1x64xf32>
    %222 = vector.shape_cast %221 : vector<2x1x1x64xf32> to vector<2x64xf32>
    %c3_278 = arith.constant 3 : index
    %c0_279 = arith.constant 0 : index
    %c0_280 = arith.constant 0 : index
    %223 = vector.load %arg8[%c3_278, %c0_279, %c0_280] : memref<16x64x8xf32, #tpu.memory_space<vmem>>, vector<1x64x8xf32>
    %224 = vector.shape_cast %223 : vector<1x64x8xf32> to vector<64x8xf32>
    %cst_281 = arith.constant dense<0.000000e+00> : vector<2x8xf32>
    %225 = tpu.matmul %222, %224, %cst_281 {dimension_numbers = #tpu.dot_dimension_numbers<[1], [0], [0], [1], [0, 0, 1, 1], [], []>} : vector<2x64xf32>, vector<64x8xf32>, vector<2x8xf32> -> vector<2x8xf32>
    %226 = arith.addf %220, %225 : vector<2x8xf32>
    %c0_282 = arith.constant 0 : index
    %c1_283 = arith.constant 1 : index
    %c0_284 = arith.constant 0 : index
    %c0_285 = arith.constant 0 : index
    %227 = vector.load %arg13[%c0_282, %c1_283, %c0_284, %c0_285] : memref<2x4x8x64xf32, #tpu.memory_space<vmem>>, vector<2x1x1x64xf32>
    %228 = vector.shape_cast %227 : vector<2x1x1x64xf32> to vector<2x64xf32>
    %c4_286 = arith.constant 4 : index
    %c0_287 = arith.constant 0 : index
    %c0_288 = arith.constant 0 : index
    %229 = vector.load %arg8[%c4_286, %c0_287, %c0_288] : memref<16x64x8xf32, #tpu.memory_space<vmem>>, vector<1x64x8xf32>
    %230 = vector.shape_cast %229 : vector<1x64x8xf32> to vector<64x8xf32>
    %cst_289 = arith.constant dense<0.000000e+00> : vector<2x8xf32>
    %231 = tpu.matmul %228, %230, %cst_289 {dimension_numbers = #tpu.dot_dimension_numbers<[1], [0], [0], [1], [0, 0, 1, 1], [], []>} : vector<2x64xf32>, vector<64x8xf32>, vector<2x8xf32> -> vector<2x8xf32>
    %232 = arith.addf %226, %231 : vector<2x8xf32>
    %c0_290 = arith.constant 0 : index
    %c1_291 = arith.constant 1 : index
    %c1_292 = arith.constant 1 : index
    %c0_293 = arith.constant 0 : index
    %233 = vector.load %arg13[%c0_290, %c1_291, %c1_292, %c0_293] : memref<2x4x8x64xf32, #tpu.memory_space<vmem>>, vector<2x1x1x64xf32>
    %234 = vector.shape_cast %233 : vector<2x1x1x64xf32> to vector<2x64xf32>
    %c5_294 = arith.constant 5 : index
    %c0_295 = arith.constant 0 : index
    %c0_296 = arith.constant 0 : index
    %235 = vector.load %arg8[%c5_294, %c0_295, %c0_296] : memref<16x64x8xf32, #tpu.memory_space<vmem>>, vector<1x64x8xf32>
    %236 = vector.shape_cast %235 : vector<1x64x8xf32> to vector<64x8xf32>
    %cst_297 = arith.constant dense<0.000000e+00> : vector<2x8xf32>
    %237 = tpu.matmul %234, %236, %cst_297 {dimension_numbers = #tpu.dot_dimension_numbers<[1], [0], [0], [1], [0, 0, 1, 1], [], []>} : vector<2x64xf32>, vector<64x8xf32>, vector<2x8xf32> -> vector<2x8xf32>
    %238 = arith.addf %232, %237 : vector<2x8xf32>
    %c0_298 = arith.constant 0 : index
    %c1_299 = arith.constant 1 : index
    %c2_300 = arith.constant 2 : index
    %c0_301 = arith.constant 0 : index
    %239 = vector.load %arg13[%c0_298, %c1_299, %c2_300, %c0_301] : memref<2x4x8x64xf32, #tpu.memory_space<vmem>>, vector<2x1x1x64xf32>
    %240 = vector.shape_cast %239 : vector<2x1x1x64xf32> to vector<2x64xf32>
    %c6_302 = arith.constant 6 : index
    %c0_303 = arith.constant 0 : index
    %c0_304 = arith.constant 0 : index
    %241 = vector.load %arg8[%c6_302, %c0_303, %c0_304] : memref<16x64x8xf32, #tpu.memory_space<vmem>>, vector<1x64x8xf32>
    %242 = vector.shape_cast %241 : vector<1x64x8xf32> to vector<64x8xf32>
    %cst_305 = arith.constant dense<0.000000e+00> : vector<2x8xf32>
    %243 = tpu.matmul %240, %242, %cst_305 {dimension_numbers = #tpu.dot_dimension_numbers<[1], [0], [0], [1], [0, 0, 1, 1], [], []>} : vector<2x64xf32>, vector<64x8xf32>, vector<2x8xf32> -> vector<2x8xf32>
    %244 = arith.addf %238, %243 : vector<2x8xf32>
    %c0_306 = arith.constant 0 : index
    %c1_307 = arith.constant 1 : index
    %c3_308 = arith.constant 3 : index
    %c0_309 = arith.constant 0 : index
    %245 = vector.load %arg13[%c0_306, %c1_307, %c3_308, %c0_309] : memref<2x4x8x64xf32, #tpu.memory_space<vmem>>, vector<2x1x1x64xf32>
    %246 = vector.shape_cast %245 : vector<2x1x1x64xf32> to vector<2x64xf32>
    %c7_310 = arith.constant 7 : index
    %c0_311 = arith.constant 0 : index
    %c0_312 = arith.constant 0 : index
    %247 = vector.load %arg8[%c7_310, %c0_311, %c0_312] : memref<16x64x8xf32, #tpu.memory_space<vmem>>, vector<1x64x8xf32>
    %248 = vector.shape_cast %247 : vector<1x64x8xf32> to vector<64x8xf32>
    %cst_313 = arith.constant dense<0.000000e+00> : vector<2x8xf32>
    %249 = tpu.matmul %246, %248, %cst_313 {dimension_numbers = #tpu.dot_dimension_numbers<[1], [0], [0], [1], [0, 0, 1, 1], [], []>} : vector<2x64xf32>, vector<64x8xf32>, vector<2x8xf32> -> vector<2x8xf32>
    %250 = arith.addf %244, %249 : vector<2x8xf32>
    %c0_314 = arith.constant 0 : index
    %c2_315 = arith.constant 2 : index
    %c0_316 = arith.constant 0 : index
    %c0_317 = arith.constant 0 : index
    %251 = vector.load %arg13[%c0_314, %c2_315, %c0_316, %c0_317] : memref<2x4x8x64xf32, #tpu.memory_space<vmem>>, vector<2x1x1x64xf32>
    %252 = vector.shape_cast %251 : vector<2x1x1x64xf32> to vector<2x64xf32>
    %c8_318 = arith.constant 8 : index
    %c0_319 = arith.constant 0 : index
    %c0_320 = arith.constant 0 : index
    %253 = vector.load %arg8[%c8_318, %c0_319, %c0_320] : memref<16x64x8xf32, #tpu.memory_space<vmem>>, vector<1x64x8xf32>
    %254 = vector.shape_cast %253 : vector<1x64x8xf32> to vector<64x8xf32>
    %cst_321 = arith.constant dense<0.000000e+00> : vector<2x8xf32>
    %255 = tpu.matmul %252, %254, %cst_321 {dimension_numbers = #tpu.dot_dimension_numbers<[1], [0], [0], [1], [0, 0, 1, 1], [], []>} : vector<2x64xf32>, vector<64x8xf32>, vector<2x8xf32> -> vector<2x8xf32>
    %256 = arith.addf %250, %255 : vector<2x8xf32>
    %c0_322 = arith.constant 0 : index
    %c2_323 = arith.constant 2 : index
    %c1_324 = arith.constant 1 : index
    %c0_325 = arith.constant 0 : index
    %257 = vector.load %arg13[%c0_322, %c2_323, %c1_324, %c0_325] : memref<2x4x8x64xf32, #tpu.memory_space<vmem>>, vector<2x1x1x64xf32>
    %258 = vector.shape_cast %257 : vector<2x1x1x64xf32> to vector<2x64xf32>
    %c9_326 = arith.constant 9 : index
    %c0_327 = arith.constant 0 : index
    %c0_328 = arith.constant 0 : index
    %259 = vector.load %arg8[%c9_326, %c0_327, %c0_328] : memref<16x64x8xf32, #tpu.memory_space<vmem>>, vector<1x64x8xf32>
    %260 = vector.shape_cast %259 : vector<1x64x8xf32> to vector<64x8xf32>
    %cst_329 = arith.constant dense<0.000000e+00> : vector<2x8xf32>
    %261 = tpu.matmul %258, %260, %cst_329 {dimension_numbers = #tpu.dot_dimension_numbers<[1], [0], [0], [1], [0, 0, 1, 1], [], []>} : vector<2x64xf32>, vector<64x8xf32>, vector<2x8xf32> -> vector<2x8xf32>
    %262 = arith.addf %256, %261 : vector<2x8xf32>
    %c0_330 = arith.constant 0 : index
    %c2_331 = arith.constant 2 : index
    %c2_332 = arith.constant 2 : index
    %c0_333 = arith.constant 0 : index
    %263 = vector.load %arg13[%c0_330, %c2_331, %c2_332, %c0_333] : memref<2x4x8x64xf32, #tpu.memory_space<vmem>>, vector<2x1x1x64xf32>
    %264 = vector.shape_cast %263 : vector<2x1x1x64xf32> to vector<2x64xf32>
    %c10_334 = arith.constant 10 : index
    %c0_335 = arith.constant 0 : index
    %c0_336 = arith.constant 0 : index
    %265 = vector.load %arg8[%c10_334, %c0_335, %c0_336] : memref<16x64x8xf32, #tpu.memory_space<vmem>>, vector<1x64x8xf32>
    %266 = vector.shape_cast %265 : vector<1x64x8xf32> to vector<64x8xf32>
    %cst_337 = arith.constant dense<0.000000e+00> : vector<2x8xf32>
    %267 = tpu.matmul %264, %266, %cst_337 {dimension_numbers = #tpu.dot_dimension_numbers<[1], [0], [0], [1], [0, 0, 1, 1], [], []>} : vector<2x64xf32>, vector<64x8xf32>, vector<2x8xf32> -> vector<2x8xf32>
    %268 = arith.addf %262, %267 : vector<2x8xf32>
    %c0_338 = arith.constant 0 : index
    %c2_339 = arith.constant 2 : index
    %c3_340 = arith.constant 3 : index
    %c0_341 = arith.constant 0 : index
    %269 = vector.load %arg13[%c0_338, %c2_339, %c3_340, %c0_341] : memref<2x4x8x64xf32, #tpu.memory_space<vmem>>, vector<2x1x1x64xf32>
    %270 = vector.shape_cast %269 : vector<2x1x1x64xf32> to vector<2x64xf32>
    %c11_342 = arith.constant 11 : index
    %c0_343 = arith.constant 0 : index
    %c0_344 = arith.constant 0 : index
    %271 = vector.load %arg8[%c11_342, %c0_343, %c0_344] : memref<16x64x8xf32, #tpu.memory_space<vmem>>, vector<1x64x8xf32>
    %272 = vector.shape_cast %271 : vector<1x64x8xf32> to vector<64x8xf32>
    %cst_345 = arith.constant dense<0.000000e+00> : vector<2x8xf32>
    %273 = tpu.matmul %270, %272, %cst_345 {dimension_numbers = #tpu.dot_dimension_numbers<[1], [0], [0], [1], [0, 0, 1, 1], [], []>} : vector<2x64xf32>, vector<64x8xf32>, vector<2x8xf32> -> vector<2x8xf32>
    %274 = arith.addf %268, %273 : vector<2x8xf32>
    %c0_346 = arith.constant 0 : index
    %c3_347 = arith.constant 3 : index
    %c0_348 = arith.constant 0 : index
    %c0_349 = arith.constant 0 : index
    %275 = vector.load %arg13[%c0_346, %c3_347, %c0_348, %c0_349] : memref<2x4x8x64xf32, #tpu.memory_space<vmem>>, vector<2x1x1x64xf32>
    %276 = vector.shape_cast %275 : vector<2x1x1x64xf32> to vector<2x64xf32>
    %c12_350 = arith.constant 12 : index
    %c0_351 = arith.constant 0 : index
    %c0_352 = arith.constant 0 : index
    %277 = vector.load %arg8[%c12_350, %c0_351, %c0_352] : memref<16x64x8xf32, #tpu.memory_space<vmem>>, vector<1x64x8xf32>
    %278 = vector.shape_cast %277 : vector<1x64x8xf32> to vector<64x8xf32>
    %cst_353 = arith.constant dense<0.000000e+00> : vector<2x8xf32>
    %279 = tpu.matmul %276, %278, %cst_353 {dimension_numbers = #tpu.dot_dimension_numbers<[1], [0], [0], [1], [0, 0, 1, 1], [], []>} : vector<2x64xf32>, vector<64x8xf32>, vector<2x8xf32> -> vector<2x8xf32>
    %280 = arith.addf %274, %279 : vector<2x8xf32>
    %c0_354 = arith.constant 0 : index
    %c3_355 = arith.constant 3 : index
    %c1_356 = arith.constant 1 : index
    %c0_357 = arith.constant 0 : index
    %281 = vector.load %arg13[%c0_354, %c3_355, %c1_356, %c0_357] : memref<2x4x8x64xf32, #tpu.memory_space<vmem>>, vector<2x1x1x64xf32>
    %282 = vector.shape_cast %281 : vector<2x1x1x64xf32> to vector<2x64xf32>
    %c13_358 = arith.constant 13 : index
    %c0_359 = arith.constant 0 : index
    %c0_360 = arith.constant 0 : index
    %283 = vector.load %arg8[%c13_358, %c0_359, %c0_360] : memref<16x64x8xf32, #tpu.memory_space<vmem>>, vector<1x64x8xf32>
    %284 = vector.shape_cast %283 : vector<1x64x8xf32> to vector<64x8xf32>
    %cst_361 = arith.constant dense<0.000000e+00> : vector<2x8xf32>
    %285 = tpu.matmul %282, %284, %cst_361 {dimension_numbers = #tpu.dot_dimension_numbers<[1], [0], [0], [1], [0, 0, 1, 1], [], []>} : vector<2x64xf32>, vector<64x8xf32>, vector<2x8xf32> -> vector<2x8xf32>
    %286 = arith.addf %280, %285 : vector<2x8xf32>
    %c0_362 = arith.constant 0 : index
    %c3_363 = arith.constant 3 : index
    %c2_364 = arith.constant 2 : index
    %c0_365 = arith.constant 0 : index
    %287 = vector.load %arg13[%c0_362, %c3_363, %c2_364, %c0_365] : memref<2x4x8x64xf32, #tpu.memory_space<vmem>>, vector<2x1x1x64xf32>
    %288 = vector.shape_cast %287 : vector<2x1x1x64xf32> to vector<2x64xf32>
    %c14_366 = arith.constant 14 : index
    %c0_367 = arith.constant 0 : index
    %c0_368 = arith.constant 0 : index
    %289 = vector.load %arg8[%c14_366, %c0_367, %c0_368] : memref<16x64x8xf32, #tpu.memory_space<vmem>>, vector<1x64x8xf32>
    %290 = vector.shape_cast %289 : vector<1x64x8xf32> to vector<64x8xf32>
    %cst_369 = arith.constant dense<0.000000e+00> : vector<2x8xf32>
    %291 = tpu.matmul %288, %290, %cst_369 {dimension_numbers = #tpu.dot_dimension_numbers<[1], [0], [0], [1], [0, 0, 1, 1], [], []>} : vector<2x64xf32>, vector<64x8xf32>, vector<2x8xf32> -> vector<2x8xf32>
    %292 = arith.addf %286, %291 : vector<2x8xf32>
    %c0_370 = arith.constant 0 : index
    %c3_371 = arith.constant 3 : index
    %c3_372 = arith.constant 3 : index
    %c0_373 = arith.constant 0 : index
    %293 = vector.load %arg13[%c0_370, %c3_371, %c3_372, %c0_373] : memref<2x4x8x64xf32, #tpu.memory_space<vmem>>, vector<2x1x1x64xf32>
    %294 = vector.shape_cast %293 : vector<2x1x1x64xf32> to vector<2x64xf32>
    %c15_374 = arith.constant 15 : index
    %c0_375 = arith.constant 0 : index
    %c0_376 = arith.constant 0 : index
    %295 = vector.load %arg8[%c15_374, %c0_375, %c0_376] : memref<16x64x8xf32, #tpu.memory_space<vmem>>, vector<1x64x8xf32>
    %296 = vector.shape_cast %295 : vector<1x64x8xf32> to vector<64x8xf32>
    %cst_377 = arith.constant dense<0.000000e+00> : vector<2x8xf32>
    %297 = tpu.matmul %294, %296, %cst_377 {dimension_numbers = #tpu.dot_dimension_numbers<[1], [0], [0], [1], [0, 0, 1, 1], [], []>} : vector<2x64xf32>, vector<64x8xf32>, vector<2x8xf32> -> vector<2x8xf32>
    %298 = arith.addf %292, %297 : vector<2x8xf32>
    %c0_378 = arith.constant 0 : index
    %c0_379 = arith.constant 0 : index
    %299 = vector.load %arg9[%c0_378, %c0_379] : memref<1x8xf32, #tpu.memory_space<vmem>>, vector<1x8xf32>
    %300 = vector.broadcast %299 : vector<1x8xf32> to vector<2x8xf32>
    %301 = arith.addf %298, %300 : vector<2x8xf32>
    %cst_380 = arith.constant 0.000000e+00 : f32
    %302 = vector.broadcast %cst_380 : f32 to vector<2x8xf32>
    %303 = arith.maximumf %301, %302 : vector<2x8xf32>
    %c0_381 = arith.constant 0 : index
    %c0_382 = arith.constant 0 : index
    %304 = vector.load %arg10[%c0_381, %c0_382] : memref<2x8xf32, #tpu.memory_space<vmem>>, vector<2x8xf32>
    tpu.vector_store %arg10[%c0_381, %c0_382], %303 {strides = array<i32>} : memref<2x8xf32, #tpu.memory_space<vmem>>, vector<2x8xf32>,
    return
  }
  func.func @transform_0(%arg0: i32) -> (i32, i32, i32, i32) {
    %c0_i32 = arith.constant 0 : i32
    %c0_i32_0 = arith.constant 0 : i32
    %c0_i32_1 = arith.constant 0 : i32
    %c0_i32_2 = arith.constant 0 : i32
    return %arg0, %c0_i32, %c0_i32_0, %c0_i32_1 : i32, i32, i32, i32
  }
  func.func @transform_1(%arg0: i32) -> (i32, i32, i32) {
    %c0_i32 = arith.constant 0 : i32
    %c0_i32_0 = arith.constant 0 : i32
    %c0_i32_1 = arith.constant 0 : i32
    %c0_i32_2 = arith.constant 0 : i32
    return %c0_i32, %c0_i32_0, %c0_i32_1 : i32, i32, i32
  }
  func.func @transform_2(%arg0: i32) -> (i32, i32) {
    %c0_i32 = arith.constant 0 : i32
    %c0_i32_0 = arith.constant 0 : i32
    %c0_i32_1 = arith.constant 0 : i32
    return %c0_i32, %c0_i32_0 : i32, i32
  }
  func.func @transform_3(%arg0: i32) -> (i32, i32, i32) {
    %c0_i32 = arith.constant 0 : i32
    %c0_i32_0 = arith.constant 0 : i32
    %c0_i32_1 = arith.constant 0 : i32
    %c0_i32_2 = arith.constant 0 : i32
    return %c0_i32, %c0_i32_0, %c0_i32_1 : i32, i32, i32
  }
  func.func @transform_4(%arg0: i32) -> (i32, i32) {
    %c0_i32 = arith.constant 0 : i32
    %c0_i32_0 = arith.constant 0 : i32
    %c0_i32_1 = arith.constant 0 : i32
    return %c0_i32, %c0_i32_0 : i32, i32
  }
  func.func @transform_5(%arg0: i32) -> (i32, i32, i32) {
    %c0_i32 = arith.constant 0 : i32
    %c0_i32_0 = arith.constant 0 : i32
    %c0_i32_1 = arith.constant 0 : i32
    %c0_i32_2 = arith.constant 0 : i32
    return %c0_i32, %c0_i32_0, %c0_i32_1 : i32, i32, i32
  }
  func.func @transform_6(%arg0: i32) -> (i32, i32) {
    %c0_i32 = arith.constant 0 : i32
    %c0_i32_0 = arith.constant 0 : i32
    %c0_i32_1 = arith.constant 0 : i32
    return %c0_i32, %c0_i32_0 : i32, i32
  }
  func.func @transform_7(%arg0: i32) -> (i32, i32, i32) {
    %c0_i32 = arith.constant 0 : i32
    %c0_i32_0 = arith.constant 0 : i32
    %c0_i32_1 = arith.constant 0 : i32
    %c0_i32_2 = arith.constant 0 : i32
    return %c0_i32, %c0_i32_0, %c0_i32_1 : i32, i32, i32
  }
  func.func @transform_8(%arg0: i32) -> (i32, i32) {
    %c0_i32 = arith.constant 0 : i32
    %c0_i32_0 = arith.constant 0 : i32
    %c0_i32_1 = arith.constant 0 : i32
    return %c0_i32, %c0_i32_0 : i32, i32
  }
  func.func @transform_9(%arg0: i32) -> (i32, i32) {
    %c0_i32 = arith.constant 0 : i32
    %c0_i32_0 = arith.constant 0 : i32
    return %arg0, %c0_i32 : i32, i32
  }
}

</mosaic_0001>

<bundles_post_ra>
// kernel: model_forward.1
= control target key start
LH: loop header
LB: loop body
LE: loop exit
PB: predicated region body
PF: predicated region fallthrough
CT: control target
= control target key end

     0   :  { %vm119_vm0 = vcmask 523264   ;;  %s15828_s0 = inlined_call_operand.vmem [shape: f32[2,15,17,64], index: 0, kind: input, shape index: {}]   ;;  %s15829_s1 = inlined_call_operand.vmem [shape: f32[4,64,32], index: 1, kind: input, shape index: {}]   ;;  %s15830_s2 = inlined_call_operand.vmem [shape: f32[1,32], index: 2, kind: input, shape index: {}]   ;;  %s15831_s3 = inlined_call_operand.vmem [shape: f32[16,32,64], index: 3, kind: input, shape index: {}]   ;;  %s15832_s4 = inlined_call_operand.vmem [shape: f32[1,64], index: 4, kind: input, shape index: {}]   ;;  %s15833_s5 = inlined_call_operand.vmem [shape: f32[9,64,64], index: 5, kind: input, shape index: {}]   ;;  %s15834_s6 = inlined_call_operand.vmem [shape: f32[1,64], index: 6, kind: input, shape index: {}]   ;;  %s15835_s7 = inlined_call_operand.vmem [shape: f32[16,64,8], index: 7, kind: input, shape index: {}]   ;;  %s15836_s8 = inlined_call_operand.vmem [shape: f32[1,8], index: 8, kind: input, shape index: {}]   ;;  %s15837_s9 = inlined_call_operand.hbm [shape: f32[2,8], index: 9, kind: output, shape index: {}]  }
   0x1   :  { %v8970_v0 = vld [vmem:[%s15829_s1 + $0x40] sm:$0xff]  ;;  %v8971_v1 = vld [vmem:[%s15829_s1 + $0x48] sm:$0xff]  ;;  %v8972_v2 = vld [vmem:[%s15829_s1 + $0x50] sm:$0xff] }
   0x2   :  { %v12030_v3 = vpack.c.bf16 %v8971_v1, %v8970_v0  ;;  %v8973_v4 = vld [vmem:[%s15829_s1 + $0x58] sm:$0xff]  ;;  %v8974_v6 = vld [vmem:[%s15829_s1 + $0x60] sm:$0xff]  ;;  %v8975_v7 = vld [vmem:[%s15829_s1 + $0x68] sm:$0xff] }
   0x3   :  { %v12034_v5 = vpack.c.bf16 %v8973_v4, %v8972_v2  ;;  %v209_v8 = vld [vmem:[%s15828_s0 + $0x1] sm:$0xff]  ;;  %v12038_v9 = vpack.c.bf16 %v8975_v7, %v8974_v6  ;;  %v8976_v10 = vld [vmem:[%s15829_s1 + $0x70] sm:$0xff]  ;;  %v8977_v11 = vld [vmem:[%s15829_s1 + $0x78] sm:$0xff] }
   0x4   :  { %12031 = vmatprep.subr.bf16.mxu0 %v12030_v3  ;;  %10674 = vmatprep.mubr.msk.f32.mxu0 %vm119_vm0, %v209_v8  ;;  %v12042_v12 = vpack.c.bf16 %v8977_v11, %v8976_v10  ;;  %v201_v13 = vld [vmem:[%s15829_s1] sm:$0xff]  ;;  %v202_v14 = vld [vmem:[%s15829_s1 + $0x8] sm:$0xff]  ;;  %v203_v16 = vld [vmem:[%s15829_s1 + $0x10] sm:$0xff] }
   0x5   :  { %12033 = vmatpush3.bf16.msra.mxu0 %v12030_v3  ;;  %v12046_v15 = vpack.c.bf16 %v202_v14, %v201_v13  ;;  %v204_v17 = vld [vmem:[%s15829_s1 + $0x18] sm:$0xff]  ;;  %v210_v18 = vld [vmem:[%s15828_s0 + $0x9] sm:$0xff]  ;;  %v205_v21 = vld [vmem:[%s15829_s1 + $0x20] sm:$0xff] }
   0x6   :  { %12035 = vmatprep.subr.bf16.mxu0 %v12034_v5  ;;  %v13098_v19 = vld [vmem:[%s15828_s0 + $0x19] sm:$0xff]  ;;  %v12050_v20 = vpack.c.bf16 %v204_v17, %v203_v16  ;;  %v206_v22 = vld [vmem:[%s15829_s1 + $0x28] sm:$0xff]  ;;  %v13117_v24 = vld [vmem:[%s15828_s0 + $0x31] sm:$0xff] }
   0x7   :  { %v13112_v23 = vld [vmem:[%s15828_s0 + $0x21] sm:$0xff]  ;;  %v12054_v25 = vpack.c.bf16 %v206_v22, %v205_v21  ;;  %v207_v26 = vld [vmem:[%s15829_s1 + $0x30] sm:$0xff]  ;;  %v208_v27 = vld [vmem:[%s15829_s1 + $0x38] sm:$0xff] }
   0x8   :  { %v13132_v28 = vld [vmem:[%s15828_s0 + $0x39] sm:$0xff]  ;;  %v13137_v29 = vld [vmem:[%s15828_s0 + $0x49] sm:$0xff]  ;;  %v12058_v30 = vpack.c.bf16 %v208_v27, %v207_v26  ;;  %v13152_v33 = vld [vmem:[%s15828_s0 + $0x51] sm:$0xff] }
   0x9   :  { %12037 = vmatpush3.bf16.msra.mxu0 %v12034_v5  ;;  %v9146_v31 = vld [vmem:[%s15829_s1 + $0x80] sm:$0xff]  ;;  %v9147_v32 = vld [vmem:[%s15829_s1 + $0x88] sm:$0xff]  ;;  %15885 = vst [vmem:[#allocation8_spill] sm:$0xff] %v13152_v33 }
   0xa   :  { %12039 = vmatprep.subr.bf16.mxu0 %v12038_v9  ;;  %v13157_v34 = vld [vmem:[%s15828_s0 + $0x61] sm:$0xff]  ;;  %v13159_v35 = vpack.c.bf16 %v9147_v32, %v9146_v31 }
   0xb   :  { %15886 = vst [vmem:[#allocation9_spill] sm:$0xff] %v13157_v34 }
   0xd   :  { %12041 = vmatpush3.bf16.msra.mxu0 %v12038_v9 }
   0xe   :  { %12043 = vmatprep.subr.bf16.mxu0 %v12042_v12 }
  0x11   :  { %12045 = vmatpush3.bf16.msra.mxu0 %v12042_v12 }
  0x12   :  { %12047 = vmatprep.subr.bf16.mxu0 %v12046_v15 }
  0x14   :  { %10675 = vmatmul.mubr.msk.f32.vlgmr.msra.gmra.mrb[0].mxu0 %vm119_vm0, %v210_v18 }
  0x15   :  { %12049 = vmatpush3.bf16.msra.mxu0 %v12046_v15  ;;  %10677 = vmatprep.mubr.msk.f32.mxu0 %vm119_vm0, %v13098_v19 }
  0x16   :  { %12051 = vmatprep.subr.bf16.mxu0 %v12050_v20 }
  0x18   :  { %10678 = vmatmul.mubr.msk.f32.gmra.mrb[2].mxu0 %vm119_vm0, %v13112_v23 }
  0x19   :  { %10680 = vmatprep.mubr.msk.f32.mxu0 %vm119_vm0, %v13117_v24  ;;  %12053 = vmatpush3.bf16.msra.mxu0 %v12050_v20 }
  0x1a   :  { %12055 = vmatprep.subr.bf16.mxu0 %v12054_v25 }
  0x1c   :  { %10681 = vmatmul.mubr.msk.f32.gmra.mrb[4].mxu0 %vm119_vm0, %v13132_v28 }
  0x1d   :  { %10683 = vmatprep.mubr.msk.f32.mxu0 %vm119_vm0, %v13137_v29  ;;  %12057 = vmatpush3.bf16.msra.mxu0 %v12054_v25 }
  0x1e   :  { %12059 = vmatprep.subr.bf16.mxu0 %v12058_v30 }
  0x1f   :  { %14 = vsyncpa [#allocation6], 0  ;;  %v13168_v36 = vld [vmem:[%s15828_s0 + $0x69] sm:$0xff]  ;;  %v13173_v37 = vld [vmem:[%s15828_s0 + $0x79] sm:$0xff]  ;;  %vm33_vm1 = vcmask 261120   ;;  %vm36_vm2 = vcmask 254976  }
  0x20   :  { %10684 = vmatmul.mubr.msk.f32.gmra.mrb[6].mxu0 %vm119_vm0, %v13152_v33  ;;  %15887 = vst [vmem:[#allocation10_spill] sm:$0xff] %v13168_v36  ;;  %15888 = vst [vmem:[#allocation11_spill] sm:$0xff] %v13173_v37  ;;  %v13183_v38 = vld [vmem:[%s15828_s0 + $0x81] sm:$0xff]  ;;  %v13188_v39 = vld [vmem:[%s15828_s0 + $0x91] sm:$0xff]  ;;  %vm121_vm3 = vcmask 517120   ;;  %vm13000_vm4 = vmmov 0  }
  0x21   :  { %10686 = vmatprep.mubr.msk.f32.mxu0 %vm119_vm0, %v13157_v34  ;;  %12061 = vmatpush3.bf16.msra.mxu0 %v12058_v30  ;;  %15889 = vst [vmem:[#allocation12_spill] sm:$0xff] %v13183_v38  ;;  %15890 = vst [vmem:[#allocation13_spill] sm:$0xff] %v13188_v39  ;;  %v13197_v40 = vld [vmem:[%s15828_s0 + $0x99] sm:$0xff]  ;;  %v13202_v41 = vld [vmem:[%s15828_s0 + $0xa9] sm:$0xff]  ;;  %vm7419_vm5 = vcmask 1041409   ;;  %s13001_s24 = smov [#allocation5]  }
  0x22   :  { %12063 = vmatprep.subr.bf16.mxu0 %v13159_v35  ;;  %15891 = vst [vmem:[#allocation14_spill] sm:$0xff] %v13197_v40  ;;  %15892 = vst [vmem:[#allocation15_spill] sm:$0xff] %v13202_v41  ;;  %v13211_v42 = vld [vmem:[%s15828_s0 + $0xb1] sm:$0xff]  ;;  %v13216_v43 = vld [vmem:[%s15828_s0 + $0xc1] sm:$0xff]  ;;  %s8821_s25 = sshll.u32 %s13001_s24, 4  ;;  %vm8813_vm6 = vcmask 58368   ;;  %s8822_s25 = int_to_ptr.vmem [resolvable:$true] %s8821_s25 }
  0x23   :  { %15893 = vst [vmem:[#allocation16_spill] sm:$0xff] %v13211_v42  ;;  %15894 = vst [vmem:[#allocation17_spill] sm:$0xff] %v13216_v43  ;;  %v13225_v44 = vld [vmem:[%s15828_s0 + $0xc9] sm:$0xff]  ;;  %v13230_v45 = vld [vmem:[%s15828_s0 + $0xd9] sm:$0xff]  ;;  %s12974_s26 = scalar_lea.vmem %s8822_s25, 32  ;;  %p12979_p1 = scmp.lt.s32.totalorder %s8822_s25, %s8822_s25 }
  0x24   :  { %10687 = vmatmul.mubr.msk.f32.gmra.mrb[8].mxu0 %vm119_vm0, %v13168_v36  ;;  %15895 = vst [vmem:[#allocation18_spill] sm:$0xff] %v13225_v44  ;;  %15896 = vst [vmem:[#allocation19_spill] sm:$0xff] %v13230_v45  ;;  %v13239_v46 = vld [vmem:[%s15828_s0 + $0xe1] sm:$0xff]  ;;  %v13244_v47 = vld [vmem:[%s15828_s0 + $0xf1] sm:$0xff]  ;;  %p12975_p0 = scmp.ne.s32.totalorder %s8822_s25, %s12974_s26  ;;  %p12980_p2 = scmp.lt.s32.totalorder %s12974_s26, %s12974_s26 }
  0x25   :  { %10689 = vmatprep.mubr.msk.f32.mxu0 %vm119_vm0, %v13173_v37  ;;  %15897 = vst [vmem:[#allocation20_spill] sm:$0xff] %v13239_v46  ;;  %15898 = vst [vmem:[#allocation21_spill] sm:$0xff] %v13244_v47  ;;  %v13253_v48 = vld [vmem:[%s15828_s0 + $0xf9] sm:$0xff]  ;;  %v13258_v49 = vld [vmem:[%s15828_s0 + $0x109] sm:$0xff] }
  0x26   :  { %15899 = vst [vmem:[#allocation22_spill] sm:$0xff] %v13253_v48  ;;  %15900 = vst [vmem:[#allocation23_spill] sm:$0xff] %v13258_v49  ;;  %v13267_v50 = vld [vmem:[%s15828_s0 + $0x111] sm:$0xff]  ;;  %v13272_v51 = vld [vmem:[%s15828_s0 + $0x121] sm:$0xff]  ;;  %p12981_p3 = por %p12980_p2, %p12979_p1 }
  0x27   :  { %15901 = vst [vmem:[#allocation24_spill] sm:$0xff] %v13267_v50  ;;  %15902 = vst [vmem:[#allocation25_spill] sm:$0xff] %v13272_v51  ;;  %v13281_v52 = vld [vmem:[%s15828_s0 + $0x129] sm:$0xff]  ;;  %v13286_v53 = vld [vmem:[%s15828_s0 + $0x139] sm:$0xff] }
  0x28   :  { %10690 = vmatmul.mubr.msk.f32.gmra.mrb[10].mxu0 %vm119_vm0, %v13183_v38  ;;  %15903 = vst [vmem:[#allocation26_spill] sm:$0xff] %v13281_v52  ;;  %15904 = vst [vmem:[#allocation27_spill] sm:$0xff] %v13286_v53  ;;  %v13295_v54 = vld [vmem:[%s15828_s0 + $0x141] sm:$0xff]  ;;  %v237_v55 = vld [vmem:[%s15828_s0 + $0x169] sm:$0xff]  ;;  %p12982_p4 = pnand %p12981_p3, %p12975_p0 }
  0x29   :  { %10692 = vmatprep.mubr.msk.f32.mxu0 %vm119_vm0, %v13188_v39  ;;  %15905 = vst [vmem:[#allocation28_spill] sm:$0xff] %v13295_v54  ;;  %v238_v56 = vld [vmem:[%s15828_s0 + $0x171] sm:$0xff]  ;;  %v13309_v57 = vld [vmem:[%s15828_s0 + $0x181] sm:$0xff]  ;;  %v13317_v58 = vld [vmem:[%s15828_s0 + $0x189] sm:$0xff] }
  0x2a   :  { %15906 = vst [vmem:[#allocation29_spill] sm:$0xff] %v13309_v57  ;;  %15907 = vst [vmem:[#allocation30_spill] sm:$0xff] %v13317_v58  ;;  %v13322_v59 = vld [vmem:[%s15828_s0 + $0x199] sm:$0xff]  ;;  %v13331_v60 = vld [vmem:[%s15828_s0 + $0x1a1] sm:$0xff] }
  0x2b   :  { %15908 = vst [vmem:[#allocation31_spill] sm:$0xff] %v13322_v59  ;;  %15909 = vst [vmem:[#allocation32_spill] sm:$0xff] %v13331_v60  ;;  %v13336_v61 = vld [vmem:[%s15828_s0 + $0x1b1] sm:$0xff]  ;;  %v13345_v62 = vld [vmem:[%s15828_s0 + $0x1b9] sm:$0xff] }
  0x2c   :  { %10693 = vmatmul.mubr.msk.f32.gmra.mrb[12].mxu0 %vm119_vm0, %v13197_v40  ;;  %15910 = vst [vmem:[#allocation33_spill] sm:$0xff] %v13336_v61  ;;  %15911 = vst [vmem:[#allocation34_spill] sm:$0xff] %v13345_v62  ;;  %v13350_v63 = vld [vmem:[%s15828_s0 + $0x1c9] sm:$0xff]  ;;  %v13359_v0 = vld [vmem:[%s15828_s0 + $0x1d1] sm:$0xff] }
  0x2d   :  { %10695 = vmatprep.mubr.msk.f32.mxu0 %vm119_vm0, %v13202_v41  ;;  %15912 = vst [vmem:[#allocation35_spill] sm:$0xff] %v13350_v63  ;;  %15913 = vst [vmem:[#allocation36_spill] sm:$0xff] %v13359_v0  ;;  %v13364_v1 = vld [vmem:[%s15828_s0 + $0x1e1] sm:$0xff]  ;;  %v13373_v2 = vld [vmem:[%s15828_s0 + $0x1e9] sm:$0xff] }
  0x2e   :  { %15914 = vst [vmem:[#allocation37_spill] sm:$0xff] %v13364_v1  ;;  %15915 = vst [vmem:[#allocation38_spill] sm:$0xff] %v13373_v2  ;;  %v13378_v3 = vld [vmem:[%s15828_s0 + $0x1f9] sm:$0xff]  ;;  %v13387_v4 = vld [vmem:[%s15828_s0 + $0x201] sm:$0xff] }
  0x2f   :  { %15916 = vst [vmem:[#allocation39_spill] sm:$0xff] %v13378_v3  ;;  %15917 = vst [vmem:[#allocation40_spill] sm:$0xff] %v13387_v4  ;;  %v13392_v5 = vld [vmem:[%s15828_s0 + $0x211] sm:$0xff]  ;;  %v13401_v6 = vld [vmem:[%s15828_s0 + $0x219] sm:$0xff] }
  0x30   :  { %10696 = vmatmul.mubr.msk.f32.gmra.mrb[14].mxu0 %vm119_vm0, %v13211_v42  ;;  %15918 = vst [vmem:[#allocation41_spill] sm:$0xff] %v13392_v5  ;;  %15919 = vst [vmem:[#allocation42_spill] sm:$0xff] %v13401_v6  ;;  %v13406_v7 = vld [vmem:[%s15828_s0 + $0x229] sm:$0xff]  ;;  %v13415_v8 = vld [vmem:[%s15828_s0 + $0x231] sm:$0xff] }
  0x31   :  { %10698 = vmatprep.mubr.msk.f32.mxu0 %vm119_vm0, %v13216_v43  ;;  %15920 = vst [vmem:[#allocation43_spill] sm:$0xff] %v13406_v7  ;;  %15921 = vst [vmem:[#allocation44_spill] sm:$0xff] %v13415_v8  ;;  %v13420_v9 = vld [vmem:[%s15828_s0 + $0x241] sm:$0xff]  ;;  %v13429_v10 = vld [vmem:[%s15828_s0 + $0x249] sm:$0xff] }
  0x32   :  { %15922 = vst [vmem:[#allocation45_spill] sm:$0xff] %v13420_v9  ;;  %15923 = vst [vmem:[#allocation46_spill] sm:$0xff] %v13429_v10  ;;  %v13434_v11 = vld [vmem:[%s15828_s0 + $0x259] sm:$0xff]  ;;  %v13443_v12 = vld [vmem:[%s15828_s0 + $0x261] sm:$0xff] }
  0x33   :  { %15924 = vst [vmem:[#allocation47_spill] sm:$0xff] %v13434_v11  ;;  %15925 = vst [vmem:[#allocation48_spill] sm:$0xff] %v13443_v12  ;;  %v13448_v13 = vld [vmem:[%s15828_s0 + $0x271] sm:$0xff]  ;;  %v13457_v14 = vld [vmem:[%s15828_s0 + $0x279] sm:$0xff] }
  0x34   :  { %10699 = vmatmul.mubr.msk.f32.gmra.mrb[16].mxu0 %vm119_vm0, %v13225_v44  ;;  %15926 = vst [vmem:[#allocation49_spill] sm:$0xff] %v13448_v13  ;;  %15927 = vst [vmem:[#allocation50_spill] sm:$0xff] %v13457_v14  ;;  %v13462_v15 = vld [vmem:[%s15828_s0 + $0x289] sm:$0xff]  ;;  %v13471_v16 = vld [vmem:[%s15828_s0 + $0x291] sm:$0xff] }
  0x35   :  { %10701 = vmatprep.mubr.msk.f32.mxu0 %vm119_vm0, %v13230_v45  ;;  %15928 = vst [vmem:[#allocation51_spill] sm:$0xff] %v13462_v15  ;;  %15929 = vst [vmem:[#allocation52_spill] sm:$0xff] %v13471_v16  ;;  %v13476_v17 = vld [vmem:[%s15828_s0 + $0x2a1] sm:$0xff]  ;;  %v13485_v18 = vld [vmem:[%s15828_s0 + $0x2a9] sm:$0xff] }
  0x36   :  { %15930 = vst [vmem:[#allocation53_spill] sm:$0xff] %v13476_v17  ;;  %15931 = vst [vmem:[#allocation54_spill] sm:$0xff] %v13485_v18  ;;  %v145_v20 = vld [vmem:[%s15828_s0] sm:$0xff]  ;;  %v9148_v21 = vld [vmem:[%s15829_s1 + $0x90] sm:$0xff] }
  0x37   :  { %v9149_v22 = vld [vmem:[%s15829_s1 + $0x98] sm:$0xff]  ;;  %v146_v25 = vld [vmem:[%s15828_s0 + $0x8] sm:$0xff]  ;;  %v9150_v30 = vld [vmem:[%s15829_s1 + $0xa0] sm:$0xff] }
  0x38   :  { %10702 = vmatmul.mubr.msk.f32.gmra.mrb[18].mxu0 %vm119_vm0, %v13239_v46  ;;  %v13505_v26 = vld [vmem:[%s15828_s0 + $0x18] sm:$0xff]  ;;  %v12066_v27 = vpack.c.bf16 %v9149_v22, %v9148_v21  ;;  %v9151_v31 = vld [vmem:[%s15829_s1 + $0xa8] sm:$0xff]  ;;  %v13520_v32 = vld [vmem:[%s15828_s0 + $0x20] sm:$0xff] }
  0x39   :  { %10704 = vmatprep.mubr.msk.f32.mxu0 %vm119_vm0, %v13244_v47  ;;  %v13540_v21 = vld [vmem:[%s15828_s0 + $0x38] sm:$0xff]  ;;  %v13545_v22 = vld [vmem:[%s15828_s0 + $0x48] sm:$0xff]  ;;  %v13851_v46 = vld [vmem:[%s15828_s0 + $0x260] sm:$0xff] }
  0x3a   :  { %v13842_v47 = vld [vmem:[%s15828_s0 + $0x258] sm:$0xff]  ;;  %v13856_v45 = vld [vmem:[%s15828_s0 + $0x270] sm:$0xff]  ;;  %v13870_v43 = vld [vmem:[%s15828_s0 + $0x288] sm:$0xff] }
  0x3b   :  { %v13865_v44 = vld [vmem:[%s15828_s0 + $0x278] sm:$0xff]  ;;  %v13879_v42 = vld [vmem:[%s15828_s0 + $0x290] sm:$0xff]  ;;  %v13884_v41 = vld [vmem:[%s15828_s0 + $0x2a0] sm:$0xff] }
  0x3c   :  { %10705 = vmatmul.mubr.msk.f32.gmra.mrb[20].mxu0 %vm119_vm0, %v13253_v48  ;;  %v13837_v48 = vld [vmem:[%s15828_s0 + $0x248] sm:$0xff]  ;;  %v9268_v39 = vld [vmem:[%s15829_s1 + $0xd0] sm:$0xff]  ;;  %v9269_v38 = vld [vmem:[%s15829_s1 + $0xd8] sm:$0xff] }
  0x3d   :  { %10707 = vmatprep.mubr.msk.f32.mxu0 %vm119_vm0, %v13258_v49  ;;  %v13828_v49 = vld [vmem:[%s15828_s0 + $0x240] sm:$0xff]  ;;  %v13893_v40 = vld [vmem:[%s15828_s0 + $0x2a8] sm:$0xff]  ;;  %v12082_v37 = vpack.c.bf16 %v9269_v38, %v9268_v39  ;;  %v9272_v38 = vld [vmem:[%s15829_s1 + $0xf0] sm:$0xff] }
  0x3e   :  { %v9270_v36 = vld [vmem:[%s15829_s1 + $0xe0] sm:$0xff]  ;;  %v9271_v34 = vld [vmem:[%s15829_s1 + $0xe8] sm:$0xff]  ;;  %v9273_v39 = vld [vmem:[%s15829_s1 + $0xf8] sm:$0xff] }
  0x3f   :  { %v12086_v33 = vpack.c.bf16 %v9271_v34, %v9270_v36  ;;  %v9117_v34 = vld [vmem:[%s15828_s0 + $0x158] sm:$0xff]  ;;  %v12998_v36 = vmov 0.0  }
  0x40   :  { %10708 = vmatmul.mubr.msk.f32.gmra.mrb[22].mxu0 %vm119_vm0, %v13267_v50  ;;  %v13823_v50 = vld [vmem:[%s15828_s0 + $0x230] sm:$0xff]  ;;  %35 = vst.msk [vmem:[#allocation2 + $0x8] sm:$0xff] %vm33_vm1, %v12998_v36  ;;  %34 = vst.msk [vmem:[#allocation2] sm:$0xff] %vm33_vm1, %v12998_v36 }
  0x41   :  { %10710 = vmatprep.mubr.msk.f32.mxu0 %vm119_vm0, %v13272_v51  ;;  %v13814_v51 = vld [vmem:[%s15828_s0 + $0x228] sm:$0xff]  ;;  %38 = vst.msk [vmem:[#allocation2 + $0x18] sm:$0xff] %vm33_vm1, %v12998_v36  ;;  %39 = vst.msk [vmem:[#allocation2 + $0x20] sm:$0xff] %vm33_vm1, %v12998_v36 }
  0x42   :  { %41 = vst.msk [vmem:[#allocation2 + $0x30] sm:$0xff] %vm33_vm1, %v12998_v36  ;;  %42 = vst.msk [vmem:[#allocation2 + $0x38] sm:$0xff] %vm33_vm1, %v12998_v36 }
  0x43   :  { %44 = vst.msk [vmem:[#allocation2 + $0x48] sm:$0xff] %vm33_vm1, %v12998_v36  ;;  %45 = vst.msk [vmem:[#allocation2 + $0x50] sm:$0xff] %vm33_vm1, %v12998_v36 }
  0x44   :  { %10711 = vmatmul.mubr.msk.f32.gmra.mrb[24].mxu0 %vm119_vm0, %v13281_v52  ;;  %v13809_v52 = vld [vmem:[%s15828_s0 + $0x218] sm:$0xff]  ;;  %47 = vst.msk [vmem:[#allocation2 + $0x60] sm:$0xff] %vm33_vm1, %v12998_v36  ;;  %48 = vst.msk [vmem:[#allocation2 + $0x68] sm:$0xff] %vm33_vm1, %v12998_v36 }
  0x45   :  { %10713 = vmatprep.mubr.msk.f32.mxu0 %vm119_vm0, %v13286_v53  ;;  %v13800_v53 = vld [vmem:[%s15828_s0 + $0x210] sm:$0xff]  ;;  %50 = vst.msk [vmem:[#allocation2 + $0x78] sm:$0xff] %vm33_vm1, %v12998_v36  ;;  %51 = vst.msk [vmem:[#allocation2 + $0x80] sm:$0xff] %vm33_vm1, %v12998_v36 }
  0x46   :  { %53 = vst.msk [vmem:[#allocation2 + $0x90] sm:$0xff] %vm33_vm1, %v12998_v36  ;;  %54 = vst.msk [vmem:[#allocation2 + $0x98] sm:$0xff] %vm33_vm1, %v12998_v36 }
  0x47   :  { %56 = vst.msk [vmem:[#allocation2 + $0xa8] sm:$0xff] %vm33_vm1, %v12998_v36  ;;  %57 = vst.msk [vmem:[#allocation2 + $0xb0] sm:$0xff] %vm33_vm1, %v12998_v36 }
  0x48   :  { %10714 = vmatmul.mubr.msk.f32.gmra.mrb[26].mxu0 %vm119_vm0, %v13295_v54  ;;  %v13795_v54 = vld [vmem:[%s15828_s0 + $0x200] sm:$0xff]  ;;  %59 = vst.msk [vmem:[#allocation2 + $0xc0] sm:$0xff] %vm33_vm1, %v12998_v36  ;;  %60 = vst.msk [vmem:[#allocation2 + $0xc8] sm:$0xff] %vm33_vm1, %v12998_v36 }
  0x49   :  { %10716 = vmatprep.mubr.msk.f32.mxu0 %vm119_vm0, %v237_v55  ;;  %v13525_v55 = vld [vmem:[%s15828_s0 + $0x30] sm:$0xff]  ;;  %62 = vst.msk [vmem:[#allocation2 + $0xd8] sm:$0xff] %vm33_vm1, %v12998_v36  ;;  %63 = vst.msk [vmem:[#allocation2 + $0xe0] sm:$0xff] %vm33_vm1, %v12998_v36 }
  0x4a   :  { %65 = vst.msk [vmem:[#allocation2 + $0xf0] sm:$0xff] %vm33_vm1, %v12998_v36  ;;  %66 = vst.msk [vmem:[#allocation2 + $0xf8] sm:$0xff] %vm33_vm1, %v12998_v36 }
  0x4b   :  { %68 = vst.msk [vmem:[#allocation2 + $0x108] sm:$0xff] %vm33_vm1, %v12998_v36  ;;  %69 = vst.msk [vmem:[#allocation2 + $0x110] sm:$0xff] %vm33_vm1, %v12998_v36 }
  0x4c   :  { %10717 = vmatmul.mubr.msk.f32.gmra.mrb[28].mxu0 %vm119_vm0, %v238_v56  ;;  %v12070_v56 = vpack.c.bf16 %v9151_v31, %v9150_v30  ;;  %v9266_v30 = vld [vmem:[%s15829_s1 + $0xc0] sm:$0xff]  ;;  %v9267_v31 = vld [vmem:[%s15829_s1 + $0xc8] sm:$0xff]  ;;  %71 = vst.msk [vmem:[#allocation2 + $0x120] sm:$0xff] %vm33_vm1, %v12998_v36  ;;  %72 = vst.msk [vmem:[#allocation2 + $0x128] sm:$0xff] %vm33_vm1, %v12998_v36 }
  0x4d   :  { %10719 = vmatprep.mubr.msk.f32.mxu0 %vm119_vm0, %v13309_v57  ;;  %v13786_v57 = vld [vmem:[%s15828_s0 + $0x1f8] sm:$0xff]  ;;  %74 = vst.msk [vmem:[#allocation2 + $0x138] sm:$0xff] %vm33_vm1, %v12998_v36  ;;  %75 = vst.msk [vmem:[#allocation2 + $0x140] sm:$0xff] %vm33_vm1, %v12998_v36 }
  0x4e   :  { %77 = vst.msk [vmem:[#allocation2 + $0x150] sm:$0xff] %vm33_vm1, %v12998_v36  ;;  %78 = vst.msk [vmem:[#allocation2 + $0x158] sm:$0xff] %vm33_vm1, %v12998_v36 }
  0x4f   :  { %80 = vst.msk [vmem:[#allocation2 + $0x168] sm:$0xff] %vm33_vm1, %v12998_v36  ;;  %81 = vst.msk [vmem:[#allocation2 + $0x170] sm:$0xff] %vm33_vm1, %v12998_v36 }
  0x50   :  { %10720 = vmatmul.mubr.msk.f32.gmra.mrb[30].mxu0 %vm119_vm0, %v13317_v58  ;;  %v13781_v58 = vld [vmem:[%s15828_s0 + $0x1e8] sm:$0xff]  ;;  %83 = vst.msk [vmem:[#allocation2 + $0x180] sm:$0xff] %vm33_vm1, %v12998_v36  ;;  %84 = vst.msk [vmem:[#allocation2 + $0x188] sm:$0xff] %vm33_vm1, %v12998_v36 }
  0x51   :  { %10722 = vmatprep.mubr.msk.f32.mxu0 %vm119_vm0, %v13322_v59  ;;  %v13772_v59 = vld [vmem:[%s15828_s0 + $0x1e0] sm:$0xff]  ;;  %86 = vst.msk [vmem:[#allocation2 + $0x198] sm:$0xff] %vm33_vm1, %v12998_v36  ;;  %87 = vst.msk [vmem:[#allocation2 + $0x1a0] sm:$0xff] %vm33_vm1, %v12998_v36 }
  0x52   :  { %89 = vst.msk [vmem:[#allocation2 + $0x1b0] sm:$0xff] %vm33_vm1, %v12998_v36  ;;  %90 = vst.msk [vmem:[#allocation2 + $0x1b8] sm:$0xff] %vm33_vm1, %v12998_v36 }
  0x53   :  { %92 = vst.msk [vmem:[#allocation2 + $0x1c8] sm:$0xff] %vm33_vm1, %v12998_v36  ;;  %93 = vst.msk [vmem:[#allocation2 + $0x1d0] sm:$0xff] %vm33_vm1, %v12998_v36 }
  0x54   :  { %10723 = vmatmul.mubr.msk.f32.gmra.mrb[32].mxu0 %vm119_vm0, %v13331_v60  ;;  %v13767_v60 = vld [vmem:[%s15828_s0 + $0x1d0] sm:$0xff]  ;;  %95 = vst.msk [vmem:[#allocation2 + $0x1e0] sm:$0xff] %vm33_vm1, %v12998_v36  ;;  %96 = vst.msk [vmem:[#allocation2 + $0x1e8] sm:$0xff] %vm33_vm1, %v12998_v36 }
  0x55   :  { %10725 = vmatprep.mubr.msk.f32.mxu0 %vm119_vm0, %v13336_v61  ;;  %v13758_v61 = vld [vmem:[%s15828_s0 + $0x1c8] sm:$0xff]  ;;  %98 = vst.msk [vmem:[#allocation2 + $0x1f8] sm:$0xff] %vm33_vm1, %v12998_v36  ;;  %99 = vst.msk [vmem:[#allocation2 + $0x200] sm:$0xff] %vm33_vm1, %v12998_v36 }
  0x56   :  { %101 = vst.msk [vmem:[#allocation2 + $0x210] sm:$0xff] %vm33_vm1, %v12998_v36  ;;  %102 = vst.msk [vmem:[#allocation2 + $0x218] sm:$0xff] %vm33_vm1, %v12998_v36 }
  0x57   :  { %104 = vst.msk [vmem:[#allocation2 + $0x228] sm:$0xff] %vm33_vm1, %v12998_v36  ;;  %105 = vst.msk [vmem:[#allocation2 + $0x230] sm:$0xff] %vm33_vm1, %v12998_v36 }
  0x58   :  { %10726 = vmatmul.mubr.msk.f32.gmra.mrb[34].mxu0 %vm119_vm0, %v13345_v62  ;;  %v13753_v62 = vld [vmem:[%s15828_s0 + $0x1b8] sm:$0xff]  ;;  %107 = vst.msk [vmem:[#allocation2 + $0x240] sm:$0xff] %vm33_vm1, %v12998_v36  ;;  %108 = vst.msk [vmem:[#allocation2 + $0x248] sm:$0xff] %vm33_vm1, %v12998_v36 }
  0x59   :  { %10728 = vmatprep.mubr.msk.f32.mxu0 %vm119_vm0, %v13350_v63  ;;  %v13744_v63 = vld [vmem:[%s15828_s0 + $0x1b0] sm:$0xff]  ;;  %110 = vst.msk [vmem:[#allocation2 + $0x258] sm:$0xff] %vm33_vm1, %v12998_v36  ;;  %111 = vst.msk [vmem:[#allocation2 + $0x260] sm:$0xff] %vm33_vm1, %v12998_v36 }
  0x5a   :  { %113 = vst.msk [vmem:[#allocation2 + $0x270] sm:$0xff] %vm33_vm1, %v12998_v36  ;;  %114 = vst.msk [vmem:[#allocation2 + $0x278] sm:$0xff] %vm33_vm1, %v12998_v36 }
  0x5b   :  { %116 = vst.msk [vmem:[#allocation2 + $0x288] sm:$0xff] %vm33_vm1, %v12998_v36  ;;  %117 = vst.msk [vmem:[#allocation2 + $0x290] sm:$0xff] %vm33_vm1, %v12998_v36 }
  0x5c   :  { %10729 = vmatmul.mubr.msk.f32.gmra.mrb[36].mxu0 %vm119_vm0, %v13359_v0  ;;  %v13725_v0 = vld [vmem:[%s15828_s0 + $0x188] sm:$0xff]  ;;  %120 = vst.msk [vmem:[#allocation3] sm:$0xff] %vm119_vm0, %v12998_v36  ;;  %123 = vst.msk [vmem:[#allocation3 + $0x10] sm:$0xff] %vm119_vm0, %v12998_v36 }
  0x5d   :  { %10731 = vmatprep.mubr.msk.f32.mxu0 %vm119_vm0, %v13364_v1  ;;  %v13717_v1 = vld [vmem:[%s15828_s0 + $0x180] sm:$0xff]  ;;  %125 = vst.msk [vmem:[#allocation3 + $0x20] sm:$0xff] %vm119_vm0, %v12998_v36  ;;  %127 = vst.msk [vmem:[#allocation3 + $0x30] sm:$0xff] %vm119_vm0, %v12998_v36 }
  0x5e   :  { %129 = vst.msk [vmem:[#allocation3 + $0x40] sm:$0xff] %vm119_vm0, %v12998_v36  ;;  %131 = vst.msk [vmem:[#allocation3 + $0x50] sm:$0xff] %vm119_vm0, %v12998_v36 }
  0x5f   :  { %133 = vst.msk [vmem:[#allocation3 + $0x60] sm:$0xff] %vm119_vm0, %v12998_v36  ;;  %135 = vst.msk [vmem:[#allocation3 + $0x70] sm:$0xff] %vm119_vm0, %v12998_v36 }
  0x60   :  { %10732 = vmatmul.mubr.msk.f32.gmra.mrb[38].mxu0 %vm119_vm0, %v13373_v2  ;;  %v174_v2 = vld [vmem:[%s15828_s0 + $0x170] sm:$0xff]  ;;  %137 = vst.msk [vmem:[#allocation3 + $0x80] sm:$0xff] %vm119_vm0, %v12998_v36  ;;  %139 = vst.msk [vmem:[#allocation3 + $0x90] sm:$0xff] %vm119_vm0, %v12998_v36 }
  0x61   :  { %10734 = vmatprep.mubr.msk.f32.mxu0 %vm119_vm0, %v13378_v3  ;;  %v173_v3 = vld [vmem:[%s15828_s0 + $0x168] sm:$0xff]  ;;  %141 = vst.msk [vmem:[#allocation3 + $0xa0] sm:$0xff] %vm119_vm0, %v12998_v36  ;;  %143 = vst.msk [vmem:[#allocation3 + $0xb0] sm:$0xff] %vm119_vm0, %v12998_v36 }
  0x62   :  { %37 = vst.msk [vmem:[#allocation2 + $0x10] sm:$0x3] %vm36_vm2, %v12998_v36  ;;  %40 = vst.msk [vmem:[#allocation2 + $0x28] sm:$0x3] %vm36_vm2, %v12998_v36 }
  0x63   :  { %43 = vst.msk [vmem:[#allocation2 + $0x40] sm:$0x3] %vm36_vm2, %v12998_v36  ;;  %46 = vst.msk [vmem:[#allocation2 + $0x58] sm:$0x3] %vm36_vm2, %v12998_v36 }
  0x64   :  { %10735 = vmatmul.mubr.msk.f32.gmra.mrb[40].mxu0 %vm119_vm0, %v13387_v4  ;;  %v13703_v4 = vld [vmem:[%s15828_s0 + $0x140] sm:$0xff]  ;;  %49 = vst.msk [vmem:[#allocation2 + $0x70] sm:$0x3] %vm36_vm2, %v12998_v36  ;;  %52 = vst.msk [vmem:[#allocation2 + $0x88] sm:$0x3] %vm36_vm2, %v12998_v36 }
  0x65   :  { %10737 = vmatprep.mubr.msk.f32.mxu0 %vm119_vm0, %v13392_v5  ;;  %v13694_v5 = vld [vmem:[%s15828_s0 + $0x138] sm:$0xff]  ;;  %55 = vst.msk [vmem:[#allocation2 + $0xa0] sm:$0x3] %vm36_vm2, %v12998_v36  ;;  %58 = vst.msk [vmem:[#allocation2 + $0xb8] sm:$0x3] %vm36_vm2, %v12998_v36 }
  0x66   :  { %61 = vst.msk [vmem:[#allocation2 + $0xd0] sm:$0x3] %vm36_vm2, %v12998_v36  ;;  %64 = vst.msk [vmem:[#allocation2 + $0xe8] sm:$0x3] %vm36_vm2, %v12998_v36 }
  0x67   :  { %67 = vst.msk [vmem:[#allocation2 + $0x100] sm:$0x3] %vm36_vm2, %v12998_v36  ;;  %70 = vst.msk [vmem:[#allocation2 + $0x118] sm:$0x3] %vm36_vm2, %v12998_v36 }
  0x68   :  { %10738 = vmatmul.mubr.msk.f32.gmra.mrb[42].mxu0 %vm119_vm0, %v13401_v6  ;;  %v13689_v6 = vld [vmem:[%s15828_s0 + $0x128] sm:$0xff]  ;;  %73 = vst.msk [vmem:[#allocation2 + $0x130] sm:$0x3] %vm36_vm2, %v12998_v36  ;;  %76 = vst.msk [vmem:[#allocation2 + $0x148] sm:$0x3] %vm36_vm2, %v12998_v36 }
  0x69   :  { %10740 = vmatprep.mubr.msk.f32.mxu0 %vm119_vm0, %v13406_v7  ;;  %v13680_v7 = vld [vmem:[%s15828_s0 + $0x120] sm:$0xff]  ;;  %79 = vst.msk [vmem:[#allocation2 + $0x160] sm:$0x3] %vm36_vm2, %v12998_v36  ;;  %82 = vst.msk [vmem:[#allocation2 + $0x178] sm:$0x3] %vm36_vm2, %v12998_v36 }
  0x6a   :  { %85 = vst.msk [vmem:[#allocation2 + $0x190] sm:$0x3] %vm36_vm2, %v12998_v36  ;;  %88 = vst.msk [vmem:[#allocation2 + $0x1a8] sm:$0x3] %vm36_vm2, %v12998_v36 }
  0x6b   :  { %91 = vst.msk [vmem:[#allocation2 + $0x1c0] sm:$0x3] %vm36_vm2, %v12998_v36  ;;  %94 = vst.msk [vmem:[#allocation2 + $0x1d8] sm:$0x3] %vm36_vm2, %v12998_v36 }
  0x6c   :  { %10741 = vmatmul.mubr.msk.f32.gmra.mrb[44].mxu0 %vm119_vm0, %v13415_v8  ;;  %v13675_v8 = vld [vmem:[%s15828_s0 + $0x110] sm:$0xff]  ;;  %97 = vst.msk [vmem:[#allocation2 + $0x1f0] sm:$0x3] %vm36_vm2, %v12998_v36  ;;  %100 = vst.msk [vmem:[#allocation2 + $0x208] sm:$0x3] %vm36_vm2, %v12998_v36 }
  0x6d   :  { %10743 = vmatprep.mubr.msk.f32.mxu0 %vm119_vm0, %v13420_v9  ;;  %v13666_v9 = vld [vmem:[%s15828_s0 + $0x108] sm:$0xff]  ;;  %103 = vst.msk [vmem:[#allocation2 + $0x220] sm:$0x3] %vm36_vm2, %v12998_v36  ;;  %106 = vst.msk [vmem:[#allocation2 + $0x238] sm:$0x3] %vm36_vm2, %v12998_v36 }
  0x6e   :  { %109 = vst.msk [vmem:[#allocation2 + $0x250] sm:$0x3] %vm36_vm2, %v12998_v36  ;;  %112 = vst.msk [vmem:[#allocation2 + $0x268] sm:$0x3] %vm36_vm2, %v12998_v36 }
  0x6f   :  { %115 = vst.msk [vmem:[#allocation2 + $0x280] sm:$0x3] %vm36_vm2, %v12998_v36  ;;  %118 = vst.msk [vmem:[#allocation2 + $0x298] sm:$0x3] %vm36_vm2, %v12998_v36 }
  0x70   :  { %10744 = vmatmul.mubr.msk.f32.gmra.mrb[46].mxu0 %vm119_vm0, %v13429_v10  ;;  %v13661_v10 = vld [vmem:[%s15828_s0 + $0xf8] sm:$0xff]  ;;  %122 = vst.msk [vmem:[#allocation3 + $0x8] sm:$0x3] %vm121_vm3, %v12998_v36  ;;  %124 = vst.msk [vmem:[#allocation3 + $0x18] sm:$0x3] %vm121_vm3, %v12998_v36 }
  0x71   :  { %10746 = vmatprep.mubr.msk.f32.mxu0 %vm119_vm0, %v13434_v11  ;;  %v13652_v11 = vld [vmem:[%s15828_s0 + $0xf0] sm:$0xff]  ;;  %126 = vst.msk [vmem:[#allocation3 + $0x28] sm:$0x3] %vm121_vm3, %v12998_v36  ;;  %128 = vst.msk [vmem:[#allocation3 + $0x38] sm:$0x3] %vm121_vm3, %v12998_v36 }
  0x72   :  { %130 = vst.msk [vmem:[#allocation3 + $0x48] sm:$0x3] %vm121_vm3, %v12998_v36  ;;  %132 = vst.msk [vmem:[#allocation3 + $0x58] sm:$0x3] %vm121_vm3, %v12998_v36 }
  0x73   :  { %134 = vst.msk [vmem:[#allocation3 + $0x68] sm:$0x3] %vm121_vm3, %v12998_v36  ;;  %136 = vst.msk [vmem:[#allocation3 + $0x78] sm:$0x3] %vm121_vm3, %v12998_v36 }
  0x74   :  { %10747 = vmatmul.mubr.msk.f32.gmra.mrb[48].mxu0 %vm119_vm0, %v13443_v12  ;;  %v13647_v12 = vld [vmem:[%s15828_s0 + $0xe0] sm:$0xff]  ;;  %138 = vst.msk [vmem:[#allocation3 + $0x88] sm:$0x3] %vm121_vm3, %v12998_v36  ;;  %140 = vst.msk [vmem:[#allocation3 + $0x98] sm:$0x3] %vm121_vm3, %v12998_v36 }
  0x75   :  { %10749 = vmatprep.mubr.msk.f32.mxu0 %vm119_vm0, %v13448_v13  ;;  %v13638_v13 = vld [vmem:[%s15828_s0 + $0xd8] sm:$0xff]  ;;  %142 = vst.msk [vmem:[#allocation3 + $0xa8] sm:$0x3] %vm121_vm3, %v12998_v36  ;;  %144 = vst.msk [vmem:[#allocation3 + $0xb8] sm:$0x3] %vm121_vm3, %v12998_v36 }
  0x78   :  { %10750 = vmatmul.mubr.msk.f32.gmra.mrb[50].mxu0 %vm119_vm0, %v13457_v14  ;;  %v13633_v14 = vld [vmem:[%s15828_s0 + $0xc8] sm:$0xff] }
  0x79   :  { %10752 = vmatprep.mubr.msk.f32.mxu0 %vm119_vm0, %v13462_v15  ;;  %v13624_v15 = vld [vmem:[%s15828_s0 + $0xc0] sm:$0xff] }
  0x7c   :  { %10753 = vmatmul.mubr.msk.f32.gmra.mrb[52].mxu0 %vm119_vm0, %v13471_v16  ;;  %v13619_v16 = vld [vmem:[%s15828_s0 + $0xb0] sm:$0xff] }
  0x7d   :  { %10755 = vmatprep.mubr.msk.f32.mxu0 %vm119_vm0, %v13476_v17  ;;  %v13610_v17 = vld [vmem:[%s15828_s0 + $0xa8] sm:$0xff] }
  0x80   :  { %10756 = vmatmul.mubr.msk.f32.gmra.mrb[54].mxu0 %vm119_vm0, %v13485_v18  ;;  %v13576_v18 = vld [vmem:[%s15828_s0 + $0x68] sm:$0xff] }
  0x81   :  { %10774 = vmatprep.mubr.msk.f32.mxu0 %vm119_vm0, %v145_v20  ;;  %v9152_v20 = vld [vmem:[%s15829_s1 + $0xb0] sm:$0xff] }
  0x84   :  { %10775 = vmatmul.mubr.msk.f32.vlgmr.msra.gmra.mrb[0].mxu0 %vm119_vm0, %v146_v25 }
  0x85   :  { %12065 = vmatpush3.bf16.msra.mxu0 %v13159_v35  ;;  %10777 = vmatprep.mubr.msk.f32.mxu0 %vm119_vm0, %v13505_v26  ;;  %v9153_v35 = vld [vmem:[%s15829_s1 + $0xb8] sm:$0xff] }
  0x86   :  { %12067 = vmatprep.subr.bf16.mxu0 %v12066_v27  ;;  %v12074_v25 = vpack.c.bf16 %v9153_v35, %v9152_v20  ;;  %v13565_v20 = vld [vmem:[%s15828_s0 + $0x60] sm:$0xff]  ;;  %v13567_v35 = vpack.c.bf16 %v9267_v31, %v9266_v30  ;;  %v13605_v31 = vld [vmem:[%s15828_s0 + $0x98] sm:$0xff] }
  0x87   :  { %v13591_v30 = vld [vmem:[%s15828_s0 + $0x80] sm:$0xff] }
  0x88   :  { %10778 = vmatmul.mubr.msk.f32.gmra.mrb[2].mxu0 %vm119_vm0, %v13520_v32 }
  0x89   :  { %10780 = vmatprep.mubr.msk.f32.mxu0 %vm119_vm0, %v13525_v55  ;;  %12069 = vmatpush3.bf16.msra.mxu0 %v12066_v27  ;;  %v13560_v27 = vld [vmem:[%s15828_s0 + $0x50] sm:$0xff] }
  0x8a   :  { %12071 = vmatprep.subr.bf16.mxu0 %v12070_v56 }
  0x8c   :  { %10781 = vmatmul.mubr.msk.f32.gmra.mrb[4].mxu0 %vm119_vm0, %v13540_v21 }
  0x8d   :  { %10783 = vmatprep.mubr.msk.f32.mxu0 %vm119_vm0, %v13545_v22  ;;  %12073 = vmatpush3.bf16.msra.mxu0 %v12070_v56  ;;  %v13581_v56 = vld [vmem:[%s15828_s0 + $0x78] sm:$0xff] }
  0x8e   :  { %12075 = vmatprep.subr.bf16.mxu0 %v12074_v25 }
  0x90   :  { %10784 = vmatmul.mubr.msk.f32.gmra.mrb[6].mxu0 %vm119_vm0, %v13560_v27 }
  0x91   :  { %10786 = vmatprep.mubr.msk.f32.mxu0 %vm119_vm0, %v13565_v20  ;;  %12077 = vmatpush3.bf16.msra.mxu0 %v12074_v25  ;;  %v13596_v25 = vld [vmem:[%s15828_s0 + $0x90] sm:$0xff] }
  0x92   :  { %12079 = vmatprep.subr.bf16.mxu0 %v13567_v35 }
  0x94   :  { %10787 = vmatmul.mubr.msk.f32.gmra.mrb[8].mxu0 %vm119_vm0, %v13576_v18 }
  0x95   :  { %10789 = vmatprep.mubr.msk.f32.mxu0 %vm119_vm0, %v13581_v56 }
  0x98   :  { %10790 = vmatmul.mubr.msk.f32.gmra.mrb[10].mxu0 %vm119_vm0, %v13591_v30 }
  0x99   :  { %10792 = vmatprep.mubr.msk.f32.mxu0 %vm119_vm0, %v13596_v25 }
  0x9c   :  { %10793 = vmatmul.mubr.msk.f32.gmra.mrb[12].mxu0 %vm119_vm0, %v13605_v31 }
  0x9d   :  { %10795 = vmatprep.mubr.msk.f32.mxu0 %vm119_vm0, %v13610_v17 }
  0xa0   :  { %10796 = vmatmul.mubr.msk.f32.gmra.mrb[14].mxu0 %vm119_vm0, %v13619_v16 }
  0xa1   :  { %10798 = vmatprep.mubr.msk.f32.mxu0 %vm119_vm0, %v13624_v15 }
  0xa4   :  { %10799 = vmatmul.mubr.msk.f32.gmra.mrb[16].mxu0 %vm119_vm0, %v13633_v14 }
  0xa5   :  { %10801 = vmatprep.mubr.msk.f32.mxu0 %vm119_vm0, %v13638_v13 }
  0xa8   :  { %10802 = vmatmul.mubr.msk.f32.gmra.mrb[18].mxu0 %vm119_vm0, %v13647_v12 }
  0xa9   :  { %10804 = vmatprep.mubr.msk.f32.mxu0 %vm119_vm0, %v13652_v11 }
  0xac   :  { %10805 = vmatmul.mubr.msk.f32.gmra.mrb[20].mxu0 %vm119_vm0, %v13661_v10 }
  0xad   :  { %10807 = vmatprep.mubr.msk.f32.mxu0 %vm119_vm0, %v13666_v9 }
  0xb0   :  { %10808 = vmatmul.mubr.msk.f32.gmra.mrb[22].mxu0 %vm119_vm0, %v13675_v8 }
  0xb1   :  { %10810 = vmatprep.mubr.msk.f32.mxu0 %vm119_vm0, %v13680_v7 }
  0xb4   :  { %10811 = vmatmul.mubr.msk.f32.gmra.mrb[24].mxu0 %vm119_vm0, %v13689_v6 }
  0xb5   :  { %10813 = vmatprep.mubr.msk.f32.mxu0 %vm119_vm0, %v13694_v5 }
  0xb8   :  { %10814 = vmatmul.mubr.msk.f32.gmra.mrb[26].mxu0 %vm119_vm0, %v13703_v4 }
  0xb9   :  { %10816 = vmatprep.mubr.msk.f32.mxu0 %vm119_vm0, %v173_v3  ;;  %v13730_v3 = vld [vmem:[%s15828_s0 + $0x198] sm:$0xff] }
  0xbc   :  { %10817 = vmatmul.mubr.msk.f32.gmra.mrb[28].mxu0 %vm119_vm0, %v174_v2  ;;  %v13739_v2 = vld [vmem:[%s15828_s0 + $0x1a0] sm:$0xff] }
  0xbd   :  { %10819 = vmatprep.mubr.msk.f32.mxu0 %vm119_vm0, %v13717_v1 }
  0xc0   :  { %10820 = vmatmul.mubr.msk.f32.gmra.mrb[30].mxu0 %vm119_vm0, %v13725_v0 }
  0xc1   :  { %10822 = vmatprep.mubr.msk.f32.mxu0 %vm119_vm0, %v13730_v3 }
  0xc4   :  { %10823 = vmatmul.mubr.msk.f32.gmra.mrb[32].mxu0 %vm119_vm0, %v13739_v2 }
  0xc5   :  { %10825 = vmatprep.mubr.msk.f32.mxu0 %vm119_vm0, %v13744_v63 }
  0xc8   :  { %10826 = vmatmul.mubr.msk.f32.gmra.mrb[34].mxu0 %vm119_vm0, %v13753_v62 }
  0xc9   :  { %10828 = vmatprep.mubr.msk.f32.mxu0 %vm119_vm0, %v13758_v61 }
  0xcc   :  { %10829 = vmatmul.mubr.msk.f32.gmra.mrb[36].mxu0 %vm119_vm0, %v13767_v60 }
  0xcd   :  { %10831 = vmatprep.mubr.msk.f32.mxu0 %vm119_vm0, %v13772_v59 }
  0xd0   :  { %10832 = vmatmul.mubr.msk.f32.gmra.mrb[38].mxu0 %vm119_vm0, %v13781_v58 }
  0xd1   :  { %10834 = vmatprep.mubr.msk.f32.mxu0 %vm119_vm0, %v13786_v57 }
  0xd4   :  { %10835 = vmatmul.mubr.msk.f32.gmra.mrb[40].mxu0 %vm119_vm0, %v13795_v54 }
  0xd5   :  { %10837 = vmatprep.mubr.msk.f32.mxu0 %vm119_vm0, %v13800_v53 }
  0xd8   :  { %10838 = vmatmul.mubr.msk.f32.gmra.mrb[42].mxu0 %vm119_vm0, %v13809_v52 }
  0xd9   :  { %10840 = vmatprep.mubr.msk.f32.mxu0 %vm119_vm0, %v13814_v51 }
  0xdc   :  { %10841 = vmatmul.mubr.msk.f32.gmra.mrb[44].mxu0 %vm119_vm0, %v13823_v50 }
  0xdd   :  { %10843 = vmatprep.mubr.msk.f32.mxu0 %vm119_vm0, %v13828_v49 }
  0xe0   :  { %10844 = vmatmul.mubr.msk.f32.gmra.mrb[46].mxu0 %vm119_vm0, %v13837_v48 }
  0xe1   :  { %10846 = vmatprep.mubr.msk.f32.mxu0 %vm119_vm0, %v13842_v47 }
  0xe4   :  { %10847 = vmatmul.mubr.msk.f32.gmra.mrb[48].mxu0 %vm119_vm0, %v13851_v46 }
  0xe5   :  { %10849 = vmatprep.mubr.msk.f32.mxu0 %vm119_vm0, %v13856_v45 }
  0xe8   :  { %10850 = vmatmul.mubr.msk.f32.gmra.mrb[50].mxu0 %vm119_vm0, %v13865_v44 }
  0xe9   :  { %10852 = vmatprep.mubr.msk.f32.mxu0 %vm119_vm0, %v13870_v43 }
  0xec   :  { %10853 = vmatmul.mubr.msk.f32.gmra.mrb[52].mxu0 %vm119_vm0, %v13879_v42 }
  0xed   :  { %10855 = vmatprep.mubr.msk.f32.mxu0 %vm119_vm0, %v13884_v41 }
  0xf0   :  { %10856 = vmatmul.mubr.msk.f32.gmra.mrb[54].mxu0 %vm119_vm0, %v13893_v40 }
  0xf1   :  { %10874 = vmatprep.mubr.msk.f32.mxu0 %vm119_vm0, %v13505_v26  ;;  %v12090_v26 = vpack.c.bf16 %v9273_v39, %v9272_v38  ;;  %v9265_v38 = vld [vmem:[%s15828_s0 + $0x2c1] sm:$0xff] }
  0xf2   :  { %v2767_v39 = vld [vmem:[%s15831_s3] sm:$0xff] }
  0xf4   :  { %10875 = vmatmul.mubr.msk.f32.vlgmr.msra.gmra.mrb[0].mxu0 %vm119_vm0, %v13520_v32  ;;  %v15973_v32 = vld [vmem:[#allocation49_spill] sm:$0xff] }
  0xf5   :  { %12081 = vmatpush3.bf16.msra.mxu0 %v13567_v35  ;;  %10877 = vmatprep.mubr.msk.f32.mxu0 %vm119_vm0, %v13525_v55  ;;  %v9331_v55 = vld [vmem:[%s15831_s3 + $0x20] sm:$0xff]  ;;  %v9333_v35 = vld [vmem:[%s15831_s3 + $0x30] sm:$0xff] }
  0xf6   :  { %12083 = vmatprep.subr.bf16.mxu0 %v12082_v37 }
  0xf8   :  { %10878 = vmatmul.mubr.msk.f32.gmra.mrb[2].mxu0 %vm119_vm0, %v13540_v21  ;;  %v9332_v21 = vld [vmem:[%s15831_s3 + $0x28] sm:$0xff] }
  0xf9   :  { %10880 = vmatprep.mubr.msk.f32.mxu0 %vm119_vm0, %v13545_v22  ;;  %12085 = vmatpush3.bf16.msra.mxu0 %v12082_v37  ;;  %v9144_v37 = vld [vmem:[%s15828_s0 + $0x2b8] sm:$0xff]  ;;  %v12094_v22 = vpack.c.bf16 %v9332_v21, %v9331_v55 }
  0xfa   :  { %12087 = vmatprep.subr.bf16.mxu0 %v12086_v33 }
  0xfb   :  { %12095 = vmatprep.subr.bf16.mxu1 %v12094_v22 }
  0xfc   :  { %10881 = vmatmul.mubr.msk.f32.gmra.mrb[4].mxu0 %vm119_vm0, %v13560_v27  ;;  %v15974_v27 = vld [vmem:[#allocation50_spill] sm:$0xff]  ;;  %12097 = vmatpush3.bf16.msra.mxu1 %v12094_v22 }
  0xfd   :  { %10883 = vmatprep.mubr.msk.f32.mxu0 %vm119_vm0, %v13565_v20  ;;  %12089 = vmatpush3.bf16.msra.mxu0 %v12086_v33  ;;  %v9116_v33 = vld [vmem:[%s15828_s0 + $0x150] sm:$0xff]  ;;  %v15975_v20 = vld [vmem:[#allocation51_spill] sm:$0xff] }
  0xfe   :  { %12091 = vmatprep.subr.bf16.mxu0 %v12090_v26 }
 0x100   :  { %10884 = vmatmul.mubr.msk.f32.gmra.mrb[6].mxu0 %vm119_vm0, %v13576_v18  ;;  %v15972_v18 = vld [vmem:[#allocation48_spill] sm:$0xff] }
 0x101   :  { %10886 = vmatprep.mubr.msk.f32.mxu0 %vm119_vm0, %v13581_v56  ;;  %12093 = vmatpush3.bf16.msra.mxu0 %v12090_v26  ;;  %v9334_v56 = vld [vmem:[%s15831_s3 + $0x38] sm:$0xff]  ;;  %v2768_v26 = vld [vmem:[%s15831_s3 + $0x8] sm:$0xff] }
 0x104   :  { %10887 = vmatmul.mubr.msk.f32.gmra.mrb[8].mxu0 %vm119_vm0, %v13591_v30  ;;  %v12098_v30 = vpack.c.bf16 %v9334_v56, %v9333_v35 }
 0x105   :  { %10889 = vmatprep.mubr.msk.f32.mxu0 %vm119_vm0, %v13596_v25  ;;  %v15976_v25 = vld [vmem:[#allocation52_spill] sm:$0xff] }
 0x106   :  { %12099 = vmatprep.subr.bf16.mxu1 %v12098_v30 }
 0x107   :  { %12101 = vmatpush3.bf16.msra.mxu1 %v12098_v30 }
 0x108   :  { %10890 = vmatmul.mubr.msk.f32.gmra.mrb[10].mxu0 %vm119_vm0, %v13605_v31  ;;  %v15977_v31 = vld [vmem:[#allocation53_spill] sm:$0xff] }
 0x109   :  { %10892 = vmatprep.mubr.msk.f32.mxu0 %vm119_vm0, %v13610_v17  ;;  %v15971_v17 = vld [vmem:[#allocation47_spill] sm:$0xff] }
 0x10c   :  { %10893 = vmatmul.mubr.msk.f32.gmra.mrb[12].mxu0 %vm119_vm0, %v13619_v16  ;;  %v15970_v16 = vld [vmem:[#allocation46_spill] sm:$0xff] }
 0x10d   :  { %10895 = vmatprep.mubr.msk.f32.mxu0 %vm119_vm0, %v13624_v15  ;;  %v15969_v15 = vld [vmem:[#allocation45_spill] sm:$0xff] }
 0x110   :  { %10896 = vmatmul.mubr.msk.f32.gmra.mrb[14].mxu0 %vm119_vm0, %v13633_v14  ;;  %v15968_v14 = vld [vmem:[#allocation44_spill] sm:$0xff] }
 0x111   :  { %10898 = vmatprep.mubr.msk.f32.mxu0 %vm119_vm0, %v13638_v13  ;;  %v15967_v13 = vld [vmem:[#allocation43_spill] sm:$0xff] }
 0x114   :  { %10899 = vmatmul.mubr.msk.f32.gmra.mrb[16].mxu0 %vm119_vm0, %v13647_v12  ;;  %v15966_v12 = vld [vmem:[#allocation42_spill] sm:$0xff] }
 0x115   :  { %10901 = vmatprep.mubr.msk.f32.mxu0 %vm119_vm0, %v13652_v11  ;;  %v15965_v11 = vld [vmem:[#allocation41_spill] sm:$0xff] }
 0x118   :  { %10902 = vmatmul.mubr.msk.f32.gmra.mrb[18].mxu0 %vm119_vm0, %v13661_v10  ;;  %v15964_v10 = vld [vmem:[#allocation40_spill] sm:$0xff] }
 0x119   :  { %10904 = vmatprep.mubr.msk.f32.mxu0 %vm119_vm0, %v13666_v9  ;;  %v15963_v9 = vld [vmem:[#allocation39_spill] sm:$0xff] }
 0x11c   :  { %10905 = vmatmul.mubr.msk.f32.gmra.mrb[20].mxu0 %vm119_vm0, %v13675_v8  ;;  %v15962_v8 = vld [vmem:[#allocation38_spill] sm:$0xff] }
 0x11d   :  { %10907 = vmatprep.mubr.msk.f32.mxu0 %vm119_vm0, %v13680_v7  ;;  %v15961_v7 = vld [vmem:[#allocation37_spill] sm:$0xff] }
 0x120   :  { %10908 = vmatmul.mubr.msk.f32.gmra.mrb[22].mxu0 %vm119_vm0, %v13689_v6  ;;  %v15960_v6 = vld [vmem:[#allocation36_spill] sm:$0xff] }
 0x121   :  { %10910 = vmatprep.mubr.msk.f32.mxu0 %vm119_vm0, %v13694_v5  ;;  %v15959_v5 = vld [vmem:[#allocation35_spill] sm:$0xff] }
 0x124   :  { %10911 = vmatmul.mubr.msk.f32.gmra.mrb[24].mxu0 %vm119_vm0, %v13703_v4  ;;  %v15958_v4 = vld [vmem:[#allocation34_spill] sm:$0xff] }
 0x125   :  { %10913 = vmatprep.mubr.msk.f32.mxu0 %vm119_vm0, %v9116_v33  ;;  %v12102_v33 = vpack.c.bf16 %v2768_v26, %v2767_v39 }
 0x127   :  { %12103 = vmatprep.subr.bf16.mxu1 %v12102_v33 }
 0x128   :  { %10914 = vmatmul.mubr.msk.f32.gmra.mrb[26].mxu0 %vm119_vm0, %v9117_v34  ;;  %v14369_v34 = vld [vmem:[%s15830_s2] ss:$0 sm:$0xff] }
 0x129   :  { %10916 = vmatprep.mubr.msk.f32.mxu0 %vm119_vm0, %v13717_v1  ;;  %v15957_v1 = vld [vmem:[#allocation33_spill] sm:$0xff] }
 0x12c   :  { %10917 = vmatmul.mubr.msk.f32.gmra.mrb[28].mxu0 %vm119_vm0, %v13725_v0  ;;  %v15956_v0 = vld [vmem:[#allocation32_spill] sm:$0xff] }
 0x12d   :  { %10919 = vmatprep.mubr.msk.f32.mxu0 %vm119_vm0, %v13730_v3  ;;  %v9264_v3 = vld [vmem:[%s15828_s0 + $0x2b9] sm:$0xff] }
 0x130   :  { %10920 = vmatmul.mubr.msk.f32.gmra.mrb[30].mxu0 %vm119_vm0, %v13739_v2  ;;  %v15978_v2 = vld [vmem:[#allocation54_spill] sm:$0xff] }
 0x131   :  { %10922 = vmatprep.mubr.msk.f32.mxu0 %vm119_vm0, %v13744_v63  ;;  %v15955_v63 = vld [vmem:[#allocation31_spill] sm:$0xff] }
 0x134   :  { %10923 = vmatmul.mubr.msk.f32.gmra.mrb[32].mxu0 %vm119_vm0, %v13753_v62  ;;  %v15954_v62 = vld [vmem:[#allocation30_spill] sm:$0xff] }
 0x135   :  { %10925 = vmatprep.mubr.msk.f32.mxu0 %vm119_vm0, %v13758_v61  ;;  %v15953_v61 = vld [vmem:[#allocation29_spill] sm:$0xff] }
 0x138   :  { %10926 = vmatmul.mubr.msk.f32.gmra.mrb[34].mxu0 %vm119_vm0, %v13767_v60  ;;  %v9237_v60 = vld [vmem:[%s15828_s0 + $0x159] sm:$0xff] }
 0x139   :  { %10928 = vmatprep.mubr.msk.f32.mxu0 %vm119_vm0, %v13772_v59  ;;  %v15952_v59 = vld [vmem:[#allocation28_spill] sm:$0xff] }
 0x13c   :  { %10929 = vmatmul.mubr.msk.f32.gmra.mrb[36].mxu0 %vm119_vm0, %v13781_v58  ;;  %v9236_v58 = vld [vmem:[%s15828_s0 + $0x151] sm:$0xff] }
 0x13d   :  { %10931 = vmatprep.mubr.msk.f32.mxu0 %vm119_vm0, %v13786_v57  ;;  %v15951_v57 = vld [vmem:[#allocation27_spill] sm:$0xff] }
 0x140   :  { %10932 = vmatmul.mubr.msk.f32.gmra.mrb[38].mxu0 %vm119_vm0, %v13795_v54  ;;  %v15950_v54 = vld [vmem:[#allocation26_spill] sm:$0xff] }
 0x141   :  { %10934 = vmatprep.mubr.msk.f32.mxu0 %vm119_vm0, %v13800_v53  ;;  %v15949_v53 = vld [vmem:[#allocation25_spill] sm:$0xff] }
 0x144   :  { %10935 = vmatmul.mubr.msk.f32.gmra.mrb[40].mxu0 %vm119_vm0, %v13809_v52  ;;  %v15948_v52 = vld [vmem:[#allocation24_spill] sm:$0xff] }
 0x145   :  { %10937 = vmatprep.mubr.msk.f32.mxu0 %vm119_vm0, %v13814_v51  ;;  %v15947_v51 = vld [vmem:[#allocation23_spill] sm:$0xff] }
 0x148   :  { %10938 = vmatmul.mubr.msk.f32.gmra.mrb[42].mxu0 %vm119_vm0, %v13823_v50  ;;  %v15946_v50 = vld [vmem:[#allocation22_spill] sm:$0xff] }
 0x149   :  { %10940 = vmatprep.mubr.msk.f32.mxu0 %vm119_vm0, %v13828_v49  ;;  %v15945_v49 = vld [vmem:[#allocation21_spill] sm:$0xff] }
 0x14c   :  { %10941 = vmatmul.mubr.msk.f32.gmra.mrb[44].mxu0 %vm119_vm0, %v13837_v48  ;;  %v15944_v48 = vld [vmem:[#allocation20_spill] sm:$0xff] }
 0x14d   :  { %10943 = vmatprep.mubr.msk.f32.mxu0 %vm119_vm0, %v13842_v47  ;;  %v15943_v47 = vld [vmem:[#allocation19_spill] sm:$0xff] }
 0x150   :  { %10944 = vmatmul.mubr.msk.f32.gmra.mrb[46].mxu0 %vm119_vm0, %v13851_v46  ;;  %v15942_v46 = vld [vmem:[#allocation18_spill] sm:$0xff] }
 0x151   :  { %10946 = vmatprep.mubr.msk.f32.mxu0 %vm119_vm0, %v13856_v45  ;;  %v15941_v45 = vld [vmem:[#allocation17_spill] sm:$0xff] }
 0x154   :  { %10947 = vmatmul.mubr.msk.f32.gmra.mrb[48].mxu0 %vm119_vm0, %v13865_v44  ;;  %v9145_v44 = vld [vmem:[%s15828_s0 + $0x2c0] sm:$0xff] }
 0x155   :  { %10949 = vmatprep.mubr.msk.f32.mxu0 %vm119_vm0, %v13870_v43  ;;  %v15940_v43 = vld [vmem:[#allocation16_spill] sm:$0xff] }
 0x158   :  { %10950 = vmatmul.mubr.msk.f32.gmra.mrb[50].mxu0 %vm119_vm0, %v13879_v42  ;;  %v15934_v42 = vld [vmem:[#allocation10_spill] sm:$0xff] }
 0x159   :  { %10952 = vmatprep.mubr.msk.f32.mxu0 %vm119_vm0, %v13884_v41  ;;  %v15933_v41 = vld [vmem:[#allocation9_spill] sm:$0xff] }
 0x15c   :  { %10953 = vmatmul.mubr.msk.f32.gmra.mrb[52].mxu0 %vm119_vm0, %v13893_v40  ;;  %v15932_v40 = vld [vmem:[#allocation8_spill] sm:$0xff] }
 0x15d   :  { %10955 = vmatprep.mubr.msk.f32.mxu0 %vm119_vm0, %v9144_v37 }
 0x160   :  { %10956 = vmatmul.mubr.msk.f32.gmra.mrb[54].mxu0 %vm119_vm0, %v9145_v44 }
 0x161   :  { %10974 = vmatprep.mubr.msk.f32.mxu0 %vm119_vm0, %v13098_v19  ;;  %v15935_v19 = vld [vmem:[#allocation11_spill] sm:$0xff] }
 0x164   :  { %10975 = vmatmul.mubr.msk.f32.vlgmr.msra.gmra.mrb[0].mxu0 %vm119_vm0, %v13112_v23  ;;  %v15936_v23 = vld [vmem:[#allocation12_spill] sm:$0xff] }
 0x165   :  { %10977 = vmatprep.mubr.msk.f32.mxu0 %vm119_vm0, %v13117_v24  ;;  %v15937_v24 = vld [vmem:[#allocation13_spill] sm:$0xff] }
 0x168   :  { %10978 = vmatmul.mubr.msk.f32.gmra.mrb[2].mxu0 %vm119_vm0, %v13132_v28  ;;  %v15938_v28 = vld [vmem:[#allocation14_spill] sm:$0xff] }
 0x169   :  { %10980 = vmatprep.mubr.msk.f32.mxu0 %vm119_vm0, %v13137_v29  ;;  %v15939_v29 = vld [vmem:[#allocation15_spill] sm:$0xff] }
 0x16c   :  { %10981 = vmatmul.mubr.msk.f32.gmra.mrb[4].mxu0 %vm119_vm0, %v15932_v40 }
 0x16d   :  { %10983 = vmatprep.mubr.msk.f32.mxu0 %vm119_vm0, %v15933_v41 }
 0x170   :  { %10984 = vmatmul.mubr.msk.f32.gmra.mrb[6].mxu0 %vm119_vm0, %v15934_v42 }
 0x171   :  { %10986 = vmatprep.mubr.msk.f32.mxu0 %vm119_vm0, %v15935_v19 }
 0x174   :  { %10987 = vmatmul.mubr.msk.f32.gmra.mrb[8].mxu0 %vm119_vm0, %v15936_v23 }
 0x175   :  { %10989 = vmatprep.mubr.msk.f32.mxu0 %vm119_vm0, %v15937_v24 }
 0x178   :  { %10990 = vmatmul.mubr.msk.f32.gmra.mrb[10].mxu0 %vm119_vm0, %v15938_v28 }
 0x179   :  { %10992 = vmatprep.mubr.msk.f32.mxu0 %vm119_vm0, %v15939_v29 }
 0x17c   :  { %10993 = vmatmul.mubr.msk.f32.gmra.mrb[12].mxu0 %vm119_vm0, %v15940_v43 }
 0x17d   :  { %10995 = vmatprep.mubr.msk.f32.mxu0 %vm119_vm0, %v15941_v45 }
 0x180   :  { %10996 = vmatmul.mubr.msk.f32.gmra.mrb[14].mxu0 %vm119_vm0, %v15942_v46 }
 0x181   :  { %10998 = vmatprep.mubr.msk.f32.mxu0 %vm119_vm0, %v15943_v47 }
 0x184   :  { %10999 = vmatmul.mubr.msk.f32.gmra.mrb[16].mxu0 %vm119_vm0, %v15944_v48 }
 0x185   :  { %11001 = vmatprep.mubr.msk.f32.mxu0 %vm119_vm0, %v15945_v49 }
 0x188   :  { %11002 = vmatmul.mubr.msk.f32.gmra.mrb[18].mxu0 %vm119_vm0, %v15946_v50 }
 0x189   :  { %11004 = vmatprep.mubr.msk.f32.mxu0 %vm119_vm0, %v15947_v51 }
 0x18c   :  { %11005 = vmatmul.mubr.msk.f32.gmra.mrb[20].mxu0 %vm119_vm0, %v15948_v52 }
 0x18d   :  { %11007 = vmatprep.mubr.msk.f32.mxu0 %vm119_vm0, %v15949_v53 }
 0x190   :  { %11008 = vmatmul.mubr.msk.f32.gmra.mrb[22].mxu0 %vm119_vm0, %v15950_v54 }
 0x191   :  { %11010 = vmatprep.mubr.msk.f32.mxu0 %vm119_vm0, %v15951_v57 }
 0x194   :  { %11011 = vmatmul.mubr.msk.f32.gmra.mrb[24].mxu0 %vm119_vm0, %v15952_v59 }
 0x195   :  { %11013 = vmatprep.mubr.msk.f32.mxu0 %vm119_vm0, %v9236_v58 }
 0x198   :  { %11014 = vmatmul.mubr.msk.f32.gmra.mrb[26].mxu0 %vm119_vm0, %v9237_v60 }
 0x199   :  { %11016 = vmatprep.mubr.msk.f32.mxu0 %vm119_vm0, %v15953_v61 }
 0x19c   :  { %11017 = vmatmul.mubr.msk.f32.gmra.mrb[28].mxu0 %vm119_vm0, %v15954_v62 }
 0x19d   :  { %11019 = vmatprep.mubr.msk.f32.mxu0 %vm119_vm0, %v15955_v63 }
 0x1a0   :  { %11020 = vmatmul.mubr.msk.f32.gmra.mrb[30].mxu0 %vm119_vm0, %v15956_v0  ;;  %v2769_v0 = vld [vmem:[%s15831_s3 + $0x10] sm:$0xff] }
 0x1a1   :  { %11022 = vmatprep.mubr.msk.f32.mxu0 %vm119_vm0, %v15957_v1  ;;  %v2770_v1 = vld [vmem:[%s15831_s3 + $0x18] sm:$0xff] }
 0x1a4   :  { %11023 = vmatmul.mubr.msk.f32.gmra.mrb[32].mxu0 %vm119_vm0, %v15958_v4 }
 0x1a5   :  { %11025 = vmatprep.mubr.msk.f32.mxu0 %vm119_vm0, %v15959_v5 }
 0x1a8   :  { %11026 = vmatmul.mubr.msk.f32.gmra.mrb[34].mxu0 %vm119_vm0, %v15960_v6 }
 0x1a9   :  { %11028 = vmatprep.mubr.msk.f32.mxu0 %vm119_vm0, %v15961_v7 }
 0x1ac   :  { %11029 = vmatmul.mubr.msk.f32.gmra.mrb[36].mxu0 %vm119_vm0, %v15962_v8  ;;  %v12106_v8 = vpack.c.bf16 %v2770_v1, %v2769_v0 }
 0x1ad   :  { %11031 = vmatprep.mubr.msk.f32.mxu0 %vm119_vm0, %v15963_v9 }
 0x1b0   :  { %11032 = vmatmul.mubr.msk.f32.gmra.mrb[38].mxu0 %vm119_vm0, %v15964_v10 }
 0x1b1   :  { %11034 = vmatprep.mubr.msk.f32.mxu0 %vm119_vm0, %v15965_v11 }
 0x1b4   :  { %11035 = vmatmul.mubr.msk.f32.gmra.mrb[40].mxu0 %vm119_vm0, %v15966_v12  ;;  %v9359_v12 = vld [vmem:[%s15831_s3 + $0x40] sm:$0xff] }
 0x1b5   :  { %11037 = vmatprep.mubr.msk.f32.mxu0 %vm119_vm0, %v15967_v13  ;;  %v9360_v13 = vld [vmem:[%s15831_s3 + $0x48] sm:$0xff] }
 0x1b8   :  { %11038 = vmatmul.mubr.msk.f32.gmra.mrb[42].mxu0 %vm119_vm0, %v15968_v14 }
 0x1b9   :  { %11040 = vmatprep.mubr.msk.f32.mxu0 %vm119_vm0, %v15969_v15 }
 0x1bc   :  { %11041 = vmatmul.mubr.msk.f32.gmra.mrb[44].mxu0 %vm119_vm0, %v15970_v16 }
 0x1bd   :  { %11043 = vmatprep.mubr.msk.f32.mxu0 %vm119_vm0, %v15971_v17 }
 0x1c0   :  { %11044 = vmatmul.mubr.msk.f32.gmra.mrb[46].mxu0 %vm119_vm0, %v15972_v18  ;;  %v14407_v18 = vpack.c.bf16 %v9360_v13, %v9359_v12 }
 0x1c1   :  { %11046 = vmatprep.mubr.msk.f32.mxu0 %vm119_vm0, %v15973_v32 }
 0x1c4   :  { %11047 = vmatmul.mubr.msk.f32.gmra.mrb[48].mxu0 %vm119_vm0, %v15974_v27 }
 0x1c5   :  { %11049 = vmatprep.mubr.msk.f32.mxu0 %vm119_vm0, %v15975_v20 }
 0x1c8   :  { %11050 = vmatmul.mubr.msk.f32.gmra.mrb[50].mxu0 %vm119_vm0, %v15976_v25 }
 0x1c9   :  { %11052 = vmatprep.mubr.msk.f32.mxu0 %vm119_vm0, %v15977_v31 }
 0x1cc   :  { %11053 = vmatmul.mubr.msk.f32.gmra.mrb[52].mxu0 %vm119_vm0, %v15978_v2 }
 0x1cd   :  { %11055 = vmatprep.mubr.msk.f32.mxu0 %vm119_vm0, %v9264_v3 }
 0x1d0   :  { %11056 = vmatmul.mubr.msk.f32.gmra.mrb[54].mxu0 %vm119_vm0, %v9265_v38 }
 0x1d1   :  { %11742 = vmatprep.mubr.msk.f32.mxu0 %vm13000_vm4, %v12998_v36 }
 0x237   :  { %v10976_v37 = vpop.f32.mrb[0].mxu0 }
 0x238   :  { %v2577_v44 = vadd.f32 %v10976_v37, %v14369_v34  ;;  %v2234_v40 = vpop.f32.mrb[1].mxu0 }
 0x239   :  { %v2576_v41 = vadd.f32 %v14369_v34, %v2234_v40 }
 0x23a   :  { %v2633_v42 = vmax.f32 %v2577_v44, 0.0 }
 0x23b   :  { %v2632_v19 = vmax.f32 %v2576_v41, 0.0  ;;  %v10979_v23 = vpop.f32.mrb[2].mxu0 }
 0x23c   :  { %2689 = vst.msk [vmem:[#allocation2 + $0x8] sm:$0xff] %vm33_vm1, %v2633_v42  ;;  %v2579_v24 = vadd.f32 %v10979_v23, %v14369_v34  ;;  %v2244_v28 = vpop.f32.mrb[3].mxu0 }
 0x23d   :  { %2688 = vst.msk [vmem:[#allocation2] sm:$0xff] %vm33_vm1, %v2632_v19  ;;  %v2578_v29 = vadd.f32 %v14369_v34, %v2244_v28 }
 0x23e   :  { %v2635_v43 = vmax.f32 %v2579_v24, 0.0 }
 0x23f   :  { %v2634_v45 = vmax.f32 %v2578_v29, 0.0  ;;  %v10982_v46 = vpop.f32.mrb[4].mxu0 }
 0x240   :  { %2691 = vst.msk [vmem:[#allocation2 + $0x20] sm:$0xff] %vm33_vm1, %v2635_v43  ;;  %v2581_v47 = vadd.f32 %v10982_v46, %v14369_v34  ;;  %v2254_v48 = vpop.f32.mrb[5].mxu0 }
 0x241   :  { %2690 = vst.msk [vmem:[#allocation2 + $0x18] sm:$0xff] %vm33_vm1, %v2634_v45  ;;  %v2580_v49 = vadd.f32 %v14369_v34, %v2254_v48 }
 0x242   :  { %v2637_v50 = vmax.f32 %v2581_v47, 0.0 }
 0x243   :  { %v2636_v51 = vmax.f32 %v2580_v49, 0.0  ;;  %v10985_v52 = vpop.f32.mrb[6].mxu0 }
 0x244   :  { %2693 = vst.msk [vmem:[#allocation2 + $0x38] sm:$0xff] %vm33_vm1, %v2637_v50  ;;  %v2583_v53 = vadd.f32 %v10985_v52, %v14369_v34  ;;  %v2264_v54 = vpop.f32.mrb[7].mxu0  ;;  %v2772_v57 = vld [vmem:[#allocation2 + $0x1] ss:$2 sm:$0xff] }
 0x245   :  { %2692 = vst.msk [vmem:[#allocation2 + $0x30] sm:$0xff] %vm33_vm1, %v2636_v51  ;;  %v2582_v58 = vadd.f32 %v14369_v34, %v2264_v54  ;;  %11066 = vmatprep.mubr.msk.f32.mxu1 %vm33_vm1, %v2772_v57 }
 0x246   :  { %v2639_v59 = vmax.f32 %v2583_v53, 0.0 }
 0x247   :  { %v2638_v60 = vmax.f32 %v2582_v58, 0.0  ;;  %v10988_v61 = vpop.f32.mrb[8].mxu0 }
 0x248   :  { %2695 = vst.msk [vmem:[#allocation2 + $0x50] sm:$0xff] %vm33_vm1, %v2639_v59  ;;  %v2585_v62 = vadd.f32 %v10988_v61, %v14369_v34  ;;  %v2274_v63 = vpop.f32.mrb[9].mxu0 }
 0x249   :  { %2694 = vst.msk [vmem:[#allocation2 + $0x48] sm:$0xff] %vm33_vm1, %v2638_v60  ;;  %v2584_v4 = vadd.f32 %v14369_v34, %v2274_v63 }
 0x24a   :  { %v2641_v5 = vmax.f32 %v2585_v62, 0.0 }
 0x24b   :  { %v2640_v6 = vmax.f32 %v2584_v4, 0.0  ;;  %v10991_v7 = vpop.f32.mrb[10].mxu0 }
 0x24c   :  { %2697 = vst.msk [vmem:[#allocation2 + $0x68] sm:$0xff] %vm33_vm1, %v2641_v5  ;;  %v2587_v9 = vadd.f32 %v10991_v7, %v14369_v34  ;;  %v2284_v10 = vpop.f32.mrb[11].mxu0  ;;  %v2774_v11 = vld [vmem:[#allocation2 + $0x31] ss:$2 sm:$0xff] }
 0x24d   :  { %2696 = vst.msk [vmem:[#allocation2 + $0x60] sm:$0xff] %vm33_vm1, %v2640_v6  ;;  %v2586_v14 = vadd.f32 %v14369_v34, %v2284_v10  ;;  %11067 = vmatmul.mubr.msk.f32.vlgmr.msra.gmra.mrb[0].mxu1 %vm33_vm1, %v2774_v11 }
 0x24e   :  { %v2643_v15 = vmax.f32 %v2587_v9, 0.0  ;;  %12105 = vmatpush3.bf16.msra.mxu1 %v12102_v33 }
 0x24f   :  { %v2642_v16 = vmax.f32 %v2586_v14, 0.0  ;;  %v10994_v17 = vpop.f32.mrb[12].mxu0  ;;  %12107 = vmatprep.subr.bf16.mxu1 %v12106_v8 }
 0x250   :  { %2699 = vst.msk [vmem:[#allocation2 + $0x80] sm:$0xff] %vm33_vm1, %v2643_v15  ;;  %v2589_v32 = vadd.f32 %v10994_v17, %v14369_v34  ;;  %v2294_v55 = vpop.f32.mrb[13].mxu0 }
 0x251   :  { %2698 = vst.msk [vmem:[#allocation2 + $0x78] sm:$0xff] %vm33_vm1, %v2642_v16  ;;  %v2588_v21 = vadd.f32 %v14369_v34, %v2294_v55 }
 0x252   :  { %v2645_v22 = vmax.f32 %v2589_v32, 0.0  ;;  %12109 = vmatpush3.bf16.msra.mxu1 %v12106_v8 }
 0x253   :  { %v2644_v27 = vmax.f32 %v2588_v21, 0.0  ;;  %v10997_v20 = vpop.f32.mrb[14].mxu0  ;;  %12111 = vmatprep.subr.bf16.mxu1 %v14407_v18 }
 0x254   :  { %2701 = vst.msk [vmem:[#allocation2 + $0x98] sm:$0xff] %vm33_vm1, %v2645_v22  ;;  %v2591_v35 = vadd.f32 %v10997_v20, %v14369_v34  ;;  %v2304_v56 = vpop.f32.mrb[15].mxu0  ;;  %v2776_v30 = vld [vmem:[#allocation2 + $0x61] ss:$2 sm:$0xff] }
 0x255   :  { %2700 = vst.msk [vmem:[#allocation2 + $0x90] sm:$0xff] %vm33_vm1, %v2644_v27  ;;  %v2590_v25 = vadd.f32 %v14369_v34, %v2304_v56  ;;  %11069 = vmatprep.mubr.msk.f32.mxu1 %vm33_vm1, %v2776_v30 }
 0x256   :  { %v2647_v31 = vmax.f32 %v2591_v35, 0.0 }
 0x257   :  { %v2646_v3 = vmax.f32 %v2590_v25, 0.0  ;;  %v11000_v2 = vpop.f32.mrb[16].mxu0 }
 0x258   :  { %2703 = vst.msk [vmem:[#allocation2 + $0xb0] sm:$0xff] %vm33_vm1, %v2647_v31  ;;  %v2593_v38 = vadd.f32 %v11000_v2, %v14369_v34  ;;  %v2314_v39 = vpop.f32.mrb[17].mxu0 }
 0x259   :  { %2702 = vst.msk [vmem:[#allocation2 + $0xa8] sm:$0xff] %vm33_vm1, %v2646_v3  ;;  %v2592_v26 = vadd.f32 %v14369_v34, %v2314_v39 }
 0x25a   :  { %v2649_v33 = vmax.f32 %v2593_v38, 0.0 }
 0x25b   :  { %v2648_v37 = vmax.f32 %v2592_v26, 0.0  ;;  %v11003_v44 = vpop.f32.mrb[18].mxu0 }
 0x25c   :  { %2705 = vst.msk [vmem:[#allocation2 + $0xc8] sm:$0xff] %vm33_vm1, %v2649_v33  ;;  %v2595_v40 = vadd.f32 %v11003_v44, %v14369_v34  ;;  %v2324_v41 = vpop.f32.mrb[19].mxu0  ;;  %v2778_v42 = vld [vmem:[#allocation2 + $0x91] ss:$2 sm:$0xff] }
 0x25d   :  { %2704 = vst.msk [vmem:[#allocation2 + $0xc0] sm:$0xff] %vm33_vm1, %v2648_v37  ;;  %v2594_v19 = vadd.f32 %v14369_v34, %v2324_v41  ;;  %11070 = vmatmul.mubr.msk.f32.gmra.mrb[2].mxu1 %vm33_vm1, %v2778_v42 }
 0x25e   :  { %v2651_v23 = vmax.f32 %v2595_v40, 0.0 }
 0x25f   :  { %v2650_v24 = vmax.f32 %v2594_v19, 0.0  ;;  %v11006_v28 = vpop.f32.mrb[20].mxu0 }
 0x260   :  { %2707 = vst.msk [vmem:[#allocation2 + $0xe0] sm:$0xff] %vm33_vm1, %v2651_v23  ;;  %v2597_v29 = vadd.f32 %v11006_v28, %v14369_v34  ;;  %v2334_v43 = vpop.f32.mrb[21].mxu0 }
 0x261   :  { %2706 = vst.msk [vmem:[#allocation2 + $0xd8] sm:$0xff] %vm33_vm1, %v2650_v24  ;;  %v2596_v45 = vadd.f32 %v14369_v34, %v2334_v43 }
 0x262   :  { %v2653_v46 = vmax.f32 %v2597_v29, 0.0 }
 0x263   :  { %v2652_v47 = vmax.f32 %v2596_v45, 0.0  ;;  %v11009_v48 = vpop.f32.mrb[22].mxu0 }
 0x264   :  { %2709 = vst.msk [vmem:[#allocation2 + $0xf8] sm:$0xff] %vm33_vm1, %v2653_v46  ;;  %v2599_v49 = vadd.f32 %v11009_v48, %v14369_v34  ;;  %v2344_v50 = vpop.f32.mrb[23].mxu0  ;;  %v2780_v51 = vld [vmem:[#allocation2 + $0xc1] ss:$2 sm:$0xff] }
 0x265   :  { %2708 = vst.msk [vmem:[#allocation2 + $0xf0] sm:$0xff] %vm33_vm1, %v2652_v47  ;;  %v2598_v52 = vadd.f32 %v14369_v34, %v2344_v50  ;;  %11072 = vmatprep.mubr.msk.f32.mxu1 %vm33_vm1, %v2780_v51 }
 0x266   :  { %v2655_v53 = vmax.f32 %v2599_v49, 0.0 }
 0x267   :  { %v2654_v54 = vmax.f32 %v2598_v52, 0.0  ;;  %v11012_v57 = vpop.f32.mrb[24].mxu0 }
 0x268   :  { %2711 = vst.msk [vmem:[#allocation2 + $0x110] sm:$0xff] %vm33_vm1, %v2655_v53  ;;  %v2601_v58 = vadd.f32 %v11012_v57, %v14369_v34  ;;  %v2354_v59 = vpop.f32.mrb[25].mxu0 }
 0x269   :  { %2710 = vst.msk [vmem:[#allocation2 + $0x108] sm:$0xff] %vm33_vm1, %v2654_v54  ;;  %v2600_v60 = vadd.f32 %v14369_v34, %v2354_v59 }
 0x26a   :  { %v2657_v61 = vmax.f32 %v2601_v58, 0.0 }
 0x26b   :  { %v2656_v62 = vmax.f32 %v2600_v60, 0.0  ;;  %v11015_v63 = vpop.f32.mrb[26].mxu0 }
 0x26c   :  { %2713 = vst.msk [vmem:[#allocation2 + $0x128] sm:$0xff] %vm33_vm1, %v2657_v61  ;;  %v2603_v0 = vadd.f32 %v11015_v63, %v14369_v34  ;;  %v2364_v1 = vpop.f32.mrb[27].mxu0  ;;  %v2782_v4 = vld [vmem:[#allocation2 + $0xf1] ss:$2 sm:$0xff] }
 0x26d   :  { %2712 = vst.msk [vmem:[#allocation2 + $0x120] sm:$0xff] %vm33_vm1, %v2656_v62  ;;  %v2602_v5 = vadd.f32 %v14369_v34, %v2364_v1  ;;  %11073 = vmatmul.mubr.msk.f32.gmra.mrb[4].mxu1 %vm33_vm1, %v2782_v4 }
 0x26e   :  { %v2659_v6 = vmax.f32 %v2603_v0, 0.0 }
 0x26f   :  { %v2658_v7 = vmax.f32 %v2602_v5, 0.0  ;;  %v11018_v8 = vpop.f32.mrb[28].mxu0 }
 0x270   :  { %2715 = vst.msk [vmem:[#allocation2 + $0x140] sm:$0xff] %vm33_vm1, %v2659_v6  ;;  %v2605_v9 = vadd.f32 %v11018_v8, %v14369_v34  ;;  %v2374_v10 = vpop.f32.mrb[29].mxu0 }
 0x271   :  { %2714 = vst.msk [vmem:[#allocation2 + $0x138] sm:$0xff] %vm33_vm1, %v2658_v7  ;;  %v2604_v11 = vadd.f32 %v14369_v34, %v2374_v10 }
 0x272   :  { %v2661_v12 = vmax.f32 %v2605_v9, 0.0 }
 0x273   :  { %v2660_v13 = vmax.f32 %v2604_v11, 0.0  ;;  %v11021_v14 = vpop.f32.mrb[30].mxu0 }
 0x274   :  { %2717 = vst.msk [vmem:[#allocation2 + $0x158] sm:$0xff] %vm33_vm1, %v2661_v12  ;;  %v2607_v15 = vadd.f32 %v11021_v14, %v14369_v34  ;;  %v2384_v16 = vpop.f32.mrb[31].mxu0 }
 0x275   :  { %2716 = vst.msk [vmem:[#allocation2 + $0x150] sm:$0xff] %vm33_vm1, %v2660_v13  ;;  %v2606_v17 = vadd.f32 %v14369_v34, %v2384_v16 }
 0x276   :  { %v2663_v32 = vmax.f32 %v2607_v15, 0.0 }
 0x277   :  { %v2662_v55 = vmax.f32 %v2606_v17, 0.0  ;;  %v11024_v21 = vpop.f32.mrb[32].mxu0 }
 0x278   :  { %2719 = vst.msk [vmem:[#allocation2 + $0x170] sm:$0xff] %vm33_vm1, %v2663_v32  ;;  %v2609_v22 = vadd.f32 %v11024_v21, %v14369_v34  ;;  %v2394_v27 = vpop.f32.mrb[33].mxu0 }
 0x279   :  { %2718 = vst.msk [vmem:[#allocation2 + $0x168] sm:$0xff] %vm33_vm1, %v2662_v55  ;;  %v2608_v20 = vadd.f32 %v14369_v34, %v2394_v27 }
 0x27a   :  { %v2665_v35 = vmax.f32 %v2609_v22, 0.0 }
 0x27b   :  { %v2664_v56 = vmax.f32 %v2608_v20, 0.0  ;;  %v11027_v30 = vpop.f32.mrb[34].mxu0 }
 0x27c   :  { %2721 = vst.msk [vmem:[#allocation2 + $0x188] sm:$0xff] %vm33_vm1, %v2665_v35  ;;  %v2611_v25 = vadd.f32 %v11027_v30, %v14369_v34  ;;  %v2404_v31 = vpop.f32.mrb[35].mxu0  ;;  %v2784_v3 = vld [vmem:[#allocation2 + $0x151] ss:$2 sm:$0xff] }
 0x27d   :  { %2720 = vst.msk [vmem:[#allocation2 + $0x180] sm:$0xff] %vm33_vm1, %v2664_v56  ;;  %v2610_v2 = vadd.f32 %v14369_v34, %v2404_v31  ;;  %11075 = vmatprep.mubr.msk.f32.mxu1 %vm33_vm1, %v2784_v3 }
 0x27e   :  { %v2667_v38 = vmax.f32 %v2611_v25, 0.0 }
 0x27f   :  { %v2666_v39 = vmax.f32 %v2610_v2, 0.0  ;;  %v11030_v26 = vpop.f32.mrb[36].mxu0 }
 0x280   :  { %2723 = vst.msk [vmem:[#allocation2 + $0x1a0] sm:$0xff] %vm33_vm1, %v2667_v38  ;;  %v2613_v33 = vadd.f32 %v11030_v26, %v14369_v34  ;;  %v2414_v37 = vpop.f32.mrb[37].mxu0 }
 0x281   :  { %2722 = vst.msk [vmem:[#allocation2 + $0x198] sm:$0xff] %vm33_vm1, %v2666_v39  ;;  %v2612_v44 = vadd.f32 %v14369_v34, %v2414_v37  ;;  %v9362_v37 = vld [vmem:[%s15831_s3 + $0x58] sm:$0xff] }
 0x282   :  { %v2669_v40 = vmax.f32 %v2613_v33, 0.0  ;;  %v9361_v33 = vld [vmem:[%s15831_s3 + $0x50] sm:$0xff] }
 0x283   :  { %v2668_v41 = vmax.f32 %v2612_v44, 0.0  ;;  %v11033_v42 = vpop.f32.mrb[38].mxu0 }
 0x284   :  { %2725 = vst.msk [vmem:[#allocation2 + $0x1b8] sm:$0xff] %vm33_vm1, %v2669_v40  ;;  %v2615_v19 = vadd.f32 %v11033_v42, %v14369_v34  ;;  %v2424_v23 = vpop.f32.mrb[39].mxu0  ;;  %v2786_v24 = vld [vmem:[#allocation2 + $0x181] ss:$2 sm:$0xff]  ;;  %v2744_v40 = vld [vmem:[#allocation2] ss:$2 sm:$0xff] }
 0x285   :  { %2724 = vst.msk [vmem:[#allocation2 + $0x1b0] sm:$0xff] %vm33_vm1, %v2668_v41  ;;  %v2614_v28 = vadd.f32 %v14369_v34, %v2424_v23  ;;  %11076 = vmatmul.mubr.msk.f32.gmra.mrb[6].mxu1 %vm33_vm1, %v2786_v24  ;;  %v2746_v23 = vld [vmem:[#allocation2 + $0x30] ss:$2 sm:$0xff]  ;;  %v9375_v24 = vld [vmem:[%s15831_s3 + $0x60] sm:$0xff] }
 0x286   :  { %v2671_v29 = vmax.f32 %v2615_v19, 0.0  ;;  %v12114_v19 = vpack.c.bf16 %v9362_v37, %v9361_v33  ;;  %v9424_v33 = vld [vmem:[%s15831_s3 + $0xc8] sm:$0xff]  ;;  %v3531_v37 = vld [vmem:[#allocation2 + $0x78] ss:$2 sm:$0xff] }
 0x287   :  { %v2670_v43 = vmax.f32 %v2614_v28, 0.0  ;;  %v11036_v45 = vpop.f32.mrb[40].mxu0  ;;  %v9376_v28 = vld [vmem:[%s15831_s3 + $0x68] sm:$0xff] }
 0x288   :  { %2727 = vst.msk [vmem:[#allocation2 + $0x1d0] sm:$0xff] %vm33_vm1, %v2671_v29  ;;  %v2617_v46 = vadd.f32 %v11036_v45, %v14369_v34  ;;  %v2434_v47 = vpop.f32.mrb[41].mxu0  ;;  %v12118_v29 = vpack.c.bf16 %v9376_v28, %v9375_v24  ;;  %v2752_v45 = vld [vmem:[#allocation2 + $0xc0] ss:$2 sm:$0xff] }
 0x289   :  { %2726 = vst.msk [vmem:[#allocation2 + $0x1c8] sm:$0xff] %vm33_vm1, %v2670_v43  ;;  %v2616_v48 = vadd.f32 %v14369_v34, %v2434_v47  ;;  %v2750_v43 = vld [vmem:[#allocation2 + $0x90] ss:$2 sm:$0xff] }
 0x28a   :  { %v2673_v49 = vmax.f32 %v2617_v46, 0.0  ;;  %v2754_v46 = vld [vmem:[#allocation2 + $0xf0] ss:$2 sm:$0xff] }
 0x28b   :  { %v2672_v50 = vmax.f32 %v2616_v48, 0.0  ;;  %v11039_v51 = vpop.f32.mrb[42].mxu0  ;;  %v2756_v47 = vld [vmem:[#allocation2 + $0x150] ss:$2 sm:$0xff]  ;;  %v2758_v48 = vld [vmem:[#allocation2 + $0x180] ss:$2 sm:$0xff] }
 0x28c   :  { %2729 = vst.msk [vmem:[#allocation2 + $0x1e8] sm:$0xff] %vm33_vm1, %v2673_v49  ;;  %v2619_v52 = vadd.f32 %v11039_v51, %v14369_v34  ;;  %v2444_v53 = vpop.f32.mrb[43].mxu0  ;;  %v2788_v54 = vld [vmem:[#allocation2 + $0x1b1] ss:$2 sm:$0xff] }
 0x28d   :  { %2728 = vst.msk [vmem:[#allocation2 + $0x1e0] sm:$0xff] %vm33_vm1, %v2672_v50  ;;  %v2618_v57 = vadd.f32 %v14369_v34, %v2444_v53  ;;  %11078 = vmatprep.mubr.msk.f32.mxu1 %vm33_vm1, %v2788_v54  ;;  %v9378_v53 = vld [vmem:[%s15831_s3 + $0x78] sm:$0xff]  ;;  %v3123_v54 = vld [vmem:[#allocation2 + $0x2] ss:$2 sm:$0xff] }
 0x28e   :  { %v2675_v58 = vmax.f32 %v2619_v52, 0.0  ;;  %v9377_v52 = vld [vmem:[%s15831_s3 + $0x70] sm:$0xff] }
 0x28f   :  { %v2674_v59 = vmax.f32 %v2618_v57, 0.0  ;;  %v11042_v60 = vpop.f32.mrb[44].mxu0  ;;  %v12122_v57 = vpack.c.bf16 %v9378_v53, %v9377_v52  ;;  %v3735_v52 = vld [vmem:[#allocation2 + $0xa9] ss:$2 sm:$0xff]  ;;  %v3737_v53 = vld [vmem:[#allocation2 + $0xd9] ss:$2 sm:$0xff] }
 0x290   :  { %2731 = vst.msk [vmem:[#allocation2 + $0x200] sm:$0xff] %vm33_vm1, %v2675_v58  ;;  %v2621_v61 = vadd.f32 %v11042_v60, %v14369_v34  ;;  %v2454_v62 = vpop.f32.mrb[45].mxu0  ;;  %v3125_v58 = vld [vmem:[#allocation2 + $0x32] ss:$2 sm:$0xff]  ;;  %v9392_v60 = vld [vmem:[%s15831_s3 + $0x88] sm:$0xff] }
 0x291   :  { %2730 = vst.msk [vmem:[#allocation2 + $0x1f8] sm:$0xff] %vm33_vm1, %v2674_v59  ;;  %v2620_v63 = vadd.f32 %v14369_v34, %v2454_v62  ;;  %v9391_v59 = vld [vmem:[%s15831_s3 + $0x80] sm:$0xff]  ;;  %v3543_v24 = vld [vmem:[#allocation2 + $0x1c8] ss:$2 sm:$0xff] }
 0x292   :  { %v2677_v0 = vmax.f32 %v2621_v61, 0.0  ;;  %v3127_v61 = vld [vmem:[#allocation2 + $0x62] ss:$2 sm:$0xff]  ;;  %v12126_v62 = vpack.c.bf16 %v9392_v60, %v9391_v59  ;;  %v3745_v59 = vld [vmem:[#allocation2 + $0x1c9] ss:$2 sm:$0xff] }
 0x293   :  { %v2676_v1 = vmax.f32 %v2620_v63, 0.0  ;;  %v11045_v4 = vpop.f32.mrb[46].mxu0  ;;  %v3129_v63 = vld [vmem:[#allocation2 + $0x92] ss:$2 sm:$0xff] }
 0x294   :  { %2733 = vst.msk [vmem:[#allocation2 + $0x218] sm:$0xff] %vm33_vm1, %v2677_v0  ;;  %v2623_v5 = vadd.f32 %v11045_v4, %v14369_v34  ;;  %v2464_v6 = vpop.f32.mrb[47].mxu0  ;;  %v2790_v7 = vld [vmem:[#allocation2 + $0x1e1] ss:$2 sm:$0xff]  ;;  %v2762_v49 = vld [vmem:[#allocation2 + $0x1e0] ss:$2 sm:$0xff] }
 0x295   :  { %2732 = vst.msk [vmem:[#allocation2 + $0x210] sm:$0xff] %vm33_vm1, %v2676_v1  ;;  %v2622_v8 = vadd.f32 %v14369_v34, %v2464_v6  ;;  %11079 = vmatmul.mubr.msk.f32.gmra.mrb[8].mxu1 %vm33_vm1, %v2790_v7  ;;  %v3131_v0 = vld [vmem:[#allocation2 + $0xc2] ss:$2 sm:$0xff]  ;;  %v3133_v1 = vld [vmem:[#allocation2 + $0xf2] ss:$2 sm:$0xff] }
 0x296   :  { %v2679_v9 = vmax.f32 %v2623_v5, 0.0  ;;  %v3135_v4 = vld [vmem:[#allocation2 + $0x152] ss:$2 sm:$0xff]  ;;  %v3137_v5 = vld [vmem:[#allocation2 + $0x182] ss:$2 sm:$0xff] }
 0x297   :  { %v2678_v10 = vmax.f32 %v2622_v8, 0.0  ;;  %v11048_v11 = vpop.f32.mrb[48].mxu0  ;;  %v3139_v6 = vld [vmem:[#allocation2 + $0x1b2] ss:$2 sm:$0xff]  ;;  %v3141_v7 = vld [vmem:[#allocation2 + $0x1e2] ss:$2 sm:$0xff] }
 0x298   :  { %2735 = vst.msk [vmem:[#allocation2 + $0x230] sm:$0xff] %vm33_vm1, %v2679_v9  ;;  %v2625_v12 = vadd.f32 %v11048_v11, %v14369_v34  ;;  %v2474_v13 = vpop.f32.mrb[49].mxu0  ;;  %v9394_v11 = vld [vmem:[%s15831_s3 + $0x98] sm:$0xff] }
 0x299   :  { %2734 = vst.msk [vmem:[#allocation2 + $0x228] sm:$0xff] %vm33_vm1, %v2678_v10  ;;  %v2624_v14 = vadd.f32 %v14369_v34, %v2474_v13  ;;  %v9393_v10 = vld [vmem:[%s15831_s3 + $0x90] sm:$0xff]  ;;  %v3545_v28 = vld [vmem:[#allocation2 + $0x1f8] ss:$2 sm:$0xff]  ;;  %v3747_v60 = vld [vmem:[#allocation2 + $0x1f9] ss:$2 sm:$0xff] }
 0x29a   :  { %v2681_v15 = vmax.f32 %v2625_v12, 0.0  ;;  %v3325_v12 = vld [vmem:[#allocation2 + $0x3] ss:$2 sm:$0xff]  ;;  %v12130_v13 = vpack.c.bf16 %v9394_v11, %v9393_v10  ;;  %v3937_v10 = vld [vmem:[#allocation2 + $0xaa] ss:$2 sm:$0xff] }
 0x29b   :  { %v2680_v16 = vmax.f32 %v2624_v14, 0.0  ;;  %v11051_v17 = vpop.f32.mrb[50].mxu0  ;;  %v3327_v14 = vld [vmem:[#allocation2 + $0x33] ss:$2 sm:$0xff]  ;;  %v3939_v11 = vld [vmem:[#allocation2 + $0xda] ss:$2 sm:$0xff] }
 0x29c   :  { %2737 = vst.msk [vmem:[#allocation2 + $0x248] sm:$0xff] %vm33_vm1, %v2681_v15  ;;  %v2627_v32 = vadd.f32 %v11051_v17, %v14369_v34  ;;  %v2484_v55 = vpop.f32.mrb[51].mxu0  ;;  %v2792_v21 = vld [vmem:[#allocation2 + $0x211] ss:$2 sm:$0xff]  ;;  %v2764_v50 = vld [vmem:[#allocation2 + $0x210] ss:$2 sm:$0xff] }
 0x29d   :  { %2736 = vst.msk [vmem:[#allocation2 + $0x240] sm:$0xff] %vm33_vm1, %v2680_v16  ;;  %v2626_v22 = vadd.f32 %v14369_v34, %v2484_v55  ;;  %11081 = vmatprep.mubr.msk.f32.mxu1 %vm33_vm1, %v2792_v21  ;;  %v3143_v8 = vld [vmem:[#allocation2 + $0x212] ss:$2 sm:$0xff]  ;;  %v9408_v16 = vld [vmem:[%s15831_s3 + $0xa8] sm:$0xff]  ;;  %v3331_v55 = vld [vmem:[#allocation2 + $0x93] ss:$2 sm:$0xff] }
 0x29e   :  { %v2683_v27 = vmax.f32 %v2627_v32, 0.0  ;;  %v9407_v15 = vld [vmem:[%s15831_s3 + $0xa0] sm:$0xff] }
 0x29f   :  { %v2682_v20 = vmax.f32 %v2626_v22, 0.0  ;;  %v11054_v35 = vpop.f32.mrb[52].mxu0  ;;  %v3329_v17 = vld [vmem:[#allocation2 + $0x63] ss:$2 sm:$0xff]  ;;  %v12134_v32 = vpack.c.bf16 %v9408_v16, %v9407_v15  ;;  %v3335_v22 = vld [vmem:[#allocation2 + $0xf3] ss:$2 sm:$0xff] }
 0x2a0   :  { %2739 = vst.msk [vmem:[#allocation2 + $0x260] sm:$0xff] %vm33_vm1, %v2683_v27  ;;  %v2629_v56 = vadd.f32 %v11054_v35, %v14369_v34  ;;  %v2494_v30 = vpop.f32.mrb[53].mxu0  ;;  %v3333_v21 = vld [vmem:[#allocation2 + $0xc3] ss:$2 sm:$0xff]  ;;  %v3337_v27 = vld [vmem:[#allocation2 + $0x153] ss:$2 sm:$0xff] }
 0x2a1   :  { %2738 = vst.msk [vmem:[#allocation2 + $0x258] sm:$0xff] %vm33_vm1, %v2682_v20  ;;  %v2628_v25 = vadd.f32 %v14369_v34, %v2494_v30  ;;  %v3339_v20 = vld [vmem:[#allocation2 + $0x183] ss:$2 sm:$0xff]  ;;  %v3341_v35 = vld [vmem:[#allocation2 + $0x1b3] ss:$2 sm:$0xff] }
 0x2a2   :  { %v2685_v31 = vmax.f32 %v2629_v56, 0.0  ;;  %v3343_v56 = vld [vmem:[#allocation2 + $0x1e3] ss:$2 sm:$0xff]  ;;  %v3345_v30 = vld [vmem:[#allocation2 + $0x213] ss:$2 sm:$0xff] }
 0x2a3   :  { %v2684_v3 = vmax.f32 %v2628_v25, 0.0  ;;  %v11057_v2 = vpop.f32.mrb[54].mxu0  ;;  %v3947_v15 = vld [vmem:[#allocation2 + $0x1ca] ss:$2 sm:$0xff]  ;;  %v3949_v16 = vld [vmem:[#allocation2 + $0x1fa] ss:$2 sm:$0xff] }
 0x2a4   :  { %2741 = vst.msk [vmem:[#allocation2 + $0x278] sm:$0xff] %vm33_vm1, %v2685_v31  ;;  %v2631_v38 = vadd.f32 %v11057_v2, %v14369_v34  ;;  %v2504_v39 = vpop.f32.mrb[55].mxu0  ;;  %v2794_v26 = vld [vmem:[#allocation2 + $0x241] ss:$2 sm:$0xff]  ;;  %v2766_v51 = vld [vmem:[#allocation2 + $0x240] ss:$2 sm:$0xff] }
 0x2a5   :  { %2740 = vst.msk [vmem:[#allocation2 + $0x270] sm:$0xff] %vm33_vm1, %v2684_v3  ;;  %v2630_v44 = vadd.f32 %v14369_v34, %v2504_v39  ;;  %11082 = vmatmul.mubr.msk.f32.gmra.mrb[10].mxu1 %vm33_vm1, %v2794_v26  ;;  %v2748_v34 = vld [vmem:[#allocation2 + $0x60] ss:$2 sm:$0xff]  ;;  %v3347_v25 = vld [vmem:[#allocation2 + $0x243] ss:$2 sm:$0xff]  ;;  %v9410_v3 = vld [vmem:[%s15831_s3 + $0xb8] sm:$0xff] }
 0x2a6   :  { %v2687_v41 = vmax.f32 %v2631_v38, 0.0  ;;  %11092 = vmatprep.mubr.msk.f32.mxu1 %vm33_vm1, %v2744_v40  ;;  %v3145_v9 = vld [vmem:[#allocation2 + $0x242] ss:$2 sm:$0xff] }
 0x2a7   :  { %v2686_v42 = vmax.f32 %v2630_v44, 0.0  ;;  %v9409_v31 = vld [vmem:[%s15831_s3 + $0xb0] sm:$0xff]  ;;  %v3527_v2 = vld [vmem:[#allocation2 + $0x18] ss:$2 sm:$0xff] }
 0x2a8   :  { %2743 = vst.msk [vmem:[#allocation2 + $0x290] sm:$0xff] %vm33_vm1, %v2687_v41  ;;  %v12138_v38 = vpack.c.bf16 %v9410_v3, %v9409_v31  ;;  %v3529_v39 = vld [vmem:[#allocation2 + $0x48] ss:$2 sm:$0xff]  ;;  %v9423_v26 = vld [vmem:[%s15831_s3 + $0xc0] sm:$0xff]  ;;  %v4139_v31 = vld [vmem:[#allocation2 + $0xab] ss:$2 sm:$0xff] }
 0x2a9   :  { %2742 = vst.msk [vmem:[#allocation2 + $0x288] sm:$0xff] %vm33_vm1, %v2686_v42  ;;  %11093 = vmatmul.mubr.msk.f32.vlgmr.msra.gmra.mrb[0].mxu1 %vm33_vm1, %v2746_v23  ;;  %v12142_v44 = vpack.c.bf16 %v9424_v33, %v9423_v26  ;;  %v3533_v40 = vld [vmem:[#allocation2 + $0xa8] ss:$2 sm:$0xff]  ;;  %v3535_v41 = vld [vmem:[#allocation2 + $0xd8] ss:$2 sm:$0xff] }
 0x2aa   :  { %11095 = vmatprep.mubr.msk.f32.mxu1 %vm33_vm1, %v2748_v34  ;;  %12113 = vmatpush3.bf16.msra.mxu1 %v14407_v18  ;;  %v2760_v18 = vld [vmem:[#allocation2 + $0x1b0] ss:$2 sm:$0xff]  ;;  %v4141_v3 = vld [vmem:[#allocation2 + $0xdb] ss:$2 sm:$0xff]  ;;  %v4149_v26 = vld [vmem:[#allocation2 + $0x1cb] ss:$2 sm:$0xff] }
 0x2ab   :  { %12115 = vmatprep.subr.bf16.mxu1 %v12114_v19  ;;  %v3537_v42 = vld [vmem:[#allocation2 + $0x108] ss:$2 sm:$0xff]  ;;  %v3541_v23 = vld [vmem:[#allocation2 + $0x198] ss:$2 sm:$0xff]  ;;  %v4151_v33 = vld [vmem:[#allocation2 + $0x1fb] ss:$2 sm:$0xff] }
 0x2ac   :  { %v3547_v34 = vld [vmem:[#allocation2 + $0x228] ss:$2 sm:$0xff] }
 0x2ad   :  { %11096 = vmatmul.mubr.msk.f32.gmra.mrb[2].mxu1 %vm33_vm1, %v2750_v43  ;;  %v9425_v43 = vld [vmem:[%s15831_s3 + $0xd0] sm:$0xff] }
 0x2ae   :  { %11098 = vmatprep.mubr.msk.f32.mxu1 %vm33_vm1, %v2752_v45  ;;  %12117 = vmatpush3.bf16.msra.mxu1 %v12114_v19  ;;  %v3539_v19 = vld [vmem:[#allocation2 + $0x168] ss:$2 sm:$0xff]  ;;  %v9426_v45 = vld [vmem:[%s15831_s3 + $0xd8] sm:$0xff] }
 0x2af   :  { %12119 = vmatprep.subr.bf16.mxu1 %v12118_v29 }
 0x2b1   :  { %11099 = vmatmul.mubr.msk.f32.gmra.mrb[4].mxu1 %vm33_vm1, %v2754_v46  ;;  %v3729_v46 = vld [vmem:[#allocation2 + $0x19] ss:$2 sm:$0xff] }
 0x2b2   :  { %11101 = vmatprep.mubr.msk.f32.mxu1 %vm33_vm1, %v2756_v47  ;;  %v12146_v47 = vpack.c.bf16 %v9426_v45, %v9425_v43  ;;  %v4341_v43 = vld [vmem:[#allocation2 + $0xc0] ss:$2 sm:$0xff]  ;;  %v4343_v45 = vld [vmem:[#allocation2 + $0xf0] ss:$2 sm:$0xff] }
 0x2b5   :  { %11102 = vmatmul.mubr.msk.f32.gmra.mrb[6].mxu1 %vm33_vm1, %v2758_v48  ;;  %v3731_v48 = vld [vmem:[#allocation2 + $0x49] ss:$2 sm:$0xff] }
 0x2b6   :  { %11104 = vmatprep.mubr.msk.f32.mxu1 %vm33_vm1, %v2760_v18  ;;  %v9439_v18 = vld [vmem:[%s15831_s3 + $0xe0] sm:$0xff] }
 0x2b9   :  { %11105 = vmatmul.mubr.msk.f32.gmra.mrb[8].mxu1 %vm33_vm1, %v2762_v49  ;;  %v9440_v49 = vld [vmem:[%s15831_s3 + $0xe8] sm:$0xff] }
 0x2ba   :  { %11107 = vmatprep.mubr.msk.f32.mxu1 %vm33_vm1, %v2764_v50  ;;  %v3733_v50 = vld [vmem:[#allocation2 + $0x79] ss:$2 sm:$0xff] }
 0x2bd   :  { %11108 = vmatmul.mubr.msk.f32.gmra.mrb[10].mxu1 %vm33_vm1, %v2766_v51  ;;  %v12150_v51 = vpack.c.bf16 %v9440_v49, %v9439_v18  ;;  %v4351_v18 = vld [vmem:[#allocation2 + $0x1e0] ss:$2 sm:$0xff]  ;;  %v4353_v49 = vld [vmem:[#allocation2 + $0x210] ss:$2 sm:$0xff] }
 0x2be   :  { %11118 = vmatprep.mubr.msk.f32.mxu1 %vm33_vm1, %v3123_v54  ;;  %v3739_v54 = vld [vmem:[#allocation2 + $0x109] ss:$2 sm:$0xff] }
 0x2c1   :  { %11119 = vmatmul.mubr.msk.f32.vlgmr.msra.gmra.mrb[0].mxu1 %vm33_vm1, %v3125_v58  ;;  %v3743_v58 = vld [vmem:[#allocation2 + $0x199] ss:$2 sm:$0xff] }
 0x2c2   :  { %11121 = vmatprep.mubr.msk.f32.mxu1 %vm33_vm1, %v3127_v61  ;;  %12121 = vmatpush3.bf16.msra.mxu1 %v12118_v29  ;;  %v3549_v29 = vld [vmem:[#allocation2 + $0x258] ss:$2 sm:$0xff]  ;;  %v3749_v61 = vld [vmem:[#allocation2 + $0x229] ss:$2 sm:$0xff] }
 0x2c3   :  { %12123 = vmatprep.subr.bf16.mxu1 %v12122_v57 }
 0x2c5   :  { %11122 = vmatmul.mubr.msk.f32.gmra.mrb[2].mxu1 %vm33_vm1, %v3129_v63  ;;  %v9441_v63 = vld [vmem:[%s15831_s3 + $0xf0] sm:$0xff] }
 0x2c6   :  { %11124 = vmatprep.mubr.msk.f32.mxu1 %vm33_vm1, %v3131_v0  ;;  %12125 = vmatpush3.bf16.msra.mxu1 %v12122_v57  ;;  %v3741_v57 = vld [vmem:[#allocation2 + $0x169] ss:$2 sm:$0xff]  ;;  %v9442_v0 = vld [vmem:[%s15831_s3 + $0xf8] sm:$0xff] }
 0x2c7   :  { %12127 = vmatprep.subr.bf16.mxu1 %v12126_v62 }
 0x2c9   :  { %11125 = vmatmul.mubr.msk.f32.gmra.mrb[4].mxu1 %vm33_vm1, %v3133_v1  ;;  %v3931_v1 = vld [vmem:[#allocation2 + $0x1a] ss:$2 sm:$0xff] }
 0x2ca   :  { %11127 = vmatprep.mubr.msk.f32.mxu1 %vm33_vm1, %v3135_v4  ;;  %v12154_v4 = vpack.c.bf16 %v9442_v0, %v9441_v63  ;;  %v4543_v63 = vld [vmem:[#allocation2 + $0xc1] ss:$2 sm:$0xff]  ;;  %v4545_v0 = vld [vmem:[#allocation2 + $0xf1] ss:$2 sm:$0xff] }
 0x2cd   :  { %11128 = vmatmul.mubr.msk.f32.gmra.mrb[6].mxu1 %vm33_vm1, %v3137_v5  ;;  %v3933_v5 = vld [vmem:[#allocation2 + $0x4a] ss:$2 sm:$0xff] }
 0x2ce   :  { %11130 = vmatprep.mubr.msk.f32.mxu1 %vm33_vm1, %v3139_v6  ;;  %v9455_v6 = vld [vmem:[%s15831_s3 + $0x100] sm:$0xff] }
 0x2d1   :  { %11131 = vmatmul.mubr.msk.f32.gmra.mrb[8].mxu1 %vm33_vm1, %v3141_v7  ;;  %v9456_v7 = vld [vmem:[%s15831_s3 + $0x108] sm:$0xff] }
 0x2d2   :  { %11133 = vmatprep.mubr.msk.f32.mxu1 %vm33_vm1, %v3143_v8  ;;  %v3935_v8 = vld [vmem:[#allocation2 + $0x7a] ss:$2 sm:$0xff] }
 0x2d5   :  { %11134 = vmatmul.mubr.msk.f32.gmra.mrb[10].mxu1 %vm33_vm1, %v3145_v9  ;;  %v12158_v9 = vpack.c.bf16 %v9456_v7, %v9455_v6  ;;  %v4553_v6 = vld [vmem:[#allocation2 + $0x1e1] ss:$2 sm:$0xff]  ;;  %v4555_v7 = vld [vmem:[#allocation2 + $0x211] ss:$2 sm:$0xff] }
 0x2d6   :  { %11144 = vmatprep.mubr.msk.f32.mxu1 %vm33_vm1, %v3325_v12  ;;  %v3941_v12 = vld [vmem:[#allocation2 + $0x10a] ss:$2 sm:$0xff] }
 0x2d9   :  { %11145 = vmatmul.mubr.msk.f32.vlgmr.msra.gmra.mrb[0].mxu1 %vm33_vm1, %v3327_v14  ;;  %v3945_v14 = vld [vmem:[#allocation2 + $0x19a] ss:$2 sm:$0xff] }
 0x2da   :  { %11147 = vmatprep.mubr.msk.f32.mxu1 %vm33_vm1, %v3329_v17  ;;  %12129 = vmatpush3.bf16.msra.mxu1 %v12126_v62  ;;  %v3751_v62 = vld [vmem:[#allocation2 + $0x259] ss:$2 sm:$0xff]  ;;  %v3951_v17 = vld [vmem:[#allocation2 + $0x22a] ss:$2 sm:$0xff] }
 0x2db   :  { %12131 = vmatprep.subr.bf16.mxu1 %v12130_v13 }
 0x2dd   :  { %11148 = vmatmul.mubr.msk.f32.gmra.mrb[2].mxu1 %vm33_vm1, %v3331_v55  ;;  %v9457_v55 = vld [vmem:[%s15831_s3 + $0x110] sm:$0xff] }
 0x2de   :  { %11150 = vmatprep.mubr.msk.f32.mxu1 %vm33_vm1, %v3333_v21  ;;  %12133 = vmatpush3.bf16.msra.mxu1 %v12130_v13  ;;  %v3943_v13 = vld [vmem:[#allocation2 + $0x16a] ss:$2 sm:$0xff] }
 0x2df   :  { %12135 = vmatprep.subr.bf16.mxu1 %v12134_v32  ;;  %v9458_v21 = vld [vmem:[%s15831_s3 + $0x118] sm:$0xff] }
 0x2e1   :  { %11151 = vmatmul.mubr.msk.f32.gmra.mrb[4].mxu1 %vm33_vm1, %v3335_v22  ;;  %v4133_v22 = vld [vmem:[#allocation2 + $0x1b] ss:$2 sm:$0xff] }
 0x2e2   :  { %11153 = vmatprep.mubr.msk.f32.mxu1 %vm33_vm1, %v3337_v27  ;;  %v12162_v27 = vpack.c.bf16 %v9458_v21, %v9457_v55  ;;  %v4745_v55 = vld [vmem:[#allocation2 + $0xc2] ss:$2 sm:$0xff]  ;;  %v4747_v21 = vld [vmem:[#allocation2 + $0xf2] ss:$2 sm:$0xff] }
 0x2e5   :  { %11154 = vmatmul.mubr.msk.f32.gmra.mrb[6].mxu1 %vm33_vm1, %v3339_v20  ;;  %v4135_v20 = vld [vmem:[#allocation2 + $0x4b] ss:$2 sm:$0xff] }
 0x2e6   :  { %11156 = vmatprep.mubr.msk.f32.mxu1 %vm33_vm1, %v3341_v35  ;;  %v9471_v35 = vld [vmem:[%s15831_s3 + $0x120] sm:$0xff] }
 0x2e9   :  { %11157 = vmatmul.mubr.msk.f32.gmra.mrb[8].mxu1 %vm33_vm1, %v3343_v56  ;;  %v9472_v56 = vld [vmem:[%s15831_s3 + $0x128] sm:$0xff] }
 0x2ea   :  { %11159 = vmatprep.mubr.msk.f32.mxu1 %vm33_vm1, %v3345_v30  ;;  %v4137_v30 = vld [vmem:[#allocation2 + $0x7b] ss:$2 sm:$0xff] }
 0x2ed   :  { %11160 = vmatmul.mubr.msk.f32.gmra.mrb[10].mxu1 %vm33_vm1, %v3347_v25  ;;  %v12166_v25 = vpack.c.bf16 %v9472_v56, %v9471_v35  ;;  %v4755_v35 = vld [vmem:[#allocation2 + $0x1e2] ss:$2 sm:$0xff]  ;;  %v4757_v56 = vld [vmem:[#allocation2 + $0x212] ss:$2 sm:$0xff] }
 0x2ee   :  { %11170 = vmatprep.mubr.msk.f32.mxu1 %vm33_vm1, %v3527_v2  ;;  %v4143_v2 = vld [vmem:[#allocation2 + $0x10b] ss:$2 sm:$0xff] }
 0x2f1   :  { %11171 = vmatmul.mubr.msk.f32.vlgmr.msra.gmra.mrb[0].mxu1 %vm33_vm1, %v3529_v39  ;;  %v4147_v39 = vld [vmem:[#allocation2 + $0x19b] ss:$2 sm:$0xff] }
 0x2f2   :  { %11173 = vmatprep.mubr.msk.f32.mxu1 %vm33_vm1, %v3531_v37  ;;  %12137 = vmatpush3.bf16.msra.mxu1 %v12134_v32  ;;  %v3953_v32 = vld [vmem:[#allocation2 + $0x25a] ss:$2 sm:$0xff]  ;;  %v4153_v37 = vld [vmem:[#allocation2 + $0x22b] ss:$2 sm:$0xff] }
 0x2f3   :  { %12139 = vmatprep.subr.bf16.mxu1 %v12138_v38 }
 0x2f5   :  { %11174 = vmatmul.mubr.msk.f32.gmra.mrb[2].mxu1 %vm33_vm1, %v3533_v40  ;;  %v9473_v40 = vld [vmem:[%s15831_s3 + $0x130] sm:$0xff] }
 0x2f6   :  { %11176 = vmatprep.mubr.msk.f32.mxu1 %vm33_vm1, %v3535_v41  ;;  %12141 = vmatpush3.bf16.msra.mxu1 %v12138_v38  ;;  %v4145_v38 = vld [vmem:[#allocation2 + $0x16b] ss:$2 sm:$0xff] }
 0x2f7   :  { %12143 = vmatprep.subr.bf16.mxu1 %v12142_v44  ;;  %v9474_v41 = vld [vmem:[%s15831_s3 + $0x138] sm:$0xff] }
 0x2f9   :  { %11177 = vmatmul.mubr.msk.f32.gmra.mrb[4].mxu1 %vm33_vm1, %v3537_v42  ;;  %v4335_v42 = vld [vmem:[#allocation2 + $0x30] ss:$2 sm:$0xff] }
 0x2fa   :  { %11179 = vmatprep.mubr.msk.f32.mxu1 %vm33_vm1, %v3539_v19  ;;  %v12170_v19 = vpack.c.bf16 %v9474_v41, %v9473_v40  ;;  %v4947_v40 = vld [vmem:[#allocation2 + $0xc3] ss:$2 sm:$0xff]  ;;  %v4949_v41 = vld [vmem:[#allocation2 + $0xf3] ss:$2 sm:$0xff] }
 0x2fd   :  { %11180 = vmatmul.mubr.msk.f32.gmra.mrb[6].mxu1 %vm33_vm1, %v3541_v23  ;;  %v4337_v23 = vld [vmem:[#allocation2 + $0x60] ss:$2 sm:$0xff] }
 0x2fe   :  { %11182 = vmatprep.mubr.msk.f32.mxu1 %vm33_vm1, %v3543_v24  ;;  %v9487_v24 = vld [vmem:[%s15831_s3 + $0x140] sm:$0xff] }
 0x301   :  { %11183 = vmatmul.mubr.msk.f32.gmra.mrb[8].mxu1 %vm33_vm1, %v3545_v28  ;;  %v9488_v28 = vld [vmem:[%s15831_s3 + $0x148] sm:$0xff] }
 0x302   :  { %11185 = vmatprep.mubr.msk.f32.mxu1 %vm33_vm1, %v3547_v34  ;;  %v4339_v34 = vld [vmem:[#allocation2 + $0x90] ss:$2 sm:$0xff] }
 0x305   :  { %11186 = vmatmul.mubr.msk.f32.gmra.mrb[10].mxu1 %vm33_vm1, %v3549_v29  ;;  %v12174_v29 = vpack.c.bf16 %v9488_v28, %v9487_v24  ;;  %v4957_v24 = vld [vmem:[#allocation2 + $0x1e3] ss:$2 sm:$0xff]  ;;  %v4959_v28 = vld [vmem:[#allocation2 + $0x213] ss:$2 sm:$0xff] }
 0x306   :  { %11196 = vmatprep.mubr.msk.f32.mxu1 %vm33_vm1, %v3729_v46  ;;  %v4345_v46 = vld [vmem:[#allocation2 + $0x120] ss:$2 sm:$0xff] }
 0x309   :  { %11197 = vmatmul.mubr.msk.f32.vlgmr.msra.gmra.mrb[0].mxu1 %vm33_vm1, %v3731_v48  ;;  %v4349_v48 = vld [vmem:[#allocation2 + $0x1b0] ss:$2 sm:$0xff] }
 0x30a   :  { %11199 = vmatprep.mubr.msk.f32.mxu1 %vm33_vm1, %v3733_v50  ;;  %12145 = vmatpush3.bf16.msra.mxu1 %v12142_v44  ;;  %v4155_v44 = vld [vmem:[#allocation2 + $0x25b] ss:$2 sm:$0xff]  ;;  %v4355_v50 = vld [vmem:[#allocation2 + $0x240] ss:$2 sm:$0xff] }
 0x30b   :  { %12147 = vmatprep.subr.bf16.mxu1 %v12146_v47 }
 0x30d   :  { %11200 = vmatmul.mubr.msk.f32.gmra.mrb[2].mxu1 %vm33_vm1, %v3735_v52  ;;  %v9489_v52 = vld [vmem:[%s15831_s3 + $0x150] sm:$0xff] }
 0x30e   :  { %11202 = vmatprep.mubr.msk.f32.mxu1 %vm33_vm1, %v3737_v53  ;;  %12149 = vmatpush3.bf16.msra.mxu1 %v12146_v47  ;;  %v4347_v47 = vld [vmem:[#allocation2 + $0x180] ss:$2 sm:$0xff]  ;;  %v9490_v53 = vld [vmem:[%s15831_s3 + $0x158] sm:$0xff] }
 0x30f   :  { %12151 = vmatprep.subr.bf16.mxu1 %v12150_v51 }
 0x311   :  { %11203 = vmatmul.mubr.msk.f32.gmra.mrb[4].mxu1 %vm33_vm1, %v3739_v54  ;;  %v4537_v54 = vld [vmem:[#allocation2 + $0x31] ss:$2 sm:$0xff] }
 0x312   :  { %11205 = vmatprep.mubr.msk.f32.mxu1 %vm33_vm1, %v3741_v57  ;;  %v12178_v57 = vpack.c.bf16 %v9490_v53, %v9489_v52  ;;  %v5149_v52 = vld [vmem:[#allocation2 + $0xd8] ss:$2 sm:$0xff]  ;;  %v5151_v53 = vld [vmem:[#allocation2 + $0x108] ss:$2 sm:$0xff] }
 0x315   :  { %11206 = vmatmul.mubr.msk.f32.gmra.mrb[6].mxu1 %vm33_vm1, %v3743_v58  ;;  %v4539_v58 = vld [vmem:[#allocation2 + $0x61] ss:$2 sm:$0xff] }
 0x316   :  { %11208 = vmatprep.mubr.msk.f32.mxu1 %vm33_vm1, %v3745_v59  ;;  %v9503_v59 = vld [vmem:[%s15831_s3 + $0x160] sm:$0xff] }
 0x319   :  { %11209 = vmatmul.mubr.msk.f32.gmra.mrb[8].mxu1 %vm33_vm1, %v3747_v60  ;;  %v9504_v60 = vld [vmem:[%s15831_s3 + $0x168] sm:$0xff] }
 0x31a   :  { %11211 = vmatprep.mubr.msk.f32.mxu1 %vm33_vm1, %v3749_v61  ;;  %v4541_v61 = vld [vmem:[#allocation2 + $0x91] ss:$2 sm:$0xff] }
 0x31d   :  { %11212 = vmatmul.mubr.msk.f32.gmra.mrb[10].mxu1 %vm33_vm1, %v3751_v62  ;;  %v12182_v62 = vpack.c.bf16 %v9504_v60, %v9503_v59  ;;  %v5159_v59 = vld [vmem:[#allocation2 + $0x1f8] ss:$2 sm:$0xff]  ;;  %v5161_v60 = vld [vmem:[#allocation2 + $0x228] ss:$2 sm:$0xff] }
 0x31e   :  { %11222 = vmatprep.mubr.msk.f32.mxu1 %vm33_vm1, %v3931_v1  ;;  %v4547_v1 = vld [vmem:[#allocation2 + $0x121] ss:$2 sm:$0xff] }
 0x321   :  { %11223 = vmatmul.mubr.msk.f32.vlgmr.msra.gmra.mrb[0].mxu1 %vm33_vm1, %v3933_v5  ;;  %v4551_v5 = vld [vmem:[#allocation2 + $0x1b1] ss:$2 sm:$0xff] }
 0x322   :  { %11225 = vmatprep.mubr.msk.f32.mxu1 %vm33_vm1, %v3935_v8  ;;  %12153 = vmatpush3.bf16.msra.mxu1 %v12150_v51  ;;  %v4357_v51 = vld [vmem:[#allocation2 + $0x270] ss:$2 sm:$0xff]  ;;  %v4557_v8 = vld [vmem:[#allocation2 + $0x241] ss:$2 sm:$0xff] }
 0x323   :  { %12155 = vmatprep.subr.bf16.mxu1 %v12154_v4 }
 0x325   :  { %11226 = vmatmul.mubr.msk.f32.gmra.mrb[2].mxu1 %vm33_vm1, %v3937_v10  ;;  %v9505_v10 = vld [vmem:[%s15831_s3 + $0x170] sm:$0xff] }
 0x326   :  { %11228 = vmatprep.mubr.msk.f32.mxu1 %vm33_vm1, %v3939_v11  ;;  %12157 = vmatpush3.bf16.msra.mxu1 %v12154_v4  ;;  %v4549_v4 = vld [vmem:[#allocation2 + $0x181] ss:$2 sm:$0xff]  ;;  %v9506_v11 = vld [vmem:[%s15831_s3 + $0x178] sm:$0xff] }
 0x327   :  { %12159 = vmatprep.subr.bf16.mxu1 %v12158_v9 }
 0x329   :  { %11229 = vmatmul.mubr.msk.f32.gmra.mrb[4].mxu1 %vm33_vm1, %v3941_v12  ;;  %v4739_v12 = vld [vmem:[#allocation2 + $0x32] ss:$2 sm:$0xff] }
 0x32a   :  { %11231 = vmatprep.mubr.msk.f32.mxu1 %vm33_vm1, %v3943_v13  ;;  %v12186_v13 = vpack.c.bf16 %v9506_v11, %v9505_v10  ;;  %v5351_v10 = vld [vmem:[#allocation2 + $0xd9] ss:$2 sm:$0xff]  ;;  %v5353_v11 = vld [vmem:[#allocation2 + $0x109] ss:$2 sm:$0xff] }
 0x32d   :  { %11232 = vmatmul.mubr.msk.f32.gmra.mrb[6].mxu1 %vm33_vm1, %v3945_v14  ;;  %v4741_v14 = vld [vmem:[#allocation2 + $0x62] ss:$2 sm:$0xff] }
 0x32e   :  { %11234 = vmatprep.mubr.msk.f32.mxu1 %vm33_vm1, %v3947_v15  ;;  %v9519_v15 = vld [vmem:[%s15831_s3 + $0x180] sm:$0xff] }
 0x331   :  { %11235 = vmatmul.mubr.msk.f32.gmra.mrb[8].mxu1 %vm33_vm1, %v3949_v16  ;;  %v9520_v16 = vld [vmem:[%s15831_s3 + $0x188] sm:$0xff] }
 0x332   :  { %11237 = vmatprep.mubr.msk.f32.mxu1 %vm33_vm1, %v3951_v17  ;;  %v4743_v17 = vld [vmem:[#allocation2 + $0x92] ss:$2 sm:$0xff] }
 0x335   :  { %11238 = vmatmul.mubr.msk.f32.gmra.mrb[10].mxu1 %vm33_vm1, %v3953_v32  ;;  %v12190_v32 = vpack.c.bf16 %v9520_v16, %v9519_v15  ;;  %v5361_v15 = vld [vmem:[#allocation2 + $0x1f9] ss:$2 sm:$0xff]  ;;  %v5363_v16 = vld [vmem:[#allocation2 + $0x229] ss:$2 sm:$0xff] }
 0x336   :  { %11248 = vmatprep.mubr.msk.f32.mxu1 %vm33_vm1, %v4133_v22  ;;  %v4749_v22 = vld [vmem:[#allocation2 + $0x122] ss:$2 sm:$0xff] }
 0x339   :  { %11249 = vmatmul.mubr.msk.f32.vlgmr.msra.gmra.mrb[0].mxu1 %vm33_vm1, %v4135_v20  ;;  %v4753_v20 = vld [vmem:[#allocation2 + $0x1b2] ss:$2 sm:$0xff] }
 0x33a   :  { %11251 = vmatprep.mubr.msk.f32.mxu1 %vm33_vm1, %v4137_v30  ;;  %12161 = vmatpush3.bf16.msra.mxu1 %v12158_v9  ;;  %v4559_v9 = vld [vmem:[#allocation2 + $0x271] ss:$2 sm:$0xff]  ;;  %v4759_v30 = vld [vmem:[#allocation2 + $0x242] ss:$2 sm:$0xff] }
 0x33b   :  { %12163 = vmatprep.subr.bf16.mxu1 %v12162_v27 }
 0x33d   :  { %11252 = vmatmul.mubr.msk.f32.gmra.mrb[2].mxu1 %vm33_vm1, %v4139_v31  ;;  %v9521_v31 = vld [vmem:[%s15831_s3 + $0x190] sm:$0xff] }
 0x33e   :  { %11254 = vmatprep.mubr.msk.f32.mxu1 %vm33_vm1, %v4141_v3  ;;  %12165 = vmatpush3.bf16.msra.mxu1 %v12162_v27  ;;  %v4751_v27 = vld [vmem:[#allocation2 + $0x182] ss:$2 sm:$0xff]  ;;  %v9522_v3 = vld [vmem:[%s15831_s3 + $0x198] sm:$0xff] }
 0x33f   :  { %12167 = vmatprep.subr.bf16.mxu1 %v12166_v25 }
 0x341   :  { %11255 = vmatmul.mubr.msk.f32.gmra.mrb[4].mxu1 %vm33_vm1, %v4143_v2  ;;  %v4941_v2 = vld [vmem:[#allocation2 + $0x33] ss:$2 sm:$0xff] }
 0x342   :  { %11257 = vmatprep.mubr.msk.f32.mxu1 %vm33_vm1, %v4145_v38  ;;  %v12194_v38 = vpack.c.bf16 %v9522_v3, %v9521_v31  ;;  %v5553_v31 = vld [vmem:[#allocation2 + $0xda] ss:$2 sm:$0xff]  ;;  %v5555_v3 = vld [vmem:[#allocation2 + $0x10a] ss:$2 sm:$0xff] }
 0x345   :  { %11258 = vmatmul.mubr.msk.f32.gmra.mrb[6].mxu1 %vm33_vm1, %v4147_v39  ;;  %v4943_v39 = vld [vmem:[#allocation2 + $0x63] ss:$2 sm:$0xff] }
 0x346   :  { %11260 = vmatprep.mubr.msk.f32.mxu1 %vm33_vm1, %v4149_v26  ;;  %v9535_v26 = vld [vmem:[%s15831_s3 + $0x1a0] sm:$0xff] }
 0x349   :  { %11261 = vmatmul.mubr.msk.f32.gmra.mrb[8].mxu1 %vm33_vm1, %v4151_v33  ;;  %v9536_v33 = vld [vmem:[%s15831_s3 + $0x1a8] sm:$0xff] }
 0x34a   :  { %11263 = vmatprep.mubr.msk.f32.mxu1 %vm33_vm1, %v4153_v37  ;;  %v4945_v37 = vld [vmem:[#allocation2 + $0x93] ss:$2 sm:$0xff] }
 0x34d   :  { %11264 = vmatmul.mubr.msk.f32.gmra.mrb[10].mxu1 %vm33_vm1, %v4155_v44  ;;  %v12198_v44 = vpack.c.bf16 %v9536_v33, %v9535_v26  ;;  %v5563_v26 = vld [vmem:[#allocation2 + $0x1fa] ss:$2 sm:$0xff]  ;;  %v5565_v33 = vld [vmem:[#allocation2 + $0x22a] ss:$2 sm:$0xff] }
 0x34e   :  { %11274 = vmatprep.mubr.msk.f32.mxu1 %vm33_vm1, %v4335_v42  ;;  %v4951_v42 = vld [vmem:[#allocation2 + $0x123] ss:$2 sm:$0xff] }
 0x351   :  { %11275 = vmatmul.mubr.msk.f32.vlgmr.msra.gmra.mrb[0].mxu1 %vm33_vm1, %v4337_v23  ;;  %v4955_v23 = vld [vmem:[#allocation2 + $0x1b3] ss:$2 sm:$0xff] }
 0x352   :  { %11277 = vmatprep.mubr.msk.f32.mxu1 %vm33_vm1, %v4339_v34  ;;  %12169 = vmatpush3.bf16.msra.mxu1 %v12166_v25  ;;  %v4761_v25 = vld [vmem:[#allocation2 + $0x272] ss:$2 sm:$0xff]  ;;  %v4961_v34 = vld [vmem:[#allocation2 + $0x243] ss:$2 sm:$0xff] }
 0x353   :  { %12171 = vmatprep.subr.bf16.mxu1 %v12170_v19 }
 0x355   :  { %11278 = vmatmul.mubr.msk.f32.gmra.mrb[2].mxu1 %vm33_vm1, %v4341_v43  ;;  %v9537_v43 = vld [vmem:[%s15831_s3 + $0x1b0] sm:$0xff] }
 0x356   :  { %11280 = vmatprep.mubr.msk.f32.mxu1 %vm33_vm1, %v4343_v45  ;;  %12173 = vmatpush3.bf16.msra.mxu1 %v12170_v19  ;;  %v4953_v19 = vld [vmem:[#allocation2 + $0x183] ss:$2 sm:$0xff]  ;;  %v9538_v45 = vld [vmem:[%s15831_s3 + $0x1b8] sm:$0xff] }
 0x357   :  { %12175 = vmatprep.subr.bf16.mxu1 %v12174_v29 }
 0x359   :  { %11281 = vmatmul.mubr.msk.f32.gmra.mrb[4].mxu1 %vm33_vm1, %v4345_v46  ;;  %v5143_v46 = vld [vmem:[#allocation2 + $0x48] ss:$2 sm:$0xff] }
 0x35a   :  { %11283 = vmatprep.mubr.msk.f32.mxu1 %vm33_vm1, %v4347_v47  ;;  %v12202_v47 = vpack.c.bf16 %v9538_v45, %v9537_v43  ;;  %v5767_v43 = vld [vmem:[#allocation2 + $0x22b] ss:$2 sm:$0xff]  ;;  %v5769_v45 = vld [vmem:[#allocation2 + $0x25b] ss:$2 sm:$0xff] }
 0x35d   :  { %11284 = vmatmul.mubr.msk.f32.gmra.mrb[6].mxu1 %vm33_vm1, %v4349_v48  ;;  %v5145_v48 = vld [vmem:[#allocation2 + $0x78] ss:$2 sm:$0xff] }
 0x35e   :  { %11286 = vmatprep.mubr.msk.f32.mxu1 %vm33_vm1, %v4351_v18  ;;  %v9551_v18 = vld [vmem:[%s15831_s3 + $0x1c0] sm:$0xff] }
 0x361   :  { %11287 = vmatmul.mubr.msk.f32.gmra.mrb[8].mxu1 %vm33_vm1, %v4353_v49  ;;  %v9552_v49 = vld [vmem:[%s15831_s3 + $0x1c8] sm:$0xff] }
 0x362   :  { %11289 = vmatprep.mubr.msk.f32.mxu1 %vm33_vm1, %v4355_v50  ;;  %v5147_v50 = vld [vmem:[#allocation2 + $0xa8] ss:$2 sm:$0xff] }
 0x365   :  { %11290 = vmatmul.mubr.msk.f32.gmra.mrb[10].mxu1 %vm33_vm1, %v4357_v51  ;;  %v12206_v51 = vpack.c.bf16 %v9552_v49, %v9551_v18  ;;  %v9588_v49 = vld [vmem:[%s15833_s5 + $0x60] sm:$0xff] }
 0x366   :  { %11300 = vmatprep.mubr.msk.f32.mxu1 %vm33_vm1, %v4537_v54  ;;  %v5153_v54 = vld [vmem:[#allocation2 + $0x138] ss:$2 sm:$0xff] }
 0x369   :  { %11301 = vmatmul.mubr.msk.f32.vlgmr.msra.gmra.mrb[0].mxu1 %vm33_vm1, %v4539_v58  ;;  %v5157_v58 = vld [vmem:[#allocation2 + $0x1c8] ss:$2 sm:$0xff] }
 0x36a   :  { %11303 = vmatprep.mubr.msk.f32.mxu1 %vm33_vm1, %v4541_v61  ;;  %12177 = vmatpush3.bf16.msra.mxu1 %v12174_v29  ;;  %v4963_v29 = vld [vmem:[#allocation2 + $0x273] ss:$2 sm:$0xff]  ;;  %v5163_v61 = vld [vmem:[#allocation2 + $0x258] ss:$2 sm:$0xff] }
 0x36b   :  { %12179 = vmatprep.subr.bf16.mxu1 %v12178_v57 }
 0x36d   :  { %11304 = vmatmul.mubr.msk.f32.gmra.mrb[2].mxu1 %vm33_vm1, %v4543_v63  ;;  %v9553_v63 = vld [vmem:[%s15831_s3 + $0x1d0] sm:$0xff] }
 0x36e   :  { %11306 = vmatprep.mubr.msk.f32.mxu1 %vm33_vm1, %v4545_v0  ;;  %12181 = vmatpush3.bf16.msra.mxu1 %v12178_v57  ;;  %v5155_v57 = vld [vmem:[#allocation2 + $0x198] ss:$2 sm:$0xff] }
 0x36f   :  { %12183 = vmatprep.subr.bf16.mxu1 %v12182_v62  ;;  %v9554_v0 = vld [vmem:[%s15831_s3 + $0x1d8] sm:$0xff] }
 0x371   :  { %11307 = vmatmul.mubr.msk.f32.gmra.mrb[4].mxu1 %vm33_vm1, %v4547_v1  ;;  %v5345_v1 = vld [vmem:[#allocation2 + $0x49] ss:$2 sm:$0xff] }
 0x372   :  { %11309 = vmatprep.mubr.msk.f32.mxu1 %vm33_vm1, %v4549_v4  ;;  %v12210_v4 = vpack.c.bf16 %v9554_v0, %v9553_v63 }
 0x375   :  { %11310 = vmatmul.mubr.msk.f32.gmra.mrb[6].mxu1 %vm33_vm1, %v4551_v5  ;;  %v5347_v5 = vld [vmem:[#allocation2 + $0x79] ss:$2 sm:$0xff] }
 0x376   :  { %11312 = vmatprep.mubr.msk.f32.mxu1 %vm33_vm1, %v4553_v6  ;;  %v9567_v6 = vld [vmem:[%s15831_s3 + $0x1e0] sm:$0xff] }
 0x379   :  { %11313 = vmatmul.mubr.msk.f32.gmra.mrb[8].mxu1 %vm33_vm1, %v4555_v7  ;;  %v9568_v7 = vld [vmem:[%s15831_s3 + $0x1e8] sm:$0xff] }
 0x37a   :  { %11315 = vmatprep.mubr.msk.f32.mxu1 %vm33_vm1, %v4557_v8  ;;  %v5349_v8 = vld [vmem:[#allocation2 + $0xa9] ss:$2 sm:$0xff] }
 0x37d   :  { %11316 = vmatmul.mubr.msk.f32.gmra.mrb[10].mxu1 %vm33_vm1, %v4559_v9  ;;  %v12214_v9 = vpack.c.bf16 %v9568_v7, %v9567_v6 }
 0x37e   :  { %11326 = vmatprep.mubr.msk.f32.mxu1 %vm33_vm1, %v4739_v12  ;;  %v5355_v12 = vld [vmem:[#allocation2 + $0x139] ss:$2 sm:$0xff] }
 0x381   :  { %11327 = vmatmul.mubr.msk.f32.vlgmr.msra.gmra.mrb[0].mxu1 %vm33_vm1, %v4741_v14  ;;  %v5359_v14 = vld [vmem:[#allocation2 + $0x1c9] ss:$2 sm:$0xff] }
 0x382   :  { %11329 = vmatprep.mubr.msk.f32.mxu1 %vm33_vm1, %v4743_v17  ;;  %12185 = vmatpush3.bf16.msra.mxu1 %v12182_v62  ;;  %v5165_v62 = vld [vmem:[#allocation2 + $0x288] ss:$2 sm:$0xff]  ;;  %v5365_v17 = vld [vmem:[#allocation2 + $0x259] ss:$2 sm:$0xff] }
 0x383   :  { %12187 = vmatprep.subr.bf16.mxu1 %v12186_v13 }
 0x385   :  { %11330 = vmatmul.mubr.msk.f32.gmra.mrb[2].mxu1 %vm33_vm1, %v4745_v55  ;;  %v9569_v55 = vld [vmem:[%s15831_s3 + $0x1f0] sm:$0xff] }
 0x386   :  { %11332 = vmatprep.mubr.msk.f32.mxu1 %vm33_vm1, %v4747_v21  ;;  %12189 = vmatpush3.bf16.msra.mxu1 %v12186_v13  ;;  %v5357_v13 = vld [vmem:[#allocation2 + $0x199] ss:$2 sm:$0xff] }
 0x387   :  { %12191 = vmatprep.subr.bf16.mxu1 %v12190_v32  ;;  %v9570_v21 = vld [vmem:[%s15831_s3 + $0x1f8] sm:$0xff] }
 0x389   :  { %11333 = vmatmul.mubr.msk.f32.gmra.mrb[4].mxu1 %vm33_vm1, %v4749_v22  ;;  %v5547_v22 = vld [vmem:[#allocation2 + $0x4a] ss:$2 sm:$0xff] }
 0x38a   :  { %11335 = vmatprep.mubr.msk.f32.mxu1 %vm33_vm1, %v4751_v27  ;;  %v12218_v27 = vpack.c.bf16 %v9570_v21, %v9569_v55 }
 0x38d   :  { %11336 = vmatmul.mubr.msk.f32.gmra.mrb[6].mxu1 %vm33_vm1, %v4753_v20  ;;  %v5549_v20 = vld [vmem:[#allocation2 + $0x7a] ss:$2 sm:$0xff] }
 0x38e   :  { %11338 = vmatprep.mubr.msk.f32.mxu1 %vm33_vm1, %v4755_v35  ;;  %v9584_v35 = vld [vmem:[%s15833_s5 + $0x40] sm:$0xff] }
 0x391   :  { %11339 = vmatmul.mubr.msk.f32.gmra.mrb[8].mxu1 %vm33_vm1, %v4757_v56  ;;  %v9585_v56 = vld [vmem:[%s15833_s5 + $0x48] sm:$0xff] }
 0x392   :  { %11341 = vmatprep.mubr.msk.f32.mxu1 %vm33_vm1, %v4759_v30  ;;  %v5551_v30 = vld [vmem:[#allocation2 + $0xaa] ss:$2 sm:$0xff] }
 0x395   :  { %11342 = vmatmul.mubr.msk.f32.gmra.mrb[10].mxu1 %vm33_vm1, %v4761_v25  ;;  %v12222_v25 = vpack.c.bf16 %v9585_v56, %v9584_v35 }
 0x396   :  { %11352 = vmatprep.mubr.msk.f32.mxu1 %vm33_vm1, %v4941_v2  ;;  %v5557_v2 = vld [vmem:[#allocation2 + $0x13a] ss:$2 sm:$0xff] }
 0x399   :  { %11353 = vmatmul.mubr.msk.f32.vlgmr.msra.gmra.mrb[0].mxu1 %vm33_vm1, %v4943_v39  ;;  %v5561_v39 = vld [vmem:[#allocation2 + $0x1ca] ss:$2 sm:$0xff] }
 0x39a   :  { %11355 = vmatprep.mubr.msk.f32.mxu1 %vm33_vm1, %v4945_v37  ;;  %12193 = vmatpush3.bf16.msra.mxu1 %v12190_v32  ;;  %v5367_v32 = vld [vmem:[#allocation2 + $0x289] ss:$2 sm:$0xff]  ;;  %v5567_v37 = vld [vmem:[#allocation2 + $0x25a] ss:$2 sm:$0xff] }
 0x39b   :  { %12195 = vmatprep.subr.bf16.mxu1 %v12194_v38 }
 0x39d   :  { %11356 = vmatmul.mubr.msk.f32.gmra.mrb[2].mxu1 %vm33_vm1, %v4947_v40  ;;  %v5749_v40 = vld [vmem:[#allocation2 + $0x4b] ss:$2 sm:$0xff] }
 0x39e   :  { %11358 = vmatprep.mubr.msk.f32.mxu1 %vm33_vm1, %v4949_v41  ;;  %12197 = vmatpush3.bf16.msra.mxu1 %v12194_v38  ;;  %v5559_v38 = vld [vmem:[#allocation2 + $0x19a] ss:$2 sm:$0xff]  ;;  %v5751_v41 = vld [vmem:[#allocation2 + $0x7b] ss:$2 sm:$0xff] }
 0x39f   :  { %12199 = vmatprep.subr.bf16.mxu1 %v12198_v44 }
 0x3a1   :  { %11359 = vmatmul.mubr.msk.f32.gmra.mrb[4].mxu1 %vm33_vm1, %v4951_v42  ;;  %v5753_v42 = vld [vmem:[#allocation2 + $0xab] ss:$2 sm:$0xff] }
 0x3a2   :  { %11361 = vmatprep.mubr.msk.f32.mxu1 %vm33_vm1, %v4953_v19  ;;  %v5755_v19 = vld [vmem:[#allocation2 + $0xdb] ss:$2 sm:$0xff] }
 0x3a5   :  { %11362 = vmatmul.mubr.msk.f32.gmra.mrb[6].mxu1 %vm33_vm1, %v4955_v23  ;;  %v5757_v23 = vld [vmem:[#allocation2 + $0x10b] ss:$2 sm:$0xff] }
 0x3a6   :  { %11364 = vmatprep.mubr.msk.f32.mxu1 %vm33_vm1, %v4957_v24  ;;  %v5759_v24 = vld [vmem:[#allocation2 + $0x13b] ss:$2 sm:$0xff] }
 0x3a9   :  { %11365 = vmatmul.mubr.msk.f32.gmra.mrb[8].mxu1 %vm33_vm1, %v4959_v28  ;;  %v5761_v28 = vld [vmem:[#allocation2 + $0x19b] ss:$2 sm:$0xff] }
 0x3aa   :  { %11367 = vmatprep.mubr.msk.f32.mxu1 %vm33_vm1, %v4961_v34  ;;  %v5763_v34 = vld [vmem:[#allocation2 + $0x1cb] ss:$2 sm:$0xff] }
 0x3ad   :  { %11368 = vmatmul.mubr.msk.f32.gmra.mrb[10].mxu1 %vm33_vm1, %v4963_v29  ;;  %v5765_v29 = vld [vmem:[#allocation2 + $0x1fb] ss:$2 sm:$0xff] }
 0x3ae   :  { %11378 = vmatprep.mubr.msk.f32.mxu1 %vm33_vm1, %v5143_v46  ;;  %v5771_v46 = vld [vmem:[#allocation2 + $0x28b] ss:$2 sm:$0xff] }
 0x3b1   :  { %11379 = vmatmul.mubr.msk.f32.vlgmr.msra.gmra.mrb[0].mxu1 %vm33_vm1, %v5145_v48  ;;  %v9587_v48 = vld [vmem:[%s15833_s5 + $0x58] sm:$0xff] }
 0x3b2   :  { %11381 = vmatprep.mubr.msk.f32.mxu1 %vm33_vm1, %v5147_v50  ;;  %12201 = vmatpush3.bf16.msra.mxu1 %v12198_v44  ;;  %v5569_v44 = vld [vmem:[#allocation2 + $0x28a] ss:$2 sm:$0xff] }
 0x3b3   :  { %12203 = vmatprep.subr.bf16.mxu1 %v12202_v47  ;;  %v9589_v50 = vld [vmem:[%s15833_s5 + $0x68] sm:$0xff] }
 0x3b5   :  { %11382 = vmatmul.mubr.msk.f32.gmra.mrb[2].mxu1 %vm33_vm1, %v5149_v52  ;;  %v9590_v52 = vld [vmem:[%s15833_s5 + $0x70] sm:$0xff] }
 0x3b6   :  { %11384 = vmatprep.mubr.msk.f32.mxu1 %vm33_vm1, %v5151_v53  ;;  %12205 = vmatpush3.bf16.msra.mxu1 %v12202_v47  ;;  %v9586_v47 = vld [vmem:[%s15833_s5 + $0x50] sm:$0xff]  ;;  %v9591_v53 = vld [vmem:[%s15833_s5 + $0x78] sm:$0xff] }
 0x3b7   :  { %12207 = vmatprep.subr.bf16.mxu1 %v12206_v51  ;;  %v12226_v18 = vpack.c.bf16 %v9587_v48, %v9586_v47 }
 0x3b9   :  { %11385 = vmatmul.mubr.msk.f32.gmra.mrb[4].mxu1 %vm33_vm1, %v5153_v54  ;;  %v12234_v54 = vpack.c.bf16 %v9591_v53, %v9590_v52  ;;  %v9610_v52 = vld [vmem:[%s15833_s5 + $0x90] sm:$0xff]  ;;  %v9611_v53 = vld [vmem:[%s15833_s5 + $0x98] sm:$0xff] }
 0x3ba   :  { %11387 = vmatprep.mubr.msk.f32.mxu1 %vm33_vm1, %v5155_v57  ;;  %v6001_v57 = vld [vmem:[%s15833_s5] sm:$0xff] }
 0x3bd   :  { %11388 = vmatmul.mubr.msk.f32.gmra.mrb[6].mxu1 %vm33_vm1, %v5157_v58  ;;  %v6002_v58 = vld [vmem:[%s15833_s5 + $0x8] sm:$0xff] }
 0x3be   :  { %11390 = vmatprep.mubr.msk.f32.mxu1 %vm33_vm1, %v5159_v59  ;;  %v12238_v59 = vpack.c.bf16 %v6002_v58, %v6001_v57  ;;  %v9721_v57 = vld [vmem:[%s15835_s7 + $0x40] sm:$0xff]  ;;  %v9722_v58 = vld [vmem:[%s15835_s7 + $0x48] sm:$0xff] }
 0x3c1   :  { %11391 = vmatmul.mubr.msk.f32.gmra.mrb[8].mxu1 %vm33_vm1, %v5161_v60  ;;  %v14898_v60 = vld [vmem:[%s15832_s4] ss:$0 sm:$0xff] }
 0x3c2   :  { %11393 = vmatprep.mubr.msk.f32.mxu1 %vm33_vm1, %v5163_v61 }
 0x3c5   :  { %11394 = vmatmul.mubr.msk.f32.gmra.mrb[10].mxu1 %vm33_vm1, %v5165_v62 }
 0x3c6   :  { %11404 = vmatprep.mubr.msk.f32.mxu1 %vm33_vm1, %v5345_v1 }
 0x3c9   :  { %11405 = vmatmul.mubr.msk.f32.vlgmr.msra.gmra.mrb[0].mxu1 %vm33_vm1, %v5347_v5 }
 0x3ca   :  { %11407 = vmatprep.mubr.msk.f32.mxu1 %vm33_vm1, %v5349_v8  ;;  %12209 = vmatpush3.bf16.msra.mxu1 %v12206_v51  ;;  %v12230_v51 = vpack.c.bf16 %v9589_v50, %v9588_v49 }
 0x3cb   :  { %12211 = vmatprep.subr.bf16.mxu1 %v12210_v4 }
 0x3cd   :  { %11408 = vmatmul.mubr.msk.f32.gmra.mrb[2].mxu1 %vm33_vm1, %v5351_v10 }
 0x3ce   :  { %11410 = vmatprep.mubr.msk.f32.mxu1 %vm33_vm1, %v5353_v11  ;;  %12213 = vmatpush3.bf16.msra.mxu1 %v12210_v4 }
 0x3cf   :  { %12215 = vmatprep.subr.bf16.mxu1 %v12214_v9 }
 0x3d1   :  { %11411 = vmatmul.mubr.msk.f32.gmra.mrb[4].mxu1 %vm33_vm1, %v5355_v12 }
 0x3d2   :  { %11413 = vmatprep.mubr.msk.f32.mxu1 %vm33_vm1, %v5357_v13 }
 0x3d5   :  { %11414 = vmatmul.mubr.msk.f32.gmra.mrb[6].mxu1 %vm33_vm1, %v5359_v14 }
 0x3d6   :  { %11416 = vmatprep.mubr.msk.f32.mxu1 %vm33_vm1, %v5361_v15  ;;  %v6003_v15 = vld [vmem:[%s15833_s5 + $0x10] sm:$0xff] }
 0x3d9   :  { %11417 = vmatmul.mubr.msk.f32.gmra.mrb[8].mxu1 %vm33_vm1, %v5363_v16  ;;  %v6004_v16 = vld [vmem:[%s15833_s5 + $0x18] sm:$0xff] }
 0x3da   :  { %11419 = vmatprep.mubr.msk.f32.mxu1 %vm33_vm1, %v5365_v17 }
 0x3dd   :  { %11420 = vmatmul.mubr.msk.f32.gmra.mrb[10].mxu1 %vm33_vm1, %v5367_v32 }
 0x3de   :  { %11430 = vmatprep.mubr.msk.f32.mxu1 %vm33_vm1, %v5547_v22 }
 0x3e1   :  { %11431 = vmatmul.mubr.msk.f32.vlgmr.msra.gmra.mrb[0].mxu1 %vm33_vm1, %v5549_v20  ;;  %v12242_v20 = vpack.c.bf16 %v6004_v16, %v6003_v15  ;;  %v9727_v15 = vld [vmem:[%s15835_s7 + $0x70] sm:$0xff]  ;;  %v9728_v16 = vld [vmem:[%s15835_s7 + $0x78] sm:$0xff] }
 0x3e2   :  { %11433 = vmatprep.mubr.msk.f32.mxu1 %vm33_vm1, %v5551_v30  ;;  %12217 = vmatpush3.bf16.msra.mxu1 %v12214_v9  ;;  %v6005_v30 = vld [vmem:[%s15833_s5 + $0x20] sm:$0xff] }
 0x3e3   :  { %12219 = vmatprep.subr.bf16.mxu1 %v12218_v27 }
 0x3e5   :  { %11434 = vmatmul.mubr.msk.f32.gmra.mrb[2].mxu1 %vm33_vm1, %v5553_v31 }
 0x3e6   :  { %11436 = vmatprep.mubr.msk.f32.mxu1 %vm33_vm1, %v5555_v3  ;;  %12221 = vmatpush3.bf16.msra.mxu1 %v12218_v27 }
 0x3e7   :  { %12223 = vmatprep.subr.bf16.mxu1 %v12222_v25 }
 0x3e9   :  { %11437 = vmatmul.mubr.msk.f32.gmra.mrb[4].mxu1 %vm33_vm1, %v5557_v2 }
 0x3ea   :  { %11439 = vmatprep.mubr.msk.f32.mxu1 %vm33_vm1, %v5559_v38 }
 0x3ed   :  { %11440 = vmatmul.mubr.msk.f32.gmra.mrb[6].mxu1 %vm33_vm1, %v5561_v39 }
 0x3ee   :  { %11442 = vmatprep.mubr.msk.f32.mxu1 %vm33_vm1, %v5563_v26 }
 0x3f1   :  { %11443 = vmatmul.mubr.msk.f32.gmra.mrb[8].mxu1 %vm33_vm1, %v5565_v33 }
 0x3f2   :  { %11445 = vmatprep.mubr.msk.f32.mxu1 %vm33_vm1, %v5567_v37 }
 0x3f5   :  { %11446 = vmatmul.mubr.msk.f32.gmra.mrb[10].mxu1 %vm33_vm1, %v5569_v44 }
 0x3f6   :  { %11456 = vmatprep.mubr.msk.f32.mxu1 %vm33_vm1, %v5749_v40  ;;  %v6007_v40 = vld [vmem:[%s15833_s5 + $0x30] sm:$0xff] }
 0x3f9   :  { %11457 = vmatmul.mubr.msk.f32.vlgmr.msra.gmra.mrb[0].mxu1 %vm33_vm1, %v5751_v41  ;;  %v6008_v41 = vld [vmem:[%s15833_s5 + $0x38] sm:$0xff] }
 0x3fa   :  { %11459 = vmatprep.mubr.msk.f32.mxu1 %vm33_vm1, %v5753_v42  ;;  %12225 = vmatpush3.bf16.msra.mxu1 %v12222_v25  ;;  %v6006_v25 = vld [vmem:[%s15833_s5 + $0x28] sm:$0xff] }
 0x3fb   :  { %12227 = vmatprep.subr.bf16.mxu1 %v12226_v18  ;;  %v12246_v33 = vpack.c.bf16 %v6006_v25, %v6005_v30  ;;  %v9626_v30 = vld [vmem:[%s15833_s5 + $0xd0] sm:$0xff]  ;;  %v9627_v25 = vld [vmem:[%s15833_s5 + $0xd8] sm:$0xff] }
 0x3fd   :  { %11460 = vmatmul.mubr.msk.f32.gmra.mrb[2].mxu1 %vm33_vm1, %v5755_v19 }
 0x3fe   :  { %11462 = vmatprep.mubr.msk.f32.mxu1 %vm33_vm1, %v5757_v23  ;;  %12229 = vmatpush3.bf16.msra.mxu1 %v12226_v18 }
 0x3ff   :  { %12231 = vmatprep.subr.bf16.mxu1 %v12230_v51 }
 0x401   :  { %11463 = vmatmul.mubr.msk.f32.gmra.mrb[4].mxu1 %vm33_vm1, %v5759_v24 }
 0x402   :  { %11465 = vmatprep.mubr.msk.f32.mxu1 %vm33_vm1, %v5761_v28  ;;  %12233 = vmatpush3.bf16.msra.mxu1 %v12230_v51 }
 0x403   :  { %12235 = vmatprep.subr.bf16.mxu1 %v12234_v54 }
 0x405   :  { %11466 = vmatmul.mubr.msk.f32.gmra.mrb[6].mxu1 %vm33_vm1, %v5763_v34  ;;  %v12250_v34 = vpack.c.bf16 %v6008_v41, %v6007_v40  ;;  %v9630_v41 = vld [vmem:[%s15833_s5 + $0xf0] sm:$0xff] }
 0x406   :  { %11468 = vmatprep.mubr.msk.f32.mxu1 %vm33_vm1, %v5765_v29  ;;  %12237 = vmatpush3.bf16.msra.mxu1 %v12234_v54 }
 0x407   :  { %12239 = vmatprep.subr.bf16.mxu1 %v12238_v59 }
 0x409   :  { %11469 = vmatmul.mubr.msk.f32.gmra.mrb[8].mxu1 %vm33_vm1, %v5767_v43  ;;  %v9608_v43 = vld [vmem:[%s15833_s5 + $0x80] sm:$0xff] }
 0x40a   :  { %11471 = vmatprep.mubr.msk.f32.mxu1 %vm33_vm1, %v5769_v45  ;;  %v9609_v45 = vld [vmem:[%s15833_s5 + $0x88] sm:$0xff] }
 0x40b   :  { %v12254_v18 = vpack.c.bf16 %v9609_v45, %v9608_v43 }
 0x40d   :  { %11472 = vmatmul.mubr.msk.f32.gmra.mrb[10].mxu1 %vm33_vm1, %v5771_v46 }
 0x4cc   :  { %v11458_v61 = vpop.f32.mrb[0].mxu1 }
 0x4cd   :  { %v5958_v62 = vadd.f32 %v11458_v61, %v14898_v60  ;;  %v5879_v63 = vpop.f32.mrb[1].mxu1  ;;  %v9723_v61 = vld [vmem:[%s15835_s7 + $0x50] sm:$0xff] }
 0x4ce   :  { %v5957_v0 = vadd.f32 %v14898_v60, %v5879_v63  ;;  %v9612_v63 = vld [vmem:[%s15833_s5 + $0xa0] sm:$0xff] }
 0x4cf   :  { %v5970_v1 = vmax.f32 %v5958_v62, 0.0  ;;  %v12258_v62 = vpack.c.bf16 %v9611_v53, %v9610_v52  ;;  %v9645_v52 = vld [vmem:[%s15833_s5 + $0x128] sm:$0xff] }
 0x4d0   :  { %v5969_v4 = vmax.f32 %v5957_v0, 0.0  ;;  %v11461_v5 = vpop.f32.mrb[2].mxu1 }
 0x4d1   :  { %5982 = vst.msk [vmem:[#allocation3 + $0x10] sm:$0xff] %vm119_vm0, %v5970_v1  ;;  %v5960_v6 = vadd.f32 %v11461_v5, %v14898_v60  ;;  %v5889_v7 = vpop.f32.mrb[3].mxu1  ;;  %v9613_v1 = vld [vmem:[%s15833_s5 + $0xa8] sm:$0xff] }
 0x4d2   :  { %5981 = vst.msk [vmem:[#allocation3] sm:$0xff] %vm119_vm0, %v5969_v4  ;;  %v5959_v8 = vadd.f32 %v14898_v60, %v5889_v7  ;;  %v9724_v4 = vld [vmem:[%s15835_s7 + $0x58] sm:$0xff]  ;;  %v9725_v7 = vld [vmem:[%s15835_s7 + $0x60] sm:$0xff] }
 0x4d3   :  { %v5972_v9 = vmax.f32 %v5960_v6, 0.0  ;;  %v12370_v6 = vpack.c.bf16 %v9724_v4, %v9723_v61  ;;  %v9656_v61 = vld [vmem:[%s15833_s5 + $0x140] sm:$0xff]  ;;  %v9659_v4 = vld [vmem:[%s15833_s5 + $0x158] sm:$0xff] }
 0x4d4   :  { %v5971_v10 = vmax.f32 %v5959_v8, 0.0  ;;  %v11464_v11 = vpop.f32.mrb[4].mxu1  ;;  %v9726_v8 = vld [vmem:[%s15835_s7 + $0x68] sm:$0xff] }
 0x4d5   :  { %5984 = vst.msk [vmem:[#allocation3 + $0x30] sm:$0xff] %vm119_vm0, %v5972_v9  ;;  %v5962_v12 = vadd.f32 %v11464_v11, %v14898_v60  ;;  %v5899_v13 = vpop.f32.mrb[5].mxu1  ;;  %v12262_v9 = vpack.c.bf16 %v9613_v1, %v9612_v63  ;;  %v9614_v11 = vld [vmem:[%s15833_s5 + $0xb0] sm:$0xff] }
 0x4d6   :  { %5983 = vst.msk [vmem:[#allocation3 + $0x20] sm:$0xff] %vm119_vm0, %v5971_v10  ;;  %v5961_v14 = vadd.f32 %v14898_v60, %v5899_v13  ;;  %v12373_v13 = vpack.c.bf16 %v9726_v8, %v9725_v7  ;;  %v9658_v1 = vld [vmem:[%s15833_s5 + $0x150] sm:$0xff]  ;;  %v9660_v7 = vld [vmem:[%s15833_s5 + $0x160] sm:$0xff]  ;;  %v9661_v8 = vld [vmem:[%s15833_s5 + $0x168] sm:$0xff] }
 0x4d7   :  { %v5974_v17 = vmax.f32 %v5962_v12, 0.0  ;;  %v9615_v12 = vld [vmem:[%s15833_s5 + $0xb8] sm:$0xff] }
 0x4d8   :  { %v5973_v32 = vmax.f32 %v5961_v14, 0.0  ;;  %v11467_v55 = vpop.f32.mrb[6].mxu1  ;;  %v14921_v56 = vld [vmem:[#allocation3 + $0x11] sm:$0xff] }
 0x4d9   :  { %5986 = vst.msk [vmem:[#allocation3 + $0x50] sm:$0xff] %vm119_vm0, %v5974_v17  ;;  %v5964_v21 = vadd.f32 %v11467_v55, %v14898_v60  ;;  %v5909_v22 = vpop.f32.mrb[7].mxu1  ;;  %v6009_v27 = vld [vmem:[#allocation3 + $0x1] sm:$0xff]  ;;  %v14994_v0 = vld [vmem:[#allocation3 + $0x10] sm:$0xff]  ;;  %v12266_v17 = vpack.c.bf16 %v9615_v12, %v9614_v11  ;;  %v9663_v12 = vld [vmem:[%s15833_s5 + $0x178] sm:$0xff] }
 0x4da   :  { %5985 = vst.msk [vmem:[#allocation3 + $0x40] sm:$0xff] %vm119_vm0, %v5973_v32  ;;  %v5963_v35 = vadd.f32 %v14898_v60, %v5909_v22  ;;  %11490 = vmatprep.mubr.msk.f32.mxu1 %vm119_vm0, %v6009_v27  ;;  %v5993_v54 = vld [vmem:[#allocation3] sm:$0xff]  ;;  %v12376_v22 = vpack.c.bf16 %v9728_v16, %v9727_v15  ;;  %v9662_v11 = vld [vmem:[%s15833_s5 + $0x170] sm:$0xff]  ;;  %v9673_v15 = vld [vmem:[%s15833_s5 + $0x188] sm:$0xff] }
 0x4db   :  { %v5976_v31 = vmax.f32 %v5964_v21, 0.0  ;;  %11491 = vmatmul.mubr.msk.f32.vlgmr.msra.gmra.mrb[12].mxu1 %vm119_vm0, %v14921_v56  ;;  %v9624_v55 = vld [vmem:[%s15833_s5 + $0xc0] sm:$0xff]  ;;  %v9625_v21 = vld [vmem:[%s15833_s5 + $0xc8] sm:$0xff] }
 0x4dc   :  { %v5975_v3 = vmax.f32 %v5963_v35, 0.0  ;;  %v11470_v2 = vpop.f32.mrb[8].mxu1  ;;  %12241 = vmatpush3.bf16.msra.mxu1 %v12238_v59  ;;  %v14939_v44 = vld [vmem:[#allocation3 + $0x31] sm:$0xff]  ;;  %v12999_v59 = vmov 0.0|0.0  }
 0x4dd   :  { %5988 = vst.msk [vmem:[#allocation3 + $0x70] sm:$0xff] %vm119_vm0, %v5976_v31  ;;  %v5966_v38 = vadd.f32 %v11470_v2, %v14898_v60  ;;  %v5919_v39 = vpop.f32.mrb[9].mxu1  ;;  %v14933_v26 = vld [vmem:[#allocation3 + $0x21] sm:$0xff]  ;;  %12243 = vmatprep.subr.bf16.mxu1 %v12242_v20  ;;  %12366 = vmatprep.subr.bf16.mxu0 %v12999_v59  ;;  %v15015_v10 = vld [vmem:[#allocation3 + $0x30] sm:$0xff] }
 0x4de   :  { %5987 = vst.msk [vmem:[#allocation3 + $0x60] sm:$0xff] %vm119_vm0, %v5975_v3  ;;  %v5965_v37 = vadd.f32 %v14898_v60, %v5919_v39  ;;  %11493 = vmatprep.mubr.msk.f32.mxu1 %vm119_vm0, %v14933_v26  ;;  %v15004_v5 = vld [vmem:[#allocation3 + $0x20] sm:$0xff]  ;;  %v12274_v3 = vpack.c.bf16 %v9627_v25, %v9626_v30  ;;  %v15060_v2 = vld [vmem:[#allocation3 + $0x12] sm:$0xff]  ;;  %v9629_v39 = vld [vmem:[%s15833_s5 + $0xe8] sm:$0xff] }
 0x4df   :  { %v5978_v42 = vmax.f32 %v5966_v38, 0.0  ;;  %11494 = vmatmul.mubr.msk.f32.gmra.mrb[14].mxu1 %vm119_vm0, %v14939_v44  ;;  %v6284_v31 = vld [vmem:[#allocation3 + $0x2] sm:$0xff]  ;;  %v15074_v40 = vld [vmem:[#allocation3 + $0x32] sm:$0xff] }
 0x4e0   :  { %v5977_v19 = vmax.f32 %v5965_v37, 0.0  ;;  %v11473_v23 = vpop.f32.mrb[10].mxu1  ;;  %12245 = vmatpush3.bf16.msra.mxu1 %v12242_v20  ;;  %v12270_v20 = vpack.c.bf16 %v9625_v21, %v9624_v55  ;;  %v9628_v38 = vld [vmem:[%s15833_s5 + $0xe0] sm:$0xff]  ;;  %v9678_v25 = vld [vmem:[%s15833_s5 + $0x1b0] sm:$0xff] }
 0x4e1   :  { %5990 = vst.msk [vmem:[#allocation3 + $0x90] sm:$0xff] %vm119_vm0, %v5978_v42  ;;  %v5968_v24 = vadd.f32 %v11473_v23, %v14898_v60  ;;  %v5929_v28 = vpop.f32.mrb[11].mxu1  ;;  %12247 = vmatprep.subr.bf16.mxu1 %v12246_v33  ;;  %v12278_v37 = vpack.c.bf16 %v9629_v39, %v9628_v38  ;;  %v9631_v42 = vld [vmem:[%s15833_s5 + $0xf8] sm:$0xff]  ;;  %v9676_v21 = vld [vmem:[%s15833_s5 + $0x1a0] sm:$0xff]  ;;  %v9689_v38 = vld [vmem:[%s15833_s5 + $0x1c8] sm:$0xff] }
 0x4e2   :  { %5989 = vst.msk [vmem:[#allocation3 + $0x80] sm:$0xff] %vm119_vm0, %v5977_v19  ;;  %v5967_v29 = vadd.f32 %v14898_v60, %v5929_v28  ;;  %v12367_v60 = vpack.c.bf16 %v9722_v58, %v9721_v57  ;;  %v12282_v23 = vpack.c.bf16 %v9631_v42, %v9630_v41  ;;  %v9640_v28 = vld [vmem:[%s15833_s5 + $0x100] sm:$0xff]  ;;  %v9646_v57 = vld [vmem:[%s15833_s5 + $0x130] sm:$0xff]  ;;  %v9647_v58 = vld [vmem:[%s15833_s5 + $0x138] sm:$0xff] }
 0x4e3   :  { %v5980_v46 = vmax.f32 %v5968_v24, 0.0  ;;  %v15209_v30 = vld [vmem:[#allocation3 + $0x42] sm:$0xff]  ;;  %v9690_v41 = vld [vmem:[%s15833_s5 + $0x1d0] sm:$0xff]  ;;  %v9691_v42 = vld [vmem:[%s15833_s5 + $0x1d8] sm:$0xff] }
 0x4e4   :  { %v5979_v47 = vmax.f32 %v5967_v29, 0.0  ;;  %12249 = vmatpush3.bf16.msra.mxu1 %v12246_v33  ;;  %v14962_v49 = vld [vmem:[#allocation3 + $0x71] sm:$0xff]  ;;  %12368 = vmatpush3.bf16.msra.mxu0 %v12367_v60  ;;  %v15070_v33 = vld [vmem:[#allocation3 + $0x22] sm:$0xff]  ;;  %v12298_v60 = vpack.c.bf16 %v9647_v58, %v9646_v57 }
 0x4e5   :  { %5992 = vst.msk [vmem:[#allocation3 + $0xb0] sm:$0xff] %vm119_vm0, %v5980_v46  ;;  %v6013_v48 = vld [vmem:[#allocation3 + $0x61] sm:$0xff]  ;;  %12251 = vmatprep.subr.bf16.mxu1 %v12250_v34  ;;  %12369 = vmatprep.subr.bf16.mxu0 %v12999_v59  ;;  %v15033_v32 = vld [vmem:[#allocation3 + $0x70] sm:$0xff] }
 0x4e6   :  { %5991 = vst.msk [vmem:[#allocation3 + $0xa0] sm:$0xff] %vm119_vm0, %v5979_v47  ;;  %11496 = vmatprep.mubr.msk.f32.mxu1 %vm119_vm0, %v6013_v48  ;;  %v5997_v14 = vld [vmem:[#allocation3 + $0x60] sm:$0xff]  ;;  %v15085_v24 = vld [vmem:[#allocation3 + $0x72] sm:$0xff] }
 0x4e7   :  { %11497 = vmatmul.mubr.msk.f32.gmra.mrb[16].mxu1 %vm119_vm0, %v14962_v49  ;;  %v6288_v19 = vld [vmem:[#allocation3 + $0x62] sm:$0xff]  ;;  %v9642_v46 = vld [vmem:[%s15833_s5 + $0x110] sm:$0xff]  ;;  %v9643_v47 = vld [vmem:[%s15833_s5 + $0x118] sm:$0xff] }
 0x4e8   :  { %12253 = vmatpush3.bf16.msra.mxu1 %v12250_v34  ;;  %v14970_v51 = vld [vmem:[#allocation3 + $0x91] sm:$0xff]  ;;  %12371 = vmatpush3.bf16.msra.mxu0 %v12370_v6  ;;  %v9641_v34 = vld [vmem:[%s15833_s5 + $0x108] sm:$0xff]  ;;  %v12290_v48 = vpack.c.bf16 %v9643_v47, %v9642_v46  ;;  %v12306_v6 = vpack.c.bf16 %v9659_v4, %v9658_v1  ;;  %v9704_v46 = vld [vmem:[%s15833_s5 + $0x200] sm:$0xff] }
 0x4e9   :  { %v14966_v50 = vld [vmem:[#allocation3 + $0x81] sm:$0xff]  ;;  %12255 = vmatprep.subr.bf16.mxu1 %v12254_v18  ;;  %12372 = vmatprep.subr.bf16.mxu0 %v12999_v59  ;;  %v15048_v35 = vld [vmem:[#allocation3 + $0x90] sm:$0xff]  ;;  %v12286_v43 = vpack.c.bf16 %v9641_v34, %v9640_v28 }
 0x4ea   :  { %11499 = vmatprep.mubr.msk.f32.mxu1 %vm119_vm0, %v14966_v50  ;;  %v15043_v27 = vld [vmem:[#allocation3 + $0x80] sm:$0xff]  ;;  %v15099_v45 = vld [vmem:[#allocation3 + $0x92] sm:$0xff]  ;;  %v9705_v47 = vld [vmem:[%s15833_s5 + $0x208] sm:$0xff] }
 0x4eb   :  { %11500 = vmatmul.mubr.msk.f32.gmra.mrb[18].mxu1 %vm119_vm0, %v14970_v51  ;;  %v15095_v29 = vld [vmem:[#allocation3 + $0x82] sm:$0xff]  ;;  %v9694_v34 = vld [vmem:[%s15833_s5 + $0x1f0] sm:$0xff] }
 0x4ec   :  { %11518 = vmatprep.mubr.msk.f32.mxu1 %vm119_vm0, %v5993_v54  ;;  %12374 = vmatpush3.bf16.msra.mxu0 %v12373_v13  ;;  %v15121_v54 = vld [vmem:[#allocation3 + $0x40] sm:$0xff]  ;;  %v12314_v13 = vpack.c.bf16 %v9663_v12, %v9662_v11  ;;  %v9710_v58 = vld [vmem:[%s15833_s5 + $0x230] sm:$0xff]  ;;  %v9763_v1 = vld [vmem:[%s15835_s7 + $0x168] sm:$0xff] }
 0x4ed   :  { %12375 = vmatprep.subr.bf16.mxu0 %v12999_v59  ;;  %v15187_v16 = vld [vmem:[#allocation3 + $0xa1] sm:$0xff] }
 0x4ef   :  { %11519 = vmatmul.mubr.msk.f32.vlgmr.msra.gmra.mrb[12].mxu1 %vm119_vm0, %v14994_v0 }
 0x4f0   :  { %11521 = vmatprep.mubr.msk.f32.mxu1 %vm119_vm0, %v15004_v5  ;;  %12257 = vmatpush3.bf16.msra.mxu1 %v12254_v18  ;;  %v9644_v18 = vld [vmem:[%s15833_s5 + $0x120] sm:$0xff] }
 0x4f1   :  { %12259 = vmatprep.subr.bf16.mxu1 %v12258_v62  ;;  %12377 = vmatpush3.bf16.msra.mxu0 %v12376_v22  ;;  %v12294_v53 = vpack.c.bf16 %v9645_v52, %v9644_v18  ;;  %v9677_v22 = vld [vmem:[%s15833_s5 + $0x1a8] sm:$0xff]  ;;  %v9706_v18 = vld [vmem:[%s15833_s5 + $0x210] sm:$0xff]  ;;  %v9707_v52 = vld [vmem:[%s15833_s5 + $0x218] sm:$0xff] }
 0x4f2   :  { %12378 = vmatprep.subr.bf16.mxu0 %v12999_v59 }
 0x4f3   :  { %11522 = vmatmul.mubr.msk.f32.gmra.mrb[14].mxu1 %vm119_vm0, %v15015_v10 }
 0x4f4   :  { %11524 = vmatprep.mubr.msk.f32.mxu1 %vm119_vm0, %v5997_v14  ;;  %12261 = vmatpush3.bf16.msra.mxu1 %v12258_v62  ;;  %v9657_v62 = vld [vmem:[%s15833_s5 + $0x148] sm:$0xff]  ;;  %v9672_v14 = vld [vmem:[%s15833_s5 + $0x180] sm:$0xff] }
 0x4f5   :  { %12263 = vmatprep.subr.bf16.mxu1 %v12262_v9  ;;  %v12302_v63 = vpack.c.bf16 %v9657_v62, %v9656_v61  ;;  %v7063_v61 = vld [vmem:[#allocation3 + $0xb1] sm:$0xff] }
 0x4f7   :  { %11525 = vmatmul.mubr.msk.f32.gmra.mrb[16].mxu1 %vm119_vm0, %v15033_v32 }
 0x4f8   :  { %11527 = vmatprep.mubr.msk.f32.mxu1 %vm119_vm0, %v15043_v27  ;;  %12265 = vmatpush3.bf16.msra.mxu1 %v12262_v9  ;;  %v12310_v9 = vpack.c.bf16 %v9661_v8, %v9660_v7  ;;  %v9765_v7 = vld [vmem:[%s15835_s7 + $0x178] sm:$0xff] }
 0x4f9   :  { %12267 = vmatprep.subr.bf16.mxu1 %v12266_v17 }
 0x4fb   :  { %11528 = vmatmul.mubr.msk.f32.gmra.mrb[18].mxu1 %vm119_vm0, %v15048_v35 }
 0x4fc   :  { %12269 = vmatpush3.bf16.msra.mxu1 %v12266_v17  ;;  %11546 = vmatprep.mubr.msk.f32.mxu1 %vm119_vm0, %v6284_v31  ;;  %v9674_v17 = vld [vmem:[%s15833_s5 + $0x190] sm:$0xff]  ;;  %v9679_v31 = vld [vmem:[%s15833_s5 + $0x1b8] sm:$0xff] }
 0x4fd   :  { %12271 = vmatprep.subr.bf16.mxu1 %v12270_v20 }
 0x4ff   :  { %11547 = vmatmul.mubr.msk.f32.vlgmr.msra.gmra.mrb[12].mxu1 %vm119_vm0, %v15060_v2 }
 0x500   :  { %11549 = vmatprep.mubr.msk.f32.mxu1 %vm119_vm0, %v15070_v33  ;;  %12273 = vmatpush3.bf16.msra.mxu1 %v12270_v20  ;;  %v12326_v20 = vpack.c.bf16 %v9677_v22, %v9676_v21 }
 0x501   :  { %12275 = vmatprep.subr.bf16.mxu1 %v12274_v3 }
 0x503   :  { %11550 = vmatmul.mubr.msk.f32.gmra.mrb[14].mxu1 %vm119_vm0, %v15074_v40 }
 0x504   :  { %11552 = vmatprep.mubr.msk.f32.mxu1 %vm119_vm0, %v6288_v19  ;;  %12277 = vmatpush3.bf16.msra.mxu1 %v12274_v3  ;;  %v12330_v3 = vpack.c.bf16 %v9679_v31, %v9678_v25  ;;  %v12338_v19 = vpack.c.bf16 %v9691_v42, %v9690_v41 }
 0x505   :  { %12279 = vmatprep.subr.bf16.mxu1 %v12278_v37 }
 0x507   :  { %11553 = vmatmul.mubr.msk.f32.gmra.mrb[16].mxu1 %vm119_vm0, %v15085_v24 }
 0x508   :  { %11555 = vmatprep.mubr.msk.f32.mxu1 %vm119_vm0, %v15095_v29  ;;  %12281 = vmatpush3.bf16.msra.mxu1 %v12278_v37  ;;  %v15231_v37 = vld [vmem:[#allocation3 + $0xa2] sm:$0xff] }
 0x509   :  { %12283 = vmatprep.subr.bf16.mxu1 %v12282_v23 }
 0x50b   :  { %11556 = vmatmul.mubr.msk.f32.gmra.mrb[18].mxu1 %vm119_vm0, %v15099_v45 }
 0x50c   :  { %12285 = vmatpush3.bf16.msra.mxu1 %v12282_v23  ;;  %11574 = vmatprep.mubr.msk.f32.mxu1 %vm119_vm0, %v14994_v0  ;;  %v15143_v0 = vld [vmem:[#allocation3 + $0xa0] sm:$0xff] }
 0x50d   :  { %12287 = vmatprep.subr.bf16.mxu1 %v12286_v43  ;;  %v9692_v23 = vld [vmem:[%s15833_s5 + $0x1e0] sm:$0xff] }
 0x50f   :  { %11575 = vmatmul.mubr.msk.f32.vlgmr.msra.gmra.mrb[12].mxu1 %vm119_vm0, %v15004_v5 }
 0x510   :  { %11577 = vmatprep.mubr.msk.f32.mxu1 %vm119_vm0, %v15015_v10  ;;  %12289 = vmatpush3.bf16.msra.mxu1 %v12286_v43  ;;  %v9695_v43 = vld [vmem:[%s15833_s5 + $0x1f8] sm:$0xff] }
 0x511   :  { %12291 = vmatprep.subr.bf16.mxu1 %v12290_v48 }
 0x513   :  { %11578 = vmatmul.mubr.msk.f32.gmra.mrb[14].mxu1 %vm119_vm0, %v15121_v54 }
 0x514   :  { %11580 = vmatprep.mubr.msk.f32.mxu1 %vm119_vm0, %v15033_v32  ;;  %12293 = vmatpush3.bf16.msra.mxu1 %v12290_v48  ;;  %v9675_v32 = vld [vmem:[%s15833_s5 + $0x198] sm:$0xff]  ;;  %v6909_v48 = vld [vmem:[#allocation3 + $0xb0] sm:$0xff] }
 0x515   :  { %12295 = vmatprep.subr.bf16.mxu1 %v12294_v53  ;;  %v12322_v55 = vpack.c.bf16 %v9675_v32, %v9674_v17 }
 0x517   :  { %11581 = vmatmul.mubr.msk.f32.gmra.mrb[16].mxu1 %vm119_vm0, %v15043_v27 }
 0x518   :  { %11583 = vmatprep.mubr.msk.f32.mxu1 %vm119_vm0, %v15048_v35  ;;  %12297 = vmatpush3.bf16.msra.mxu1 %v12294_v53  ;;  %v9708_v53 = vld [vmem:[%s15833_s5 + $0x220] sm:$0xff] }
 0x519   :  { %12299 = vmatprep.subr.bf16.mxu1 %v12298_v60 }
 0x51b   :  { %11584 = vmatmul.mubr.msk.f32.gmra.mrb[18].mxu1 %vm119_vm0, %v15143_v0 }
 0x51c   :  { %12301 = vmatpush3.bf16.msra.mxu1 %v12298_v60  ;;  %11602 = vmatprep.mubr.msk.f32.mxu1 %vm119_vm0, %v14921_v56  ;;  %v15165_v56 = vld [vmem:[#allocation3 + $0x41] sm:$0xff]  ;;  %v9711_v60 = vld [vmem:[%s15833_s5 + $0x238] sm:$0xff] }
 0x51d   :  { %12303 = vmatprep.subr.bf16.mxu1 %v12302_v63 }
 0x51f   :  { %11603 = vmatmul.mubr.msk.f32.vlgmr.msra.gmra.mrb[12].mxu1 %vm119_vm0, %v14933_v26 }
 0x520   :  { %11605 = vmatprep.mubr.msk.f32.mxu1 %vm119_vm0, %v14939_v44  ;;  %12305 = vmatpush3.bf16.msra.mxu1 %v12302_v63 }
 0x521   :  { %12307 = vmatprep.subr.bf16.mxu1 %v12306_v6 }
 0x523   :  { %11606 = vmatmul.mubr.msk.f32.gmra.mrb[14].mxu1 %vm119_vm0, %v15165_v56 }
 0x524   :  { %11608 = vmatprep.mubr.msk.f32.mxu1 %vm119_vm0, %v14962_v49  ;;  %12309 = vmatpush3.bf16.msra.mxu1 %v12306_v6  ;;  %v12318_v49 = vpack.c.bf16 %v9673_v15, %v9672_v14  ;;  %v9764_v6 = vld [vmem:[%s15835_s7 + $0x170] sm:$0xff] }
 0x525   :  { %12311 = vmatprep.subr.bf16.mxu1 %v12310_v9  ;;  %v12436_v8 = vpack.c.bf16 %v9765_v7, %v9764_v6  ;;  %v9794_v6 = vld [vmem:[%s15835_s7 + $0x240] sm:$0xff]  ;;  %v9795_v7 = vld [vmem:[%s15835_s7 + $0x248] sm:$0xff] }
 0x527   :  { %11609 = vmatmul.mubr.msk.f32.gmra.mrb[16].mxu1 %vm119_vm0, %v14966_v50 }
 0x528   :  { %11611 = vmatprep.mubr.msk.f32.mxu1 %vm119_vm0, %v14970_v51  ;;  %12313 = vmatpush3.bf16.msra.mxu1 %v12310_v9  ;;  %v9720_v9 = vld [vmem:[%s15834_s6] ss:$0 sm:$0xff] }
 0x529   :  { %12315 = vmatprep.subr.bf16.mxu1 %v12314_v13 }
 0x52b   :  { %11612 = vmatmul.mubr.msk.f32.gmra.mrb[18].mxu1 %vm119_vm0, %v15187_v16 }
 0x52c   :  { %12317 = vmatpush3.bf16.msra.mxu1 %v12314_v13  ;;  %11630 = vmatprep.mubr.msk.f32.mxu1 %vm119_vm0, %v15060_v2  ;;  %v9688_v2 = vld [vmem:[%s15833_s5 + $0x1c0] sm:$0xff] }
 0x52d   :  { %12319 = vmatprep.subr.bf16.mxu1 %v12318_v49  ;;  %v12334_v39 = vpack.c.bf16 %v9689_v38, %v9688_v2 }
 0x52f   :  { %11631 = vmatmul.mubr.msk.f32.vlgmr.msra.gmra.mrb[12].mxu1 %vm119_vm0, %v15070_v33 }
 0x530   :  { %11633 = vmatprep.mubr.msk.f32.mxu1 %vm119_vm0, %v15074_v40  ;;  %12321 = vmatpush3.bf16.msra.mxu1 %v12318_v49 }
 0x531   :  { %12323 = vmatprep.subr.bf16.mxu1 %v12322_v55 }
 0x533   :  { %11634 = vmatmul.mubr.msk.f32.gmra.mrb[14].mxu1 %vm119_vm0, %v15209_v30 }
 0x534   :  { %11636 = vmatprep.mubr.msk.f32.mxu1 %vm119_vm0, %v15085_v24  ;;  %12325 = vmatpush3.bf16.msra.mxu1 %v12322_v55  ;;  %v9693_v24 = vld [vmem:[%s15833_s5 + $0x1e8] sm:$0xff] }
 0x535   :  { %12327 = vmatprep.subr.bf16.mxu1 %v12326_v20  ;;  %v12342_v28 = vpack.c.bf16 %v9693_v24, %v9692_v23  ;;  %v9777_v23 = vld [vmem:[%s15835_s7 + $0x1c8] sm:$0xff]  ;;  %v7397_v24 = vld [vmem:[%s15835_s7] sm:$0xff] }
 0x537   :  { %11637 = vmatmul.mubr.msk.f32.gmra.mrb[16].mxu1 %vm119_vm0, %v15095_v29 }
 0x538   :  { %11639 = vmatprep.mubr.msk.f32.mxu1 %vm119_vm0, %v15099_v45  ;;  %12329 = vmatpush3.bf16.msra.mxu1 %v12326_v20 }
 0x539   :  { %12331 = vmatprep.subr.bf16.mxu1 %v12330_v3 }
 0x53b   :  { %11640 = vmatmul.mubr.msk.f32.gmra.mrb[18].mxu1 %vm119_vm0, %v15231_v37 }
 0x53c   :  { %12333 = vmatpush3.bf16.msra.mxu1 %v12330_v3  ;;  %11658 = vmatprep.mubr.msk.f32.mxu1 %vm119_vm0, %v15004_v5  ;;  %v6905_v5 = vld [vmem:[#allocation3 + $0x50] sm:$0xff] }
 0x53d   :  { %12335 = vmatprep.subr.bf16.mxu1 %v12334_v39 }
 0x53f   :  { %11659 = vmatmul.mubr.msk.f32.vlgmr.msra.gmra.mrb[12].mxu1 %vm119_vm0, %v15015_v10  ;;  %v12346_v10 = vpack.c.bf16 %v9695_v43, %v9694_v34 }
 0x540   :  { %11661 = vmatprep.mubr.msk.f32.mxu1 %vm119_vm0, %v15121_v54  ;;  %12337 = vmatpush3.bf16.msra.mxu1 %v12334_v39  ;;  %v9709_v54 = vld [vmem:[%s15833_s5 + $0x228] sm:$0xff] }
 0x541   :  { %12339 = vmatprep.subr.bf16.mxu1 %v12338_v19  ;;  %v12358_v57 = vpack.c.bf16 %v9709_v54, %v9708_v53  ;;  %v7399_v53 = vld [vmem:[%s15835_s7 + $0x10] sm:$0xff]  ;;  %v7400_v54 = vld [vmem:[%s15835_s7 + $0x18] sm:$0xff] }
 0x543   :  { %11662 = vmatmul.mubr.msk.f32.gmra.mrb[14].mxu1 %vm119_vm0, %v6905_v5 }
 0x544   :  { %11664 = vmatprep.mubr.msk.f32.mxu1 %vm119_vm0, %v15043_v27  ;;  %12341 = vmatpush3.bf16.msra.mxu1 %v12338_v19  ;;  %v12350_v27 = vpack.c.bf16 %v9705_v47, %v9704_v46  ;;  %v9776_v19 = vld [vmem:[%s15835_s7 + $0x1c0] sm:$0xff] }
 0x545   :  { %12343 = vmatprep.subr.bf16.mxu1 %v12342_v28  ;;  %v12451_v43 = vpack.c.bf16 %v9777_v23, %v9776_v19 }
 0x547   :  { %11665 = vmatmul.mubr.msk.f32.gmra.mrb[16].mxu1 %vm119_vm0, %v15048_v35  ;;  %v12354_v35 = vpack.c.bf16 %v9707_v52, %v9706_v18  ;;  %v9779_v18 = vld [vmem:[%s15835_s7 + $0x1d8] sm:$0xff] }
 0x548   :  { %11667 = vmatprep.mubr.msk.f32.mxu1 %vm119_vm0, %v15143_v0  ;;  %12345 = vmatpush3.bf16.msra.mxu1 %v12342_v28  ;;  %v9762_v0 = vld [vmem:[%s15835_s7 + $0x160] sm:$0xff]  ;;  %v7398_v28 = vld [vmem:[%s15835_s7 + $0x8] sm:$0xff] }
 0x549   :  { %12347 = vmatprep.subr.bf16.mxu1 %v12346_v10  ;;  %v12433_v4 = vpack.c.bf16 %v9763_v1, %v9762_v0 }
 0x54b   :  { %11668 = vmatmul.mubr.msk.f32.gmra.mrb[18].mxu1 %vm119_vm0, %v6909_v48  ;;  %v9778_v48 = vld [vmem:[%s15835_s7 + $0x1d0] sm:$0xff] }
 0x54c   :  { %12349 = vmatpush3.bf16.msra.mxu1 %v12346_v10  ;;  %11686 = vmatprep.mubr.msk.f32.mxu1 %vm119_vm0, %v14933_v26  ;;  %v7059_v26 = vld [vmem:[#allocation3 + $0x51] sm:$0xff] }
 0x54d   :  { %12351 = vmatprep.subr.bf16.mxu1 %v12350_v27 }
 0x54f   :  { %11687 = vmatmul.mubr.msk.f32.vlgmr.msra.gmra.mrb[12].mxu1 %vm119_vm0, %v14939_v44  ;;  %v12362_v44 = vpack.c.bf16 %v9711_v60, %v9710_v58  ;;  %v12382_v58 = vpack.c.bf16 %v7400_v54, %v7399_v53  ;;  %v9780_v60 = vld [vmem:[%s15835_s7 + $0x1e0] sm:$0xff] }
 0x550   :  { %11689 = vmatprep.mubr.msk.f32.mxu1 %vm119_vm0, %v15165_v56  ;;  %12353 = vmatpush3.bf16.msra.mxu1 %v12350_v27  ;;  %v12379_v27 = vpack.c.bf16 %v7398_v28, %v7397_v24 }
 0x551   :  { %12355 = vmatprep.subr.bf16.mxu1 %v12354_v35 }
 0x553   :  { %11690 = vmatmul.mubr.msk.f32.gmra.mrb[14].mxu1 %vm119_vm0, %v7059_v26  ;;  %v12454_v26 = vpack.c.bf16 %v9779_v18, %v9778_v48 }
 0x554   :  { %11692 = vmatprep.mubr.msk.f32.mxu1 %vm119_vm0, %v14966_v50  ;;  %12357 = vmatpush3.bf16.msra.mxu1 %v12354_v35  ;;  %v7213_v50 = vld [vmem:[#allocation3 + $0x52] sm:$0xff] }
 0x555   :  { %12359 = vmatprep.subr.bf16.mxu1 %v12358_v57 }
 0x557   :  { %11693 = vmatmul.mubr.msk.f32.gmra.mrb[16].mxu1 %vm119_vm0, %v14970_v51  ;;  %v7217_v51 = vld [vmem:[#allocation3 + $0xb2] sm:$0xff] }
 0x558   :  { %11695 = vmatprep.mubr.msk.f32.mxu1 %vm119_vm0, %v15187_v16  ;;  %12361 = vmatpush3.bf16.msra.mxu1 %v12358_v57 }
 0x559   :  { %12363 = vmatprep.subr.bf16.mxu1 %v12362_v44 }
 0x55b   :  { %11696 = vmatmul.mubr.msk.f32.gmra.mrb[18].mxu1 %vm119_vm0, %v7063_v61  ;;  %v7401_v61 = vld [vmem:[%s15835_s7 + $0x20] sm:$0xff] }
 0x55c   :  { %12365 = vmatpush3.bf16.msra.mxu1 %v12362_v44  ;;  %11714 = vmatprep.mubr.msk.f32.mxu1 %vm119_vm0, %v15070_v33  ;;  %v9758_v33 = vld [vmem:[%s15835_s7 + $0x140] sm:$0xff]  ;;  %v9781_v44 = vld [vmem:[%s15835_s7 + $0x1e8] sm:$0xff] }
 0x55d   :  { %12426 = vmatprep.subr.bf16.mxu1 %v12999_v59 }
 0x55f   :  { %11715 = vmatmul.mubr.msk.f32.vlgmr.msra.gmra.mrb[12].mxu1 %vm119_vm0, %v15074_v40  ;;  %v9759_v40 = vld [vmem:[%s15835_s7 + $0x148] sm:$0xff] }
 0x560   :  { %11717 = vmatprep.mubr.msk.f32.mxu1 %vm119_vm0, %v15209_v30  ;;  %v12427_v62 = vpack.c.bf16 %v9759_v40, %v9758_v33  ;;  %v9782_v40 = vld [vmem:[%s15835_s7 + $0x1f0] sm:$0xff] }
 0x562   :  { %12428 = vmatpush3.bf16.msra.mxu1 %v12427_v62  ;;  %v9783_v62 = vld [vmem:[%s15835_s7 + $0x1f8] sm:$0xff] }
 0x563   :  { %11718 = vmatmul.mubr.msk.f32.gmra.mrb[14].mxu1 %vm119_vm0, %v7213_v50  ;;  %12429 = vmatprep.subr.bf16.mxu1 %v12999_v59  ;;  %v7402_v50 = vld [vmem:[%s15835_s7 + $0x28] sm:$0xff]  ;;  %v12460_v0 = vpack.c.bf16 %v9783_v62, %v9782_v40 }
 0x564   :  { %11720 = vmatprep.mubr.msk.f32.mxu1 %vm119_vm0, %v15095_v29  ;;  %v9760_v29 = vld [vmem:[%s15835_s7 + $0x150] sm:$0xff]  ;;  %v12385_v33 = vpack.c.bf16 %v7402_v50, %v7401_v61  ;;  %v9816_v61 = vld [vmem:[%s15835_s7 + $0x2e0] sm:$0xff]  ;;  %v9817_v50 = vld [vmem:[%s15835_s7 + $0x2e8] sm:$0xff] }
 0x565   :  { %v12505_v40 = vpack.c.bf16 %v9817_v50, %v9816_v61 }
 0x567   :  { %11721 = vmatmul.mubr.msk.f32.gmra.mrb[16].mxu1 %vm119_vm0, %v15099_v45  ;;  %v9761_v45 = vld [vmem:[%s15835_s7 + $0x158] sm:$0xff] }
 0x568   :  { %11723 = vmatprep.mubr.msk.f32.mxu1 %vm119_vm0, %v15231_v37  ;;  %v12430_v63 = vpack.c.bf16 %v9761_v45, %v9760_v29  ;;  %v7403_v29 = vld [vmem:[%s15835_s7 + $0x30] sm:$0xff]  ;;  %v7404_v45 = vld [vmem:[%s15835_s7 + $0x38] sm:$0xff] }
 0x56a   :  { %12431 = vmatpush3.bf16.msra.mxu1 %v12430_v63 }
 0x56b   :  { %11724 = vmatmul.mubr.msk.f32.gmra.mrb[18].mxu1 %vm119_vm0, %v7217_v51  ;;  %12432 = vmatprep.subr.bf16.mxu1 %v12999_v59  ;;  %v12457_v51 = vpack.c.bf16 %v9781_v44, %v9780_v60 }
 0x56c   :  { %11837 = vmatprep.mubr.msk.f32.mxu1 %vm13000_vm4, %v12998_v36 }
 0x56e   :  { %12434 = vmatpush3.bf16.msra.mxu1 %v12433_v4  ;;  %v12388_v4 = vpack.c.bf16 %v7404_v45, %v7403_v29  ;;  %v9818_v29 = vld [vmem:[%s15835_s7 + $0x2f0] sm:$0xff]  ;;  %v9819_v45 = vld [vmem:[%s15835_s7 + $0x2f8] sm:$0xff] }
 0x56f   :  { %12435 = vmatprep.subr.bf16.mxu1 %v12999_v59 }
 0x572   :  { %12437 = vmatpush3.bf16.msra.mxu1 %v12436_v8 }
 0x573   :  { %12450 = vmatprep.subr.bf16.mxu1 %v12999_v59 }
 0x632   :  { %v11716_v56 = vpop.f32.mrb[12].mxu1 }
 0x633   :  { %v7372_v11 = vadd.f32 %v11716_v56, %v9720_v9  ;;  %v7317_v12 = vpop.f32.mrb[13].mxu1  ;;  %v9732_v56 = vld [vmem:[%s15835_s7 + $0x88] sm:$0xff] }
 0x634   :  { %v7371_v13 = vadd.f32 %v9720_v9, %v7317_v12  ;;  %v12475_v12 = vpack.c.bf16 %v9795_v7, %v9794_v6 }
 0x635   :  { %v7380_v14 = vmax.f32 %v7372_v11, 0.0 }
 0x636   :  { %v7379_v15 = vmax.f32 %v7371_v13, 0.0  ;;  %v11719_v49 = vpop.f32.mrb[14].mxu1 }
 0x637   :  { %7388 = vst.msk [vmem:[#allocation4 + $0x8] sm:$0xff] %vm119_vm0, %v7380_v14  ;;  %v7374_v16 = vadd.f32 %v11719_v49, %v9720_v9  ;;  %v7327_v17 = vpop.f32.mrb[15].mxu1  ;;  %v9797_v49 = vld [vmem:[%s15835_s7 + $0x258] sm:$0xff] }
 0x638   :  { %7387 = vst.msk [vmem:[#allocation4] sm:$0xff] %vm119_vm0, %v7379_v15  ;;  %v7373_v32 = vadd.f32 %v9720_v9, %v7327_v17  ;;  %v9796_v15 = vld [vmem:[%s15835_s7 + $0x250] sm:$0xff] }
 0x639   :  { %v7382_v55 = vmax.f32 %v7374_v16, 0.0 }
 0x63a   :  { %v7381_v21 = vmax.f32 %v7373_v32, 0.0  ;;  %v11722_v22 = vpop.f32.mrb[16].mxu1  ;;  %v9733_v32 = vld [vmem:[%s15835_s7 + $0x90] sm:$0xff] }
 0x63b   :  { %7390 = vst.msk [vmem:[#allocation4 + $0x18] sm:$0xff] %vm119_vm0, %v7382_v55  ;;  %v7376_v20 = vadd.f32 %v11722_v22, %v9720_v9  ;;  %v7337_v30 = vpop.f32.mrb[17].mxu1  ;;  %v9734_v55 = vld [vmem:[%s15835_s7 + $0x98] sm:$0xff]  ;;  %v12478_v22 = vpack.c.bf16 %v9797_v49, %v9796_v15 }
 0x63c   :  { %7389 = vst.msk [vmem:[#allocation4 + $0x10] sm:$0xff] %vm119_vm0, %v7381_v21  ;;  %v7375_v25 = vadd.f32 %v9720_v9, %v7337_v30  ;;  %v9798_v30 = vld [vmem:[%s15835_s7 + $0x260] sm:$0xff] }
 0x63d   :  { %v7384_v31 = vmax.f32 %v7376_v20, 0.0  ;;  %v12394_v20 = vpack.c.bf16 %v9734_v55, %v9733_v32 }
 0x63e   :  { %v7383_v3 = vmax.f32 %v7375_v25, 0.0  ;;  %v11725_v2 = vpop.f32.mrb[18].mxu1  ;;  %v7834_v46 = vld [vmem:[#allocation4 + $0x9] sm:$0x1]  ;;  %v8010_v13 = vld [vmem:[#allocation4 + $0xb] sm:$0x1] }
 0x63f   :  { %7392 = vst.msk [vmem:[#allocation4 + $0x28] sm:$0xff] %vm119_vm0, %v7384_v31  ;;  %v7378_v38 = vadd.f32 %v11725_v2, %v9720_v9  ;;  %v7347_v39 = vpop.f32.mrb[19].mxu1  ;;  %v7405_v35 = vld [vmem:[#allocation4 + $0x1] sm:$0x1]  ;;  %v7395_v17 = vld [vmem:[#allocation4] sm:$0x1] }
 0x640   :  { %7391 = vst.msk [vmem:[#allocation4 + $0x20] sm:$0xff] %vm119_vm0, %v7383_v3  ;;  %v7377_v37 = vadd.f32 %v9720_v9, %v7347_v39  ;;  %v9731_v9 = vld [vmem:[%s15835_s7 + $0x80] sm:$0xff]  ;;  %v9799_v25 = vld [vmem:[%s15835_s7 + $0x268] sm:$0xff]  ;;  %v9800_v39 = vld [vmem:[%s15835_s7 + $0x270] sm:$0xff] }
 0x641   :  { %v7386_v41 = vmax.f32 %v7378_v38, 0.0  ;;  %v12391_v14 = vpack.c.bf16 %v9732_v56, %v9731_v9  ;;  %v9735_v31 = vld [vmem:[%s15835_s7 + $0xa0] sm:$0xff]  ;;  %v9736_v3 = vld [vmem:[%s15835_s7 + $0xa8] sm:$0xff]  ;;  %v12481_v2 = vpack.c.bf16 %v9799_v25, %v9798_v30 }
 0x642   :  { %v7385_v42 = vmax.f32 %v7377_v37, 0.0  ;;  %v12397_v38 = vpack.c.bf16 %v9736_v3, %v9735_v31  ;;  %v9801_v37 = vld [vmem:[%s15835_s7 + $0x278] sm:$0xff]  ;;  %v7569_v54 = vld [vmem:[#allocation4 + $0x2] sm:$0x1]  ;;  %v9831_v9 = vld [vmem:[%s15835_s7 + $0x348] sm:$0xff] }
 0x643   :  { %7394 = vst.msk [vmem:[#allocation4 + $0x38] sm:$0xff] %vm119_vm0, %v7386_v41  ;;  %v9737_v41 = vld [vmem:[%s15835_s7 + $0xb0] sm:$0xff]  ;;  %v12484_v23 = vpack.c.bf16 %v9801_v37, %v9800_v39  ;;  %v7657_v55 = vld [vmem:[#allocation4 + $0x3] sm:$0x1]  ;;  %v9835_v3 = vld [vmem:[%s15835_s7 + $0x368] sm:$0xff] }
 0x644   :  { %7393 = vst.msk [vmem:[#allocation4 + $0x30] sm:$0xff] %vm119_vm0, %v7385_v42  ;;  %v9738_v42 = vld [vmem:[%s15835_s7 + $0xb8] sm:$0xff]  ;;  %v8187_v48 = vld [vmem:[#allocation4 + $0x11] sm:$0x1]  ;;  %v8363_v15 = vld [vmem:[#allocation4 + $0x13] sm:$0x1] }
 0x645   :  { %v12400_v28 = vpack.c.bf16 %v9738_v42, %v9737_v41  ;;  %v9834_v31 = vld [vmem:[%s15835_s7 + $0x360] sm:$0xff]  ;;  %v9836_v41 = vld [vmem:[%s15835_s7 + $0x370] sm:$0xff]  ;;  %v9837_v42 = vld [vmem:[%s15835_s7 + $0x378] sm:$0xff] }
 0x646   :  { %v7835_v5 = vld [vmem:[#allocation4 + $0x29] sm:$0x1]  ;;  %v8011_v63 = vld [vmem:[#allocation4 + $0x2b] sm:$0x1]  ;;  %v12529_v39 = vpack.c.bf16 %v9835_v3, %v9834_v31  ;;  %v9792_v31 = vld [vmem:[%s15835_s7 + $0x238] sm:$0xff] }
 0x647   :  { %v7847_v34 = vrot.slane %v7835_v5, 7  ;;  %v7406_v10 = vld [vmem:[#allocation4 + $0x21] sm:$0x1]  ;;  %v7396_v1 = vld [vmem:[#allocation4 + $0x20] sm:$0x1]  ;;  %v8023_v8 = vrot.slane %v8011_v63, 7 }
 0x648   :  { %v7418_v47 = vrot.slane %v7406_v10, 7  ;;  %v7495_v11 = vrot.slane %v7396_v1, 7  ;;  %v7570_v24 = vld [vmem:[#allocation4 + $0x22] sm:$0x1]  ;;  %v9746_v63 = vld [vmem:[%s15835_s7 + $0xf0] sm:$0xff] }
 0x649   :  { %v7848_v52 = vsel %vm7419_vm5, %v7847_v34, %v7834_v46  ;;  %v8024_v16 = vsel %vm7419_vm5, %v8023_v8, %v8010_v13  ;;  %v9812_v5 = vld [vmem:[%s15835_s7 + $0x2c0] sm:$0xff]  ;;  %v9813_v34 = vld [vmem:[%s15835_s7 + $0x2c8] sm:$0xff] }
 0x64a   :  { %11838 = vmatmul.mubr.msk.f32.vlgmr.msra.gmra.mrb[20].mxu1 %vm119_vm0, %v7848_v52  ;;  %v7420_v57 = vsel %vm7419_vm5, %v7418_v47, %v7405_v35  ;;  %v7496_v21 = vsel %vm7419_vm5, %v7495_v11, %v7395_v17  ;;  %v9740_v10 = vld [vmem:[%s15835_s7 + $0xc0] sm:$0xff]  ;;  %v9741_v46 = vld [vmem:[%s15835_s7 + $0xc8] sm:$0xff]  ;;  %v7582_v47 = vrot.slane %v7570_v24, 7  ;;  %v9814_v52 = vld [vmem:[%s15835_s7 + $0x2d0] sm:$0xff] }
 0x64b   :  { %12452 = vmatpush3.bf16.msra.mxu1 %v12451_v43  ;;  %11743 = vmatmul.mubr.msk.f32.vlgmr.msra.gmra.mrb[56].mxu0 %vm119_vm0, %v7420_v57  ;;  %v8188_v19 = vld [vmem:[#allocation4 + $0x31] sm:$0x1]  ;;  %v12403_v18 = vpack.c.bf16 %v9741_v46, %v9740_v10  ;;  %v9815_v35 = vld [vmem:[%s15835_s7 + $0x2d8] sm:$0xff]  ;;  %v8364_v1 = vld [vmem:[#allocation4 + $0x33] sm:$0x1] }
 0x64c   :  { %12380 = vmatpush3.bf16.msra.mxu0 %v12379_v27  ;;  %12453 = vmatprep.subr.bf16.mxu1 %v12999_v59  ;;  %v8200_v43 = vrot.slane %v8188_v19, 7  ;;  %v12499_v27 = vpack.c.bf16 %v9813_v34, %v9812_v5  ;;  %v9742_v57 = vld [vmem:[%s15835_s7 + $0xd0] sm:$0xff]  ;;  %v12502_v60 = vpack.c.bf16 %v9815_v35, %v9814_v52  ;;  %v7658_v6 = vld [vmem:[#allocation4 + $0x23] sm:$0x1]  ;;  %v8376_v56 = vrot.slane %v8364_v1, 7  ;;  %v9833_v17 = vld [vmem:[%s15835_s7 + $0x358] sm:$0xff] }
 0x64d   :  { %12381 = vmatprep.subr.bf16.mxu0 %v12999_v59  ;;  %11875 = vmatprep.mubr.msk.f32.mxu1 %vm13000_vm4, %v12998_v36  ;;  %v9830_v8 = vld [vmem:[%s15835_s7 + $0x340] sm:$0xff]  ;;  %v7670_v13 = vrot.slane %v7658_v6, 7  ;;  %v9755_v19 = vld [vmem:[%s15835_s7 + $0x130] sm:$0xff]  ;;  %v8541_v24 = vld [vmem:[#allocation4 + $0x39] sm:$0x1] }
 0x64e   :  { %11761 = vmatprep.mubr.msk.f32.mxu0 %vm13000_vm4, %v12998_v36  ;;  %v8201_v53 = vsel %vm7419_vm5, %v8200_v43, %v8187_v48  ;;  %v9749_v11 = vld [vmem:[%s15835_s7 + $0x100] sm:$0xff]  ;;  %v8377_v32 = vsel %vm7419_vm5, %v8376_v56, %v8363_v15  ;;  %v7747_v5 = vld [vmem:[#allocation4 + $0x28] sm:$0x1]  ;;  %v8553_v46 = vrot.slane %v8541_v24, 7  ;;  %v8540_v52 = vld [vmem:[#allocation4 + $0x19] sm:$0x1] }
 0x64f   :  { %12455 = vmatpush3.bf16.msra.mxu1 %v12454_v26  ;;  %v9743_v26 = vld [vmem:[%s15835_s7 + $0xd8] sm:$0xff]  ;;  %v9848_v43 = vld [vmem:[%s15835_s7 + $0x3c0] sm:$0xff]  ;;  %v9849_v10 = vld [vmem:[%s15835_s7 + $0x3c8] sm:$0xff]  ;;  %v7759_v48 = vrot.slane %v7747_v5, 7 }
 0x650   :  { %12383 = vmatpush3.bf16.msra.mxu0 %v12382_v58  ;;  %12456 = vmatprep.subr.bf16.mxu1 %v12999_v59  ;;  %v7583_v58 = vsel %vm7419_vm5, %v7582_v47, %v7569_v54  ;;  %v12406_v44 = vpack.c.bf16 %v9743_v26, %v9742_v57  ;;  %v9767_v47 = vld [vmem:[%s15835_s7 + $0x180] sm:$0xff]  ;;  %v9851_v54 = vld [vmem:[%s15835_s7 + $0x3d8] sm:$0xff]  ;;  %v8554_v57 = vsel %vm7419_vm5, %v8553_v46, %v8540_v52  ;;  %v7746_v26 = vld [vmem:[#allocation4 + $0x8] sm:$0x1] }
 0x651   :  { %12384 = vmatprep.subr.bf16.mxu0 %v12999_v59  ;;  %v9773_v1 = vld [vmem:[%s15835_s7 + $0x1b0] sm:$0xff]  ;;  %v8717_v6 = vld [vmem:[#allocation4 + $0x3b] sm:$0x1]  ;;  %v9807_v5 = vld [vmem:[%s15835_s7 + $0x2a0] sm:$0xff] }
 0x652   :  { %v8729_v56 = vrot.slane %v8717_v6, 7  ;;  %v8100_v3 = vld [vmem:[#allocation4 + $0x30] sm:$0x1]  ;;  %v9810_v46 = vld [vmem:[%s15835_s7 + $0x2b8] sm:$0xff] }
 0x653   :  { %12458 = vmatpush3.bf16.msra.mxu1 %v12457_v51  ;;  %v9744_v51 = vld [vmem:[%s15835_s7 + $0xe0] sm:$0xff] }
 0x654   :  { %12386 = vmatpush3.bf16.msra.mxu0 %v12385_v33  ;;  %12459 = vmatprep.subr.bf16.mxu1 %v12999_v59  ;;  %v9745_v33 = vld [vmem:[%s15835_s7 + $0xe8] sm:$0xff] }
 0x655   :  { %12387 = vmatprep.subr.bf16.mxu0 %v12999_v59  ;;  %v12409_v62 = vpack.c.bf16 %v9745_v33, %v9744_v51  ;;  %v9852_v51 = vld [vmem:[%s15835_s7 + $0x3e0] sm:$0xff]  ;;  %v9853_v33 = vld [vmem:[%s15835_s7 + $0x3e8] sm:$0xff] }
 0x657   :  { %12461 = vmatpush3.bf16.msra.mxu1 %v12460_v0  ;;  %v9747_v0 = vld [vmem:[%s15835_s7 + $0xf8] sm:$0xff] }
 0x658   :  { %12389 = vmatpush3.bf16.msra.mxu0 %v12388_v4  ;;  %12474 = vmatprep.subr.bf16.mxu1 %v12999_v59  ;;  %v12508_v4 = vpack.c.bf16 %v9819_v45, %v9818_v29  ;;  %v12412_v7 = vpack.c.bf16 %v9747_v0, %v9746_v63  ;;  %v12553_v29 = vpack.c.bf16 %v9853_v33, %v9852_v51  ;;  %v9854_v63 = vld [vmem:[%s15835_s7 + $0x3f0] sm:$0xff]  ;;  %v9855_v0 = vld [vmem:[%s15835_s7 + $0x3f8] sm:$0xff] }
 0x659   :  { %12390 = vmatprep.subr.bf16.mxu0 %v12999_v59  ;;  %v9828_v51 = vld [vmem:[%s15835_s7 + $0x338] sm:$0xff] }
 0x65a   :  { %11876 = vmatmul.mubr.msk.f32.vlgmr.msra.gmra.mrb[22].mxu1 %vm119_vm0, %v8024_v16  ;;  %v9832_v16 = vld [vmem:[%s15835_s7 + $0x350] sm:$0xff]  ;;  %v8453_v33 = vld [vmem:[#allocation4 + $0x38] sm:$0x1] }
 0x65b   :  { %11762 = vmatmul.mubr.msk.f32.vlgmr.msra.gmra.mrb[58].mxu0 %vm119_vm0, %v7496_v21  ;;  %12476 = vmatpush3.bf16.msra.mxu1 %v12475_v12  ;;  %v9750_v12 = vld [vmem:[%s15835_s7 + $0x108] sm:$0xff]  ;;  %v9751_v21 = vld [vmem:[%s15835_s7 + $0x110] sm:$0xff]  ;;  %v12526_v30 = vpack.c.bf16 %v9833_v17, %v9832_v16 }
 0x65c   :  { %12392 = vmatpush3.bf16.msra.mxu0 %v12391_v14  ;;  %12477 = vmatprep.subr.bf16.mxu1 %v12999_v59  ;;  %v12523_v14 = vpack.c.bf16 %v9831_v9, %v9830_v8  ;;  %v12415_v49 = vpack.c.bf16 %v9750_v12, %v9749_v11  ;;  %v7923_v8 = vld [vmem:[#allocation4 + $0x2a] sm:$0x1]  ;;  %v9785_v11 = vld [vmem:[%s15835_s7 + $0x200] sm:$0xff]  ;;  %v9787_v17 = vld [vmem:[%s15835_s7 + $0x210] sm:$0xff] }
 0x65d   :  { %12393 = vmatprep.subr.bf16.mxu0 %v12999_v59  ;;  %11913 = vmatprep.mubr.msk.f32.mxu1 %vm13000_vm4, %v12998_v36  ;;  %v9786_v12 = vld [vmem:[%s15835_s7 + $0x208] sm:$0xff] }
 0x65e   :  { %11780 = vmatprep.mubr.msk.f32.mxu0 %vm13000_vm4, %v12998_v36  ;;  %v12463_v15 = vpack.c.bf16 %v9786_v12, %v9785_v11  ;;  %v7922_v16 = vld [vmem:[#allocation4 + $0xa] sm:$0x1]  ;;  %v9845_v11 = vld [vmem:[%s15835_s7 + $0x3b0] sm:$0xff]  ;;  %v8629_v12 = vld [vmem:[#allocation4 + $0x3a] sm:$0x1] }
 0x65f   :  { %12479 = vmatpush3.bf16.msra.mxu1 %v12478_v22  ;;  %v9752_v22 = vld [vmem:[%s15835_s7 + $0x118] sm:$0xff] }
 0x660   :  { %12395 = vmatpush3.bf16.msra.mxu0 %v12394_v20  ;;  %12480 = vmatprep.subr.bf16.mxu1 %v12999_v59  ;;  %v7671_v20 = vsel %vm7419_vm5, %v7670_v13, %v7657_v55  ;;  %v12418_v25 = vpack.c.bf16 %v9752_v22, %v9751_v21  ;;  %v7935_v13 = vrot.slane %v7923_v8, 7  ;;  %v9789_v22 = vld [vmem:[%s15835_s7 + $0x220] sm:$0xff] }
 0x661   :  { %12396 = vmatprep.subr.bf16.mxu0 %v12999_v59  ;;  %v9843_v8 = vld [vmem:[%s15835_s7 + $0x3a0] sm:$0xff] }
 0x662   :  { %v7936_v55 = vsel %vm7419_vm5, %v7935_v13, %v7922_v16 }
 0x663   :  { %12482 = vmatpush3.bf16.msra.mxu1 %v12481_v2  ;;  %v9753_v2 = vld [vmem:[%s15835_s7 + $0x120] sm:$0xff] }
 0x664   :  { %12398 = vmatpush3.bf16.msra.mxu0 %v12397_v38  ;;  %12483 = vmatprep.subr.bf16.mxu1 %v12999_v59  ;;  %v9754_v38 = vld [vmem:[%s15835_s7 + $0x128] sm:$0xff] }
 0x665   :  { %12399 = vmatprep.subr.bf16.mxu0 %v12999_v59  ;;  %v12421_v37 = vpack.c.bf16 %v9754_v38, %v9753_v2  ;;  %v9803_v38 = vld [vmem:[%s15835_s7 + $0x280] sm:$0xff] }
 0x667   :  { %12485 = vmatpush3.bf16.msra.mxu1 %v12484_v23  ;;  %v9756_v23 = vld [vmem:[%s15835_s7 + $0x138] sm:$0xff] }
 0x668   :  { %12401 = vmatpush3.bf16.msra.mxu0 %v12400_v28  ;;  %12498 = vmatprep.subr.bf16.mxu1 %v12999_v59  ;;  %v12532_v28 = vpack.c.bf16 %v9837_v42, %v9836_v41  ;;  %v12424_v34 = vpack.c.bf16 %v9756_v23, %v9755_v19  ;;  %v8099_v42 = vld [vmem:[#allocation4 + $0x10] sm:$0x1]  ;;  %v9806_v23 = vld [vmem:[%s15835_s7 + $0x298] sm:$0xff] }
 0x669   :  { %12402 = vmatprep.subr.bf16.mxu0 %v12999_v59  ;;  %v9805_v19 = vld [vmem:[%s15835_s7 + $0x290] sm:$0xff] }
 0x66a   :  { %11914 = vmatmul.mubr.msk.f32.vlgmr.msra.gmra.mrb[24].mxu1 %vm119_vm0, %v8201_v53  ;;  %v9850_v53 = vld [vmem:[%s15835_s7 + $0x3d0] sm:$0xff] }
 0x66b   :  { %11781 = vmatmul.mubr.msk.f32.vlgmr.msra.gmra.mrb[60].mxu0 %vm119_vm0, %v7583_v58  ;;  %12500 = vmatpush3.bf16.msra.mxu1 %v12499_v27  ;;  %v9768_v27 = vld [vmem:[%s15835_s7 + $0x188] sm:$0xff]  ;;  %v9769_v58 = vld [vmem:[%s15835_s7 + $0x190] sm:$0xff]  ;;  %v12550_v61 = vpack.c.bf16 %v9851_v54, %v9850_v53 }
 0x66c   :  { %12404 = vmatpush3.bf16.msra.mxu0 %v12403_v18  ;;  %12501 = vmatprep.subr.bf16.mxu1 %v12999_v59  ;;  %v12547_v18 = vpack.c.bf16 %v9849_v10, %v9848_v43  ;;  %v12439_v35 = vpack.c.bf16 %v9768_v27, %v9767_v47  ;;  %v9809_v10 = vld [vmem:[%s15835_s7 + $0x2b0] sm:$0xff] }
 0x66d   :  { %12405 = vmatprep.subr.bf16.mxu0 %v12999_v59  ;;  %11951 = vmatprep.mubr.msk.f32.mxu1 %vm13000_vm4, %v12998_v36  ;;  %v8276_v47 = vld [vmem:[#allocation4 + $0x32] sm:$0x1]  ;;  %v12496_v27 = vpack.c.bf16 %v9810_v46, %v9809_v10 }
 0x66e   :  { %11799 = vmatprep.mubr.msk.f32.mxu0 %vm13000_vm4, %v12998_v36  ;;  %v8288_v52 = vrot.slane %v8276_v47, 7  ;;  %v8275_v53 = vld [vmem:[#allocation4 + $0x12] sm:$0x1] }
 0x66f   :  { %12503 = vmatpush3.bf16.msra.mxu1 %v12502_v60  ;;  %v9770_v60 = vld [vmem:[%s15835_s7 + $0x198] sm:$0xff]  ;;  %v9823_v54 = vld [vmem:[%s15835_s7 + $0x310] sm:$0xff] }
 0x670   :  { %12407 = vmatpush3.bf16.msra.mxu0 %v12406_v44  ;;  %12504 = vmatprep.subr.bf16.mxu1 %v12999_v59  ;;  %v7760_v44 = vsel %vm7419_vm5, %v7759_v48, %v7746_v26  ;;  %v12442_v50 = vpack.c.bf16 %v9770_v60, %v9769_v58  ;;  %v9821_v48 = vld [vmem:[%s15835_s7 + $0x300] sm:$0xff]  ;;  %v8289_v26 = vsel %vm7419_vm5, %v8288_v52, %v8275_v53 }
 0x671   :  { %12408 = vmatprep.subr.bf16.mxu0 %v12999_v59  ;;  %v9825_v60 = vld [vmem:[%s15835_s7 + $0x320] sm:$0xff] }
 0x673   :  { %12506 = vmatpush3.bf16.msra.mxu1 %v12505_v40  ;;  %v9771_v40 = vld [vmem:[%s15835_s7 + $0x1a0] sm:$0xff] }
 0x674   :  { %12410 = vmatpush3.bf16.msra.mxu0 %v12409_v62  ;;  %12507 = vmatprep.subr.bf16.mxu1 %v12999_v59  ;;  %v9772_v62 = vld [vmem:[%s15835_s7 + $0x1a8] sm:$0xff] }
 0x675   :  { %12411 = vmatprep.subr.bf16.mxu0 %v12999_v59  ;;  %v12445_v45 = vpack.c.bf16 %v9772_v62, %v9771_v40  ;;  %v9839_v62 = vld [vmem:[%s15835_s7 + $0x380] sm:$0xff] }
 0x677   :  { %12509 = vmatpush3.bf16.msra.mxu1 %v12508_v4  ;;  %v9774_v4 = vld [vmem:[%s15835_s7 + $0x1b8] sm:$0xff] }
 0x678   :  { %12413 = vmatpush3.bf16.msra.mxu0 %v12412_v7  ;;  %12522 = vmatprep.subr.bf16.mxu1 %v12999_v59  ;;  %v12556_v7 = vpack.c.bf16 %v9855_v0, %v9854_v63  ;;  %v12448_v9 = vpack.c.bf16 %v9774_v4, %v9773_v1  ;;  %v8452_v0 = vld [vmem:[#allocation4 + $0x18] sm:$0x1]  ;;  %v9841_v1 = vld [vmem:[%s15835_s7 + $0x390] sm:$0xff] }
 0x679   :  { %12414 = vmatprep.subr.bf16.mxu0 %v12999_v59  ;;  %v9842_v4 = vld [vmem:[%s15835_s7 + $0x398] sm:$0xff] }
 0x67a   :  { %11952 = vmatmul.mubr.msk.f32.vlgmr.msra.gmra.mrb[26].mxu1 %vm119_vm0, %v8377_v32  ;;  %v9788_v32 = vld [vmem:[%s15835_s7 + $0x218] sm:$0xff] }
 0x67b   :  { %11800 = vmatmul.mubr.msk.f32.vlgmr.msra.gmra.mrb[62].mxu0 %vm119_vm0, %v7671_v20  ;;  %12524 = vmatpush3.bf16.msra.mxu1 %v12523_v14  ;;  %v8716_v14 = vld [vmem:[#allocation4 + $0x1b] sm:$0x1]  ;;  %v12466_v21 = vpack.c.bf16 %v9788_v32, %v9787_v17  ;;  %v9790_v20 = vld [vmem:[%s15835_s7 + $0x228] sm:$0xff] }
 0x67c   :  { %12416 = vmatpush3.bf16.msra.mxu0 %v12415_v49  ;;  %12525 = vmatprep.subr.bf16.mxu1 %v12999_v59  ;;  %v8730_v49 = vsel %vm7419_vm5, %v8729_v56, %v8716_v14  ;;  %v8641_v14 = vrot.slane %v8629_v12, 7 }
 0x67d   :  { %12417 = vmatprep.subr.bf16.mxu0 %v12999_v59  ;;  %11989 = vmatprep.mubr.msk.f32.mxu1 %vm13000_vm4, %v12998_v36 }
 0x67e   :  { %11818 = vmatprep.mubr.msk.f32.mxu0 %vm13000_vm4, %v12998_v36 }
 0x67f   :  { %12527 = vmatpush3.bf16.msra.mxu1 %v12526_v30  ;;  %v12469_v30 = vpack.c.bf16 %v9790_v20, %v9789_v22 }
 0x680   :  { %12419 = vmatpush3.bf16.msra.mxu0 %v12418_v25  ;;  %12528 = vmatprep.subr.bf16.mxu1 %v12999_v59  ;;  %v9791_v25 = vld [vmem:[%s15835_s7 + $0x230] sm:$0xff] }
 0x681   :  { %12420 = vmatprep.subr.bf16.mxu0 %v12999_v59  ;;  %v12472_v2 = vpack.c.bf16 %v9792_v31, %v9791_v25 }
 0x683   :  { %12530 = vmatpush3.bf16.msra.mxu1 %v12529_v39  ;;  %v9804_v39 = vld [vmem:[%s15835_s7 + $0x288] sm:$0xff] }
 0x684   :  { %12422 = vmatpush3.bf16.msra.mxu0 %v12421_v37  ;;  %12531 = vmatprep.subr.bf16.mxu1 %v12999_v59  ;;  %v8112_v37 = vrot.slane %v8100_v3, 7  ;;  %v12487_v41 = vpack.c.bf16 %v9804_v39, %v9803_v38 }
 0x685   :  { %12423 = vmatprep.subr.bf16.mxu0 %v12999_v59 }
 0x686   :  { %v8113_v24 = vsel %vm7419_vm5, %v8112_v37, %v8099_v42 }
 0x687   :  { %12533 = vmatpush3.bf16.msra.mxu1 %v12532_v28  ;;  %v12490_v28 = vpack.c.bf16 %v9806_v23, %v9805_v19 }
 0x688   :  { %12425 = vmatpush3.bf16.msra.mxu0 %v12424_v34  ;;  %12546 = vmatprep.subr.bf16.mxu1 %v12999_v59  ;;  %v9808_v34 = vld [vmem:[%s15835_s7 + $0x2a8] sm:$0xff] }
 0x689   :  { %12438 = vmatprep.subr.bf16.mxu0 %v12999_v59  ;;  %v12493_v43 = vpack.c.bf16 %v9808_v34, %v9807_v5 }
 0x68a   :  { %11990 = vmatmul.mubr.msk.f32.vlgmr.msra.gmra.mrb[28].mxu1 %vm119_vm0, %v8554_v57  ;;  %v9824_v57 = vld [vmem:[%s15835_s7 + $0x318] sm:$0xff] }
 0x68b   :  { %11819 = vmatmul.mubr.msk.f32.vlgmr.msra.gmra.mrb[64].mxu0 %vm119_vm0, %v7760_v44  ;;  %12548 = vmatpush3.bf16.msra.mxu1 %v12547_v18  ;;  %v9822_v18 = vld [vmem:[%s15835_s7 + $0x308] sm:$0xff]  ;;  %v12514_v58 = vpack.c.bf16 %v9824_v57, %v9823_v54 }
 0x68c   :  { %12440 = vmatpush3.bf16.msra.mxu0 %v12439_v35  ;;  %12549 = vmatprep.subr.bf16.mxu1 %v12999_v59  ;;  %v12511_v35 = vpack.c.bf16 %v9822_v18, %v9821_v48  ;;  %v9826_v44 = vld [vmem:[%s15835_s7 + $0x328] sm:$0xff] }
 0x68d   :  { %12441 = vmatprep.subr.bf16.mxu0 %v12999_v59  ;;  %12027 = vmatprep.mubr.msk.f32.mxu1 %vm13000_vm4, %v12998_v36 }
 0x68e   :  { %11856 = vmatprep.mubr.msk.f32.mxu0 %vm13000_vm4, %v12998_v36 }
 0x68f   :  { %12551 = vmatpush3.bf16.msra.mxu1 %v12550_v61  ;;  %v12517_v61 = vpack.c.bf16 %v9826_v44, %v9825_v60 }
 0x690   :  { %12443 = vmatpush3.bf16.msra.mxu0 %v12442_v50  ;;  %12552 = vmatprep.subr.bf16.mxu1 %v12999_v59  ;;  %v9827_v50 = vld [vmem:[%s15835_s7 + $0x330] sm:$0xff] }
 0x691   :  { %12444 = vmatprep.subr.bf16.mxu0 %v12999_v59  ;;  %v12520_v40 = vpack.c.bf16 %v9828_v51, %v9827_v50 }
 0x693   :  { %12554 = vmatpush3.bf16.msra.mxu1 %v12553_v29  ;;  %v9840_v29 = vld [vmem:[%s15835_s7 + $0x388] sm:$0xff] }
 0x694   :  { %12446 = vmatpush3.bf16.msra.mxu0 %v12445_v45  ;;  %12555 = vmatprep.subr.bf16.mxu1 %v12999_v59  ;;  %v8465_v45 = vrot.slane %v8453_v33, 7  ;;  %v12535_v63 = vpack.c.bf16 %v9840_v29, %v9839_v62  ;;  %v9857_v29 = vld [vmem:[%s15836_s8] ss:$0 sm:$0xff] }
 0x695   :  { %12447 = vmatprep.subr.bf16.mxu0 %v12999_v59 }
 0x696   :  { %v8466_v6 = vsel %vm7419_vm5, %v8465_v45, %v8452_v0 }
 0x697   :  { %12557 = vmatpush3.bf16.msra.mxu1 %v12556_v7  ;;  %v12538_v7 = vpack.c.bf16 %v9842_v4, %v9841_v1 }
 0x698   :  { %12449 = vmatpush3.bf16.msra.mxu0 %v12448_v9  ;;  %v9844_v9 = vld [vmem:[%s15835_s7 + $0x3a8] sm:$0xff] }
 0x699   :  { %12462 = vmatprep.subr.bf16.mxu0 %v12999_v59  ;;  %v12541_v56 = vpack.c.bf16 %v9844_v9, %v9843_v8 }
 0x69a   :  { %12028 = vmatmul.mubr.msk.f32.vlgmr.msra.gmra.mrb[30].mxu1 %vm119_vm0, %v8730_v49 }
 0x69b   :  { %11857 = vmatmul.mubr.msk.f32.vlgmr.msra.gmra.mrb[66].mxu0 %vm119_vm0, %v7936_v55 }
 0x69c   :  { %12464 = vmatpush3.bf16.msra.mxu0 %v12463_v15  ;;  %11894 = vmatprep.mubr.msk.f32.mxu0 %vm13000_vm4, %v12998_v36  ;;  %v8628_v15 = vld [vmem:[#allocation4 + $0x1a] sm:$0x1] }
 0x69d   :  { %12465 = vmatprep.subr.bf16.mxu0 %v12999_v59  ;;  %v8642_v49 = vsel %vm7419_vm5, %v8641_v14, %v8628_v15 }
 0x6a0   :  { %12467 = vmatpush3.bf16.msra.mxu0 %v12466_v21 }
 0x6a1   :  { %12468 = vmatprep.subr.bf16.mxu0 %v12999_v59 }
 0x6a4   :  { %12470 = vmatpush3.bf16.msra.mxu0 %v12469_v30 }
 0x6a5   :  { %12471 = vmatprep.subr.bf16.mxu0 %v12999_v59 }
 0x6a8   :  { %12473 = vmatpush3.bf16.msra.mxu0 %v12472_v2 }
 0x6a9   :  { %12486 = vmatprep.subr.bf16.mxu0 %v12999_v59 }
 0x6ab   :  { %11895 = vmatmul.mubr.msk.f32.vlgmr.msra.gmra.mrb[68].mxu0 %vm119_vm0, %v8113_v24 }
 0x6ac   :  { %12488 = vmatpush3.bf16.msra.mxu0 %v12487_v41  ;;  %11932 = vmatprep.mubr.msk.f32.mxu0 %vm13000_vm4, %v12998_v36 }
 0x6ad   :  { %12489 = vmatprep.subr.bf16.mxu0 %v12999_v59 }
 0x6b0   :  { %12491 = vmatpush3.bf16.msra.mxu0 %v12490_v28 }
 0x6b1   :  { %12492 = vmatprep.subr.bf16.mxu0 %v12999_v59 }
 0x6b4   :  { %12494 = vmatpush3.bf16.msra.mxu0 %v12493_v43 }
 0x6b5   :  { %12495 = vmatprep.subr.bf16.mxu0 %v12999_v59 }
 0x6b8   :  { %12497 = vmatpush3.bf16.msra.mxu0 %v12496_v27 }
 0x6b9   :  { %12510 = vmatprep.subr.bf16.mxu0 %v12999_v59 }
 0x6bb   :  { %11933 = vmatmul.mubr.msk.f32.vlgmr.msra.gmra.mrb[70].mxu0 %vm119_vm0, %v8289_v26 }
 0x6bc   :  { %12512 = vmatpush3.bf16.msra.mxu0 %v12511_v35  ;;  %11970 = vmatprep.mubr.msk.f32.mxu0 %vm13000_vm4, %v12998_v36 }
 0x6bd   :  { %12513 = vmatprep.subr.bf16.mxu0 %v12999_v59 }
 0x6c0   :  { %12515 = vmatpush3.bf16.msra.mxu0 %v12514_v58 }
 0x6c1   :  { %12516 = vmatprep.subr.bf16.mxu0 %v12999_v59 }
 0x6c4   :  { %12518 = vmatpush3.bf16.msra.mxu0 %v12517_v61 }
 0x6c5   :  { %12519 = vmatprep.subr.bf16.mxu0 %v12999_v59 }
 0x6c8   :  { %12521 = vmatpush3.bf16.msra.mxu0 %v12520_v40 }
 0x6c9   :  { %12534 = vmatprep.subr.bf16.mxu0 %v12999_v59 }
 0x6cb   :  { %11971 = vmatmul.mubr.msk.f32.vlgmr.msra.gmra.mrb[72].mxu0 %vm119_vm0, %v8466_v6 }
 0x6cc   :  { %12536 = vmatpush3.bf16.msra.mxu0 %v12535_v63  ;;  %12008 = vmatprep.mubr.msk.f32.mxu0 %vm13000_vm4, %v12998_v36  ;;  %v9846_v36 = vld [vmem:[%s15835_s7 + $0x3b8] sm:$0xff] }
 0x6cd   :  { %12537 = vmatprep.subr.bf16.mxu0 %v12999_v59  ;;  %v12544_v13 = vpack.c.bf16 %v9846_v36, %v9845_v11 }
 0x6d0   :  { %12539 = vmatpush3.bf16.msra.mxu0 %v12538_v7 }
 0x6d1   :  { %12540 = vmatprep.subr.bf16.mxu0 %v12999_v59 }
 0x6d4   :  { %12542 = vmatpush3.bf16.msra.mxu0 %v12541_v56 }
 0x6d5   :  { %12543 = vmatprep.subr.bf16.mxu0 %v12999_v59 }
 0x6d8   :  { %12545 = vmatpush3.bf16.msra.mxu0 %v12544_v13 }
 0x6db   :  { %12009 = vmatmul.mubr.msk.f32.vlgmr.msra.gmra.mrb[74].mxu0 %vm119_vm0, %v8642_v49 }
 0x71d   :  { %v7917_v16 = vpop.f32.mrb[20].mxu1 }
 0x71e   :  { %v7489_v17 = vpop.f32.mrb[56].mxu0  ;;  %v11839_v32 = vpop.f32.mrb[21].mxu1 }
 0x71f   :  { %v11744_v55 = vpop.f32.mrb[57].mxu0 }
 0x72d   :  { %v8093_v21 = vpop.f32.mrb[22].mxu1 }
 0x72e   :  { %v7565_v22 = vpop.f32.mrb[58].mxu0  ;;  %v11877_v20 = vpop.f32.mrb[23].mxu1 }
 0x72f   :  { %v7566_v30 = vadd.f32 %v7565_v22, %v7489_v17  ;;  %v11763_v25 = vpop.f32.mrb[59].mxu0 }
 0x73d   :  { %v8270_v31 = vpop.f32.mrb[24].mxu1 }
 0x73e   :  { %v7652_v3 = vpop.f32.mrb[60].mxu0  ;;  %v11915_v2 = vpop.f32.mrb[25].mxu1 }
 0x73f   :  { %v7656_v59 = vadd.f32 %v7652_v3, %v7566_v30  ;;  %v11782_v38 = vpop.f32.mrb[61].mxu0 }
 0x74d   :  { %v8446_v39 = vpop.f32.mrb[26].mxu1 }
 0x74e   :  { %v7740_v37 = vpop.f32.mrb[62].mxu0  ;;  %v11953_v41 = vpop.f32.mrb[27].mxu1 }
 0x74f   :  { %v7744_v42 = vadd.f32 %v7740_v37, %v7656_v59  ;;  %v11801_v19 = vpop.f32.mrb[63].mxu0 }
 0x75d   :  { %v8623_v23 = vpop.f32.mrb[28].mxu1 }
 0x75e   :  { %v7829_v24 = vpop.f32.mrb[64].mxu0  ;;  %v11991_v28 = vpop.f32.mrb[29].mxu1 }
 0x75f   :  { %v7833_v5 = vadd.f32 %v7829_v24, %v7744_v42  ;;  %v11820_v34 = vpop.f32.mrb[65].mxu0 }
 0x761   :  { %v7921_v43 = vadd.f32 %v7917_v16, %v7833_v5 }
 0x76d   :  { %v8799_v10 = vpop.f32.mrb[30].mxu1 }
 0x76e   :  { %v8005_v46 = vpop.f32.mrb[66].mxu0  ;;  %v12029_v47 = vpop.f32.mrb[31].mxu1 }
 0x76f   :  { %v8009_v27 = vadd.f32 %v8005_v46, %v7921_v43  ;;  %v11858_v48 = vpop.f32.mrb[67].mxu0 }
 0x771   :  { %v8097_v18 = vadd.f32 %v8093_v21, %v8009_v27 }
 0x77e   :  { %v8182_v52 = vpop.f32.mrb[68].mxu0 }
 0x77f   :  { %v8186_v35 = vadd.f32 %v8182_v52, %v8097_v18  ;;  %v11896_v53 = vpop.f32.mrb[69].mxu0 }
 0x781   :  { %v8274_v54 = vadd.f32 %v8270_v31, %v8186_v35 }
 0x78e   :  { %v8358_v57 = vpop.f32.mrb[70].mxu0 }
 0x78f   :  { %v8362_v26 = vadd.f32 %v8358_v57, %v8274_v54  ;;  %v11934_v58 = vpop.f32.mrb[71].mxu0 }
 0x791   :  { %v8450_v60 = vadd.f32 %v8446_v39, %v8362_v26 }
 0x79e   :  { %v8535_v44 = vpop.f32.mrb[72].mxu0 }
 0x79f   :  { %v8539_v61 = vadd.f32 %v8535_v44, %v8450_v60  ;;  %v11972_v50 = vpop.f32.mrb[73].mxu0 }
 0x7a1   :  { %v8627_v51 = vadd.f32 %v8623_v23, %v8539_v61 }
 0x7ae   :  { %v8711_v33 = vpop.f32.mrb[74].mxu0 }
 0x7af   :  { %v8715_v40 = vadd.f32 %v8711_v33, %v8627_v51  ;;  %v12010_v62 = vpop.f32.mrb[75].mxu0 }
 0x7b1   :  { %v8803_v45 = vadd.f32 %v8799_v10, %v8715_v40 }
 0x7b3   :  { %v8811_v63 = vadd.f32 %v9857_v29, %v8803_v45 }
 0x7b5   :  { %v8812_v0 = vmax.f32 %v8811_v63, 0.0 }
 0x7b7   :  { %8814 = vst.msk [vmem:[#allocation5] sm:$0x3] %vm8813_vm6, %v8812_v0 }
 0x7b8   :  { %12985 = shalt.err (!%p12982_p4)
}
 0x7b9   :  { %s12986_s29 = scalar_lea.hbm %s15837_s9, 32 }
 0x7ba   :  { %p12987_p5 = scmp.ne.s32.totalorder %s15837_s9, %s12986_s29  ;;  %p12990_p6 = scmp.lt.u32.totalorder %s12986_s29, %s15837_s9 }
 0x7bc   :  { %p12992_p7 = pnand %p12990_p6, %p12987_p5 }
 0x7be   :  { %12995 = shalt.err (!%p12992_p7)
}
 0x7bf   :  { %8824 = dma.vmem_to_hbm [thread:$0]  %s8822_s25, 32, %s15837_s9, [#allocation6]  }
 0x7c0   :  { %12996 = dma.done.wait [#allocation6], 32  }
 0x7c1   :  { %12997 = vsyncadd [#allocation6], 4294967264 }
 0x7c2   :  { %8828 = vsyncpa [#allocation6], 1 }

</bundles_post_ra>
